<compile_context>
chip_gen: v5e
topology: v5e:2x2
jax: 0.10.0
libtpu: 0.0.40
codegen_flags: <defaults>
</compile_context>

<pallas_src>
import functools

import jax
import jax.numpy as jnp
from jax.experimental import pallas as pl
from jax.experimental.pallas import tpu as pltpu

EPS = 1e-5                      # torch.nn.BatchNorm2d default eps
TM_TARGET = 2048                # M tile (lanes); multiple of 128
ACT_DTYPE = jnp.bfloat16        # inter-layer activation / patch storage dtype
VMEM_LIMIT = 48 * 1024 * 1024   # scoped VMEM budget (<= v7x 64 MiB physical)


def _round_up(x, m):
    return (x + m - 1) // m * m


# ---------------------------------------------------------------------------
# Fused per-layer kernel: conv-as-GEMM (transposed, lane-dense) + batch stats
# + training-mode BatchNorm + ReLU in a single pallas_call.
# ---------------------------------------------------------------------------
def _conv_bn_relu_kernel(w_ref, gb_ref, p_ref, o_ref, y_ref, sum_ref, sq_ref,
                         *, inv_m):
    """One M tile of y^T[C, M] = W^T[C, K] @ P^T[K, M]; stats; fused BN+ReLU.

    w_ref:   [C, K]      f32   conv weight, transposed   (resident, const blk)
    gb_ref:  [C, 2]      f32   (gamma | beta)            (resident, const blk)
    p_ref:   [K, tm]     bf16  im2col patches, M on lanes (pipelined per tile)
    o_ref:   [C, M_pad]  out   full output, resident across the grid
    y_ref:   [C, M_pad]  f32   VMEM scratch: full pre-BN conv output
    sum_ref: [C, 1]      f32   VMEM scratch: running per-channel sum
    sq_ref:  [C, 1]      f32   VMEM scratch: running per-channel sum of sq.
    """
    i = pl.program_id(0)
    tm = p_ref.shape[-1]

    @pl.when(i == 0)
    def _():
        sum_ref[...] = jnp.zeros_like(sum_ref)
        sq_ref[...] = jnp.zeros_like(sq_ref)

    # f32 MAC: bf16 patches are cast up in VMEM (avoids bf16xbf16 dot lowering
    # issues; the model is far from MXU-bound anyway).
    y = jnp.dot(w_ref[...], p_ref[...].astype(jnp.float32),
                preferred_element_type=jnp.float32)            # [C, tm]
    start = pl.multiple_of(i * tm, tm)
    y_ref[:, pl.ds(start, tm)] = y

    sum_ref[...] += jnp.sum(y, axis=1, keepdims=True)
    sq_ref[...] += jnp.sum(y * y, axis=1, keepdims=True)

    # Last step: derive scale/shift once, write whole resident output block.
    @pl.when(i == pl.num_programs(0) - 1)
    def _():
        mean = sum_ref[...] * inv_m                            # [C, 1]
        var = jnp.maximum(sq_ref[...] * inv_m - mean * mean, 0.0)
        scale = gb_ref[:, 0:1] * jax.lax.rsqrt(var + EPS)      # gamma*rsqrt
        shift = gb_ref[:, 1:2] - mean * scale                  # beta - mu*sc
        o_ref[...] = jnp.maximum(y_ref[...] * scale + shift,
                                 0.0).astype(o_ref.dtype)


# ---------------------------------------------------------------------------
# One conv(3x3, s=2, p=1) + BN(train) + ReLU layer.  Channel-major in/out.
# ---------------------------------------------------------------------------
def _conv_bn_relu_layer(x_cnhw, w, gamma, beta, *, out_dtype):
    """x_cnhw: [Cin, N, H, W] (ACT_DTYPE) -> [Cout, N, Ho, Wo] (out_dtype)."""
    cin, n, h, wdt = x_cnhw.shape
    cout = w.shape[-1]
    ho = (h + 2 - 3) // 2 + 1
    wo = (wdt + 2 - 3) // 2 + 1
    m = n * ho * wo
    k = 9 * cin

    # --- glue: channel-major im2col, [K, M] bf16, K order = (kh, kw, cin) ---
    # TODO(synk): build patches in-kernel (phase-split input + 9 accumulating
    # taps) to remove this residual HBM round trip and XLA glue.
    xp = jnp.pad(x_cnhw, ((0, 0), (0, 0), (1, 1), (1, 1)))
    taps = [
        xp[:, :, dh:dh + 2 * ho:2, dw:dw + 2 * wo:2].reshape(cin, m)
        for dh in range(3) for dw in range(3)
    ]
    p_t = jnp.concatenate(taps, axis=0)                            # [K, M]
    w_t = jnp.transpose(w.reshape(k, cout)).astype(jnp.float32)    # [Cout, K]
    gb = jnp.stack([gamma, beta], axis=1).astype(jnp.float32)      # [Cout, 2]

    # M tiling (lanes): multiple of 128, capped at TM_TARGET; pad M if needed.
    tm = min(TM_TARGET, _round_up(m, 128))
    m_pad = _round_up(m, tm)
    if m_pad != m:
        # Zero columns: zero contribution to the stats (inv_m uses the true m).
        p_t = jnp.pad(p_t, ((0, 0), (0, m_pad - m)))
    grid = m_pad // tm

    out = pl.pallas_call(
        functools.partial(_conv_bn_relu_kernel, inv_m=1.0 / m),
        out_shape=jax.ShapeDtypeStruct((cout, m_pad), out_dtype),
        grid_spec=pltpu.PrefetchScalarGridSpec(
            num_scalar_prefetch=0,
            grid=(grid,),
            in_specs=[
                pl.BlockSpec((cout, k), lambda i: (0, 0)),
                pl.BlockSpec((cout, 2), lambda i: (0, 0)),
                pl.BlockSpec((k, tm), lambda i: (0, i)),
            ],
            out_specs=pl.BlockSpec((cout, m_pad), lambda i: (0, 0)),
            scratch_shapes=[
                pltpu.VMEM((cout, m_pad), jnp.float32),   # pre-BN y (full M)
                pltpu.VMEM((cout, 1), jnp.float32),       # sum
                pltpu.VMEM((cout, 1), jnp.float32),       # sum of squares
            ],
        ),
        compiler_params=pltpu.CompilerParams(
            dimension_semantics=("arbitrary",),   # stats accumulate over tiles
            vmem_limit_bytes=VMEM_LIMIT,
        ),
    )(w_t, gb, p_t)

    if m_pad != m:
        out = out[:, :m]
    return out.reshape(cout, n, ho, wo)


# ---------------------------------------------------------------------------
# Full model
# ---------------------------------------------------------------------------
@jax.jit
def conv_input_model(img_nchw,
                     p1_w, p1_b, p1_g, p1_be,
                     p2_w, p2_b, p2_g, p2_be,
                     p3_w, p3_b, p3_g, p3_be,
                     p4_w, p4_b, p4_g, p4_be):
    # Conv biases accepted for interface parity but unused: training-mode BN's
    # mean subtraction cancels any per-channel constant exactly.
    del p1_b, p2_b, p3_b, p4_b
    x = jnp.transpose(img_nchw, (1, 0, 2, 3)).astype(ACT_DTYPE)  # [C,N,H,W]
    x = _conv_bn_relu_layer(x, p1_w, p1_g, p1_be, out_dtype=ACT_DTYPE)
    x = _conv_bn_relu_layer(x, p2_w, p2_g, p2_be, out_dtype=ACT_DTYPE)
    x = _conv_bn_relu_layer(x, p3_w, p3_g, p3_be, out_dtype=ACT_DTYPE)
    x = _conv_bn_relu_layer(x, p4_w, p4_g, p4_be, out_dtype=jnp.float32)
    return jnp.transpose(x, (1, 0, 2, 3))                        # NCHW


def init_params(key):
    """Deterministic synthetic parameters matching ConvInputModel shapes."""
    params = []
    cins = [3, 24, 24, 24]
    cout = 24
    for i, cin in enumerate(cins):
        kk = jax.random.fold_in(key, i)
        kw_, kb_ = jax.random.split(kk)
        fan_in = cin * 3 * 3
        w = jax.random.normal(kw_, (3, 3, cin, cout), jnp.float32) / jnp.sqrt(fan_in)
        b = 0.01 * jax.random.normal(kb_, (cout,), jnp.float32)
        gamma = jnp.ones((cout,), jnp.float32)     # BatchNorm2d default init
        beta = jnp.zeros((cout,), jnp.float32)
        params.append((w, b, gamma, beta))
    return params


def _reference(img_nchw, params):
    """Pure-JAX reference with matching semantics: activations quantized to
    bf16 before each conv (matching the kernel's bf16 inter-layer storage),
    f32 conv/BN math, bias included (cancelled by training-mode BN)."""
    x = img_nchw
    for (w, b, g, beta) in params:
        xq = x.astype(ACT_DTYPE).astype(jnp.float32)
        w_oihw = jnp.transpose(w, (3, 2, 0, 1)).astype(jnp.float32)
        y = jax.lax.conv_general_dilated(
            xq, w_oihw, window_strides=(2, 2), padding=((1, 1), (1, 1)),
            dimension_numbers=("NCHW", "OIHW", "NCHW"))
        y = y + b.reshape(1, -1, 1, 1)   # kernel omits this; BN cancels it
        mu = jnp.mean(y, axis=(0, 2, 3), keepdims=True)
        var = jnp.mean((y - mu) ** 2, axis=(0, 2, 3), keepdims=True)
        y = g.reshape(1, -1, 1, 1) * (y - mu) * jax.lax.rsqrt(var + EPS) \
            + beta.reshape(1, -1, 1, 1)
        x = jnp.maximum(y, 0.0)
    return x


if __name__ == "__main__":
    key = jax.random.PRNGKey(0)
    k_img, k_par = jax.random.split(key)

    # Small shape consistent with the module (in_channels must be 3).
    N, C, H, W = 2, 3, 64, 64
    img = jax.random.normal(k_img, (N, C, H, W), jnp.float32)
    params = init_params(k_par)

    flat = []
    for p in params:
        flat.extend(p)

    out = jax.block_until_ready(conv_input_model(img, *flat))

    # Spatial: 64 -> 32 -> 16 -> 8 -> 4, 24 channels.
    assert out.shape == (N, 24, 4, 4), out.shape

    ref = jax.block_until_ready(_reference(img, params))
    max_err = float(jnp.max(jnp.abs(out - ref)))
    assert jnp.allclose(out, ref, atol=2e-3, rtol=2e-3), max_err

    print("KERNEL_OK")
</pallas_src>

<mosaic_0001>
module attributes {stable_mosaic.version = 11 : i64} {
  func.func @_conv_bn_relu_kernel(%arg0: i32, %arg1: memref<24x27xf32, #tpu.memory_space<vmem>>, %arg2: memref<24x2xf32, #tpu.memory_space<vmem>>, %arg3: memref<27x2048xbf16, #tpu.memory_space<vmem>>, %arg4: memref<24x2048xbf16, #tpu.memory_space<vmem>>, %arg5: memref<24x2048xf32, #tpu.memory_space<vmem>>, %arg6: memref<24x1xf32, #tpu.memory_space<vmem>>, %arg7: memref<24x1xf32, #tpu.memory_space<vmem>>) attributes {dimension_semantics = [#tpu.dimension_semantics<arbitrary>], iteration_bounds = array<i64: 1>, scalar_prefetch = 0 : i64, scratch_operands = 3 : i64, tpu.core_type = #tpu.core_type<tc>, window_params = [{pipeline_mode = #tpu.pipeline_mode<synchronous>, transform_indices = @transform_0, window_bounds = array<i64: 24, 27>}, {pipeline_mode = #tpu.pipeline_mode<synchronous>, transform_indices = @transform_1, window_bounds = array<i64: 24, 2>}, {transform_indices = @transform_2, window_bounds = array<i64: 27, 2048>}, {pipeline_mode = #tpu.pipeline_mode<synchronous>, transform_indices = @transform_3, window_bounds = array<i64: 24, 2048>}]} {
    %c0_i32 = arith.constant 0 : i32
    %0 = arith.cmpi eq, %arg0, %c0_i32 : i32
    %1 = arith.extui %0 : i1 to i32
    %c0_i32_0 = arith.constant 0 : i32
    %2 = arith.cmpi ne, %1, %c0_i32_0 : i32
    scf.if %2 {
      %cst_17 = arith.constant 0.000000e+00 : f32
      %25 = vector.broadcast %cst_17 : f32 to vector<24x1xf32>
      %c0_18 = arith.constant 0 : index
      %c0_19 = arith.constant 0 : index
      %26 = vector.load %arg6[%c0_18, %c0_19] : memref<24x1xf32, #tpu.memory_space<vmem>>, vector<24x1xf32>
      tpu.vector_store %arg6[%c0_18, %c0_19], %25 {strides = array<i32>} : memref<24x1xf32, #tpu.memory_space<vmem>>, vector<24x1xf32>,
      %cst_20 = arith.constant 0.000000e+00 : f32
      %27 = vector.broadcast %cst_20 : f32 to vector<24x1xf32>
      %c0_21 = arith.constant 0 : index
      %c0_22 = arith.constant 0 : index
      %28 = vector.load %arg7[%c0_21, %c0_22] : memref<24x1xf32, #tpu.memory_space<vmem>>, vector<24x1xf32>
      tpu.vector_store %arg7[%c0_21, %c0_22], %27 {strides = array<i32>} : memref<24x1xf32, #tpu.memory_space<vmem>>, vector<24x1xf32>,
    } else {
    }
    %c0 = arith.constant 0 : index
    %c0_1 = arith.constant 0 : index
    %3 = vector.load %arg1[%c0, %c0_1] : memref<24x27xf32, #tpu.memory_space<vmem>>, vector<24x27xf32>
    %c0_2 = arith.constant 0 : index
    %c0_3 = arith.constant 0 : index
    %4 = vector.load %arg3[%c0_2, %c0_3] : memref<27x2048xbf16, #tpu.memory_space<vmem>>, vector<27x2048xbf16>
    %5 = arith.extf %4 : vector<27x2048xbf16> to vector<27x2048xf32>
    %cst = arith.constant dense<0.000000e+00> : vector<24x2048xf32>
    %6 = tpu.matmul %3, %5, %cst {dimension_numbers = #tpu.dot_dimension_numbers<[1], [0], [0], [1], [0, 0, 1, 1], [], []>} : vector<24x27xf32>, vector<27x2048xf32>, vector<24x2048xf32> -> vector<24x2048xf32>
    %c2048_i32 = arith.constant 2048 : i32
    %7 = arith.muli %arg0, %c2048_i32 : i32
    %8 = tpu.assume_multiple %7, 2048 : i32
    %c0_4 = arith.constant 0 : index
    %9 = arith.index_cast %8 : i32 to index
    %10 = vector.load %arg5[%c0_4, %9] : memref<24x2048xf32, #tpu.memory_space<vmem>>, vector<24x2048xf32>
    tpu.vector_store %arg5[%c0_4, %9], %6 {strides = array<i32>} : memref<24x2048xf32, #tpu.memory_space<vmem>>, vector<24x2048xf32>,
    %c0_5 = arith.constant 0 : index
    %c0_6 = arith.constant 0 : index
    %11 = vector.load %arg6[%c0_5, %c0_6] : memref<24x1xf32, #tpu.memory_space<vmem>>, vector<24x1xf32>
    %cst_7 = arith.constant dense<0.000000e+00> : vector<24xf32>
    %12 = vector.multi_reduction <add>, %6, %cst_7 [1] : vector<24x2048xf32> to vector<24xf32>
    %13 = vector.shape_cast %12 : vector<24xf32> to vector<24x1xf32>
    %14 = arith.addf %11, %13 : vector<24x1xf32>
    %c0_8 = arith.constant 0 : index
    %c0_9 = arith.constant 0 : index
    %15 = vector.load %arg6[%c0_8, %c0_9] : memref<24x1xf32, #tpu.memory_space<vmem>>, vector<24x1xf32>
    tpu.vector_store %arg6[%c0_8, %c0_9], %14 {strides = array<i32>} : memref<24x1xf32, #tpu.memory_space<vmem>>, vector<24x1xf32>,
    %c0_10 = arith.constant 0 : index
    %c0_11 = arith.constant 0 : index
    %16 = vector.load %arg7[%c0_10, %c0_11] : memref<24x1xf32, #tpu.memory_space<vmem>>, vector<24x1xf32>
    %17 = arith.mulf %6, %6 : vector<24x2048xf32>
    %cst_12 = arith.constant dense<0.000000e+00> : vector<24xf32>
    %18 = vector.multi_reduction <add>, %17, %cst_12 [1] : vector<24x2048xf32> to vector<24xf32>
    %19 = vector.shape_cast %18 : vector<24xf32> to vector<24x1xf32>
    %20 = arith.addf %16, %19 : vector<24x1xf32>
    %c0_13 = arith.constant 0 : index
    %c0_14 = arith.constant 0 : index
    %21 = vector.load %arg7[%c0_13, %c0_14] : memref<24x1xf32, #tpu.memory_space<vmem>>, vector<24x1xf32>
    tpu.vector_store %arg7[%c0_13, %c0_14], %20 {strides = array<i32>} : memref<24x1xf32, #tpu.memory_space<vmem>>, vector<24x1xf32>,
    %c0_i32_15 = arith.constant 0 : i32
    %22 = arith.cmpi eq, %arg0, %c0_i32_15 : i32
    %23 = arith.extui %22 : i1 to i32
    %c0_i32_16 = arith.constant 0 : i32
    %24 = arith.cmpi ne, %23, %c0_i32_16 : i32
    scf.if %24 {
      %c0_17 = arith.constant 0 : index
      %c0_18 = arith.constant 0 : index
      %25 = vector.load %arg6[%c0_17, %c0_18] : memref<24x1xf32, #tpu.memory_space<vmem>>, vector<24x1xf32>
      %cst_19 = arith.constant 4.8828125E-4 : f32
      %26 = vector.broadcast %cst_19 : f32 to vector<24x1xf32>
      %27 = arith.mulf %25, %26 : vector<24x1xf32>
      %c0_20 = arith.constant 0 : index
      %c0_21 = arith.constant 0 : index
      %28 = vector.load %arg7[%c0_20, %c0_21] : memref<24x1xf32, #tpu.memory_space<vmem>>, vector<24x1xf32>
      %cst_22 = arith.constant 4.8828125E-4 : f32
      %29 = vector.broadcast %cst_22 : f32 to vector<24x1xf32>
      %30 = arith.mulf %28, %29 : vector<24x1xf32>
      %31 = arith.mulf %27, %27 : vector<24x1xf32>
      %32 = arith.subf %30, %31 : vector<24x1xf32>
      %cst_23 = arith.constant 0.000000e+00 : f32
      %33 = vector.broadcast %cst_23 : f32 to vector<24x1xf32>
      %34 = arith.maximumf %32, %33 : vector<24x1xf32>
      %c0_24 = arith.constant 0 : index
      %c0_25 = arith.constant 0 : index
      %35 = vector.load %arg2[%c0_24, %c0_25] : memref<24x2xf32, #tpu.memory_space<vmem>>, vector<24x1xf32>
      %cst_26 = arith.constant 9.99999974E-6 : f32
      %36 = vector.broadcast %cst_26 : f32 to vector<24x1xf32>
      %37 = arith.addf %34, %36 : vector<24x1xf32>
      %38 = math.rsqrt %37 : vector<24x1xf32>
      %39 = arith.mulf %35, %38 : vector<24x1xf32>
      %c0_27 = arith.constant 0 : index
      %c1 = arith.constant 1 : index
      %40 = vector.load %arg2[%c0_27, %c1] : memref<24x2xf32, #tpu.memory_space<vmem>>, vector<24x1xf32>
      %41 = arith.mulf %27, %39 : vector<24x1xf32>
      %42 = arith.subf %40, %41 : vector<24x1xf32>
      %c0_28 = arith.constant 0 : index
      %c0_29 = arith.constant 0 : index
      %43 = vector.load %arg5[%c0_28, %c0_29] : memref<24x2048xf32, #tpu.memory_space<vmem>>, vector<24x2048xf32>
      %44 = vector.broadcast %39 : vector<24x1xf32> to vector<24x2048xf32>
      %45 = arith.mulf %43, %44 : vector<24x2048xf32>
      %46 = vector.broadcast %42 : vector<24x1xf32> to vector<24x2048xf32>
      %47 = arith.addf %45, %46 : vector<24x2048xf32>
      %cst_30 = arith.constant 0.000000e+00 : f32
      %48 = vector.broadcast %cst_30 : f32 to vector<24x2048xf32>
      %49 = arith.maximumf %47, %48 : vector<24x2048xf32>
      %50 = arith.truncf %49 : vector<24x2048xf32> to vector<24x2048xbf16>
      %c0_31 = arith.constant 0 : index
      %c0_32 = arith.constant 0 : index
      %51 = vector.load %arg4[%c0_31, %c0_32] : memref<24x2048xbf16, #tpu.memory_space<vmem>>, vector<24x2048xbf16>
      tpu.vector_store %arg4[%c0_31, %c0_32], %50 {strides = array<i32>} : memref<24x2048xbf16, #tpu.memory_space<vmem>>, vector<24x2048xbf16>,
    } else {
    }
    return
  }
  func.func @transform_0(%arg0: i32) -> (i32, i32) {
    %c0_i32 = arith.constant 0 : i32
    %c0_i32_0 = arith.constant 0 : i32
    %c0_i32_1 = arith.constant 0 : i32
    return %c0_i32, %c0_i32_0 : i32, i32
  }
  func.func @transform_1(%arg0: i32) -> (i32, i32) {
    %c0_i32 = arith.constant 0 : i32
    %c0_i32_0 = arith.constant 0 : i32
    %c0_i32_1 = arith.constant 0 : i32
    return %c0_i32, %c0_i32_0 : i32, i32
  }
  func.func @transform_2(%arg0: i32) -> (i32, i32) {
    %c0_i32 = arith.constant 0 : i32
    %c0_i32_0 = arith.constant 0 : i32
    return %c0_i32, %arg0 : i32, i32
  }
  func.func @transform_3(%arg0: i32) -> (i32, i32) {
    %c0_i32 = arith.constant 0 : i32
    %c0_i32_0 = arith.constant 0 : i32
    %c0_i32_1 = arith.constant 0 : i32
    return %c0_i32, %c0_i32_0 : i32, i32
  }
}

module attributes {stable_mosaic.version = 11 : i64} {
  func.func @_conv_bn_relu_kernel(%arg0: i32, %arg1: memref<24x216xf32, #tpu.memory_space<vmem>>, %arg2: memref<24x2xf32, #tpu.memory_space<vmem>>, %arg3: memref<216x512xbf16, #tpu.memory_space<vmem>>, %arg4: memref<24x512xbf16, #tpu.memory_space<vmem>>, %arg5: memref<24x512xf32, #tpu.memory_space<vmem>>, %arg6: memref<24x1xf32, #tpu.memory_space<vmem>>, %arg7: memref<24x1xf32, #tpu.memory_space<vmem>>) attributes {dimension_semantics = [#tpu.dimension_semantics<arbitrary>], iteration_bounds = array<i64: 1>, scalar_prefetch = 0 : i64, scratch_operands = 3 : i64, tpu.core_type = #tpu.core_type<tc>, window_params = [{pipeline_mode = #tpu.pipeline_mode<synchronous>, transform_indices = @transform_0, window_bounds = array<i64: 24, 216>}, {pipeline_mode = #tpu.pipeline_mode<synchronous>, transform_indices = @transform_1, window_bounds = array<i64: 24, 2>}, {transform_indices = @transform_2, window_bounds = array<i64: 216, 512>}, {pipeline_mode = #tpu.pipeline_mode<synchronous>, transform_indices = @transform_3, window_bounds = array<i64: 24, 512>}]} {
    %c0_i32 = arith.constant 0 : i32
    %0 = arith.cmpi eq, %arg0, %c0_i32 : i32
    %1 = arith.extui %0 : i1 to i32
    %c0_i32_0 = arith.constant 0 : i32
    %2 = arith.cmpi ne, %1, %c0_i32_0 : i32
    scf.if %2 {
      %cst_17 = arith.constant 0.000000e+00 : f32
      %25 = vector.broadcast %cst_17 : f32 to vector<24x1xf32>
      %c0_18 = arith.constant 0 : index
      %c0_19 = arith.constant 0 : index
      %26 = vector.load %arg6[%c0_18, %c0_19] : memref<24x1xf32, #tpu.memory_space<vmem>>, vector<24x1xf32>
      tpu.vector_store %arg6[%c0_18, %c0_19], %25 {strides = array<i32>} : memref<24x1xf32, #tpu.memory_space<vmem>>, vector<24x1xf32>,
      %cst_20 = arith.constant 0.000000e+00 : f32
      %27 = vector.broadcast %cst_20 : f32 to vector<24x1xf32>
      %c0_21 = arith.constant 0 : index
      %c0_22 = arith.constant 0 : index
      %28 = vector.load %arg7[%c0_21, %c0_22] : memref<24x1xf32, #tpu.memory_space<vmem>>, vector<24x1xf32>
      tpu.vector_store %arg7[%c0_21, %c0_22], %27 {strides = array<i32>} : memref<24x1xf32, #tpu.memory_space<vmem>>, vector<24x1xf32>,
    } else {
    }
    %c0 = arith.constant 0 : index
    %c0_1 = arith.constant 0 : index
    %3 = vector.load %arg1[%c0, %c0_1] : memref<24x216xf32, #tpu.memory_space<vmem>>, vector<24x216xf32>
    %c0_2 = arith.constant 0 : index
    %c0_3 = arith.constant 0 : index
    %4 = vector.load %arg3[%c0_2, %c0_3] : memref<216x512xbf16, #tpu.memory_space<vmem>>, vector<216x512xbf16>
    %5 = arith.extf %4 : vector<216x512xbf16> to vector<216x512xf32>
    %cst = arith.constant dense<0.000000e+00> : vector<24x512xf32>
    %6 = tpu.matmul %3, %5, %cst {dimension_numbers = #tpu.dot_dimension_numbers<[1], [0], [0], [1], [0, 0, 1, 1], [], []>} : vector<24x216xf32>, vector<216x512xf32>, vector<24x512xf32> -> vector<24x512xf32>
    %c512_i32 = arith.constant 512 : i32
    %7 = arith.muli %arg0, %c512_i32 : i32
    %8 = tpu.assume_multiple %7, 512 : i32
    %c0_4 = arith.constant 0 : index
    %9 = arith.index_cast %8 : i32 to index
    %10 = vector.load %arg5[%c0_4, %9] : memref<24x512xf32, #tpu.memory_space<vmem>>, vector<24x512xf32>
    tpu.vector_store %arg5[%c0_4, %9], %6 {strides = array<i32>} : memref<24x512xf32, #tpu.memory_space<vmem>>, vector<24x512xf32>,
    %c0_5 = arith.constant 0 : index
    %c0_6 = arith.constant 0 : index
    %11 = vector.load %arg6[%c0_5, %c0_6] : memref<24x1xf32, #tpu.memory_space<vmem>>, vector<24x1xf32>
    %cst_7 = arith.constant dense<0.000000e+00> : vector<24xf32>
    %12 = vector.multi_reduction <add>, %6, %cst_7 [1] : vector<24x512xf32> to vector<24xf32>
    %13 = vector.shape_cast %12 : vector<24xf32> to vector<24x1xf32>
    %14 = arith.addf %11, %13 : vector<24x1xf32>
    %c0_8 = arith.constant 0 : index
    %c0_9 = arith.constant 0 : index
    %15 = vector.load %arg6[%c0_8, %c0_9] : memref<24x1xf32, #tpu.memory_space<vmem>>, vector<24x1xf32>
    tpu.vector_store %arg6[%c0_8, %c0_9], %14 {strides = array<i32>} : memref<24x1xf32, #tpu.memory_space<vmem>>, vector<24x1xf32>,
    %c0_10 = arith.constant 0 : index
    %c0_11 = arith.constant 0 : index
    %16 = vector.load %arg7[%c0_10, %c0_11] : memref<24x1xf32, #tpu.memory_space<vmem>>, vector<24x1xf32>
    %17 = arith.mulf %6, %6 : vector<24x512xf32>
    %cst_12 = arith.constant dense<0.000000e+00> : vector<24xf32>
    %18 = vector.multi_reduction <add>, %17, %cst_12 [1] : vector<24x512xf32> to vector<24xf32>
    %19 = vector.shape_cast %18 : vector<24xf32> to vector<24x1xf32>
    %20 = arith.addf %16, %19 : vector<24x1xf32>
    %c0_13 = arith.constant 0 : index
    %c0_14 = arith.constant 0 : index
    %21 = vector.load %arg7[%c0_13, %c0_14] : memref<24x1xf32, #tpu.memory_space<vmem>>, vector<24x1xf32>
    tpu.vector_store %arg7[%c0_13, %c0_14], %20 {strides = array<i32>} : memref<24x1xf32, #tpu.memory_space<vmem>>, vector<24x1xf32>,
    %c0_i32_15 = arith.constant 0 : i32
    %22 = arith.cmpi eq, %arg0, %c0_i32_15 : i32
    %23 = arith.extui %22 : i1 to i32
    %c0_i32_16 = arith.constant 0 : i32
    %24 = arith.cmpi ne, %23, %c0_i32_16 : i32
    scf.if %24 {
      %c0_17 = arith.constant 0 : index
      %c0_18 = arith.constant 0 : index
      %25 = vector.load %arg6[%c0_17, %c0_18] : memref<24x1xf32, #tpu.memory_space<vmem>>, vector<24x1xf32>
      %cst_19 = arith.constant 0.001953125 : f32
      %26 = vector.broadcast %cst_19 : f32 to vector<24x1xf32>
      %27 = arith.mulf %25, %26 : vector<24x1xf32>
      %c0_20 = arith.constant 0 : index
      %c0_21 = arith.constant 0 : index
      %28 = vector.load %arg7[%c0_20, %c0_21] : memref<24x1xf32, #tpu.memory_space<vmem>>, vector<24x1xf32>
      %cst_22 = arith.constant 0.001953125 : f32
      %29 = vector.broadcast %cst_22 : f32 to vector<24x1xf32>
      %30 = arith.mulf %28, %29 : vector<24x1xf32>
      %31 = arith.mulf %27, %27 : vector<24x1xf32>
      %32 = arith.subf %30, %31 : vector<24x1xf32>
      %cst_23 = arith.constant 0.000000e+00 : f32
      %33 = vector.broadcast %cst_23 : f32 to vector<24x1xf32>
      %34 = arith.maximumf %32, %33 : vector<24x1xf32>
      %c0_24 = arith.constant 0 : index
      %c0_25 = arith.constant 0 : index
      %35 = vector.load %arg2[%c0_24, %c0_25] : memref<24x2xf32, #tpu.memory_space<vmem>>, vector<24x1xf32>
      %cst_26 = arith.constant 9.99999974E-6 : f32
      %36 = vector.broadcast %cst_26 : f32 to vector<24x1xf32>
      %37 = arith.addf %34, %36 : vector<24x1xf32>
      %38 = math.rsqrt %37 : vector<24x1xf32>
      %39 = arith.mulf %35, %38 : vector<24x1xf32>
      %c0_27 = arith.constant 0 : index
      %c1 = arith.constant 1 : index
      %40 = vector.load %arg2[%c0_27, %c1] : memref<24x2xf32, #tpu.memory_space<vmem>>, vector<24x1xf32>
      %41 = arith.mulf %27, %39 : vector<24x1xf32>
      %42 = arith.subf %40, %41 : vector<24x1xf32>
      %c0_28 = arith.constant 0 : index
      %c0_29 = arith.constant 0 : index
      %43 = vector.load %arg5[%c0_28, %c0_29] : memref<24x512xf32, #tpu.memory_space<vmem>>, vector<24x512xf32>
      %44 = vector.broadcast %39 : vector<24x1xf32> to vector<24x512xf32>
      %45 = arith.mulf %43, %44 : vector<24x512xf32>
      %46 = vector.broadcast %42 : vector<24x1xf32> to vector<24x512xf32>
      %47 = arith.addf %45, %46 : vector<24x512xf32>
      %cst_30 = arith.constant 0.000000e+00 : f32
      %48 = vector.broadcast %cst_30 : f32 to vector<24x512xf32>
      %49 = arith.maximumf %47, %48 : vector<24x512xf32>
      %50 = arith.truncf %49 : vector<24x512xf32> to vector<24x512xbf16>
      %c0_31 = arith.constant 0 : index
      %c0_32 = arith.constant 0 : index
      %51 = vector.load %arg4[%c0_31, %c0_32] : memref<24x512xbf16, #tpu.memory_space<vmem>>, vector<24x512xbf16>
      tpu.vector_store %arg4[%c0_31, %c0_32], %50 {strides = array<i32>} : memref<24x512xbf16, #tpu.memory_space<vmem>>, vector<24x512xbf16>,
    } else {
    }
    return
  }
  func.func @transform_0(%arg0: i32) -> (i32, i32) {
    %c0_i32 = arith.constant 0 : i32
    %c0_i32_0 = arith.constant 0 : i32
    %c0_i32_1 = arith.constant 0 : i32
    return %c0_i32, %c0_i32_0 : i32, i32
  }
  func.func @transform_1(%arg0: i32) -> (i32, i32) {
    %c0_i32 = arith.constant 0 : i32
    %c0_i32_0 = arith.constant 0 : i32
    %c0_i32_1 = arith.constant 0 : i32
    return %c0_i32, %c0_i32_0 : i32, i32
  }
  func.func @transform_2(%arg0: i32) -> (i32, i32) {
    %c0_i32 = arith.constant 0 : i32
    %c0_i32_0 = arith.constant 0 : i32
    return %c0_i32, %arg0 : i32, i32
  }
  func.func @transform_3(%arg0: i32) -> (i32, i32) {
    %c0_i32 = arith.constant 0 : i32
    %c0_i32_0 = arith.constant 0 : i32
    %c0_i32_1 = arith.constant 0 : i32
    return %c0_i32, %c0_i32_0 : i32, i32
  }
}

module attributes {stable_mosaic.version = 11 : i64} {
  func.func @_conv_bn_relu_kernel(%arg0: i32, %arg1: memref<24x216xf32, #tpu.memory_space<vmem>>, %arg2: memref<24x2xf32, #tpu.memory_space<vmem>>, %arg3: memref<216x128xbf16, #tpu.memory_space<vmem>>, %arg4: memref<24x128xbf16, #tpu.memory_space<vmem>>, %arg5: memref<24x128xf32, #tpu.memory_space<vmem>>, %arg6: memref<24x1xf32, #tpu.memory_space<vmem>>, %arg7: memref<24x1xf32, #tpu.memory_space<vmem>>) attributes {dimension_semantics = [#tpu.dimension_semantics<arbitrary>], iteration_bounds = array<i64: 1>, scalar_prefetch = 0 : i64, scratch_operands = 3 : i64, tpu.core_type = #tpu.core_type<tc>, window_params = [{pipeline_mode = #tpu.pipeline_mode<synchronous>, transform_indices = @transform_0, window_bounds = array<i64: 24, 216>}, {pipeline_mode = #tpu.pipeline_mode<synchronous>, transform_indices = @transform_1, window_bounds = array<i64: 24, 2>}, {transform_indices = @transform_2, window_bounds = array<i64: 216, 128>}, {pipeline_mode = #tpu.pipeline_mode<synchronous>, transform_indices = @transform_3, window_bounds = array<i64: 24, 128>}]} {
    %c0_i32 = arith.constant 0 : i32
    %0 = arith.cmpi eq, %arg0, %c0_i32 : i32
    %1 = arith.extui %0 : i1 to i32
    %c0_i32_0 = arith.constant 0 : i32
    %2 = arith.cmpi ne, %1, %c0_i32_0 : i32
    scf.if %2 {
      %cst_17 = arith.constant 0.000000e+00 : f32
      %25 = vector.broadcast %cst_17 : f32 to vector<24x1xf32>
      %c0_18 = arith.constant 0 : index
      %c0_19 = arith.constant 0 : index
      %26 = vector.load %arg6[%c0_18, %c0_19] : memref<24x1xf32, #tpu.memory_space<vmem>>, vector<24x1xf32>
      tpu.vector_store %arg6[%c0_18, %c0_19], %25 {strides = array<i32>} : memref<24x1xf32, #tpu.memory_space<vmem>>, vector<24x1xf32>,
      %cst_20 = arith.constant 0.000000e+00 : f32
      %27 = vector.broadcast %cst_20 : f32 to vector<24x1xf32>
      %c0_21 = arith.constant 0 : index
      %c0_22 = arith.constant 0 : index
      %28 = vector.load %arg7[%c0_21, %c0_22] : memref<24x1xf32, #tpu.memory_space<vmem>>, vector<24x1xf32>
      tpu.vector_store %arg7[%c0_21, %c0_22], %27 {strides = array<i32>} : memref<24x1xf32, #tpu.memory_space<vmem>>, vector<24x1xf32>,
    } else {
    }
    %c0 = arith.constant 0 : index
    %c0_1 = arith.constant 0 : index
    %3 = vector.load %arg1[%c0, %c0_1] : memref<24x216xf32, #tpu.memory_space<vmem>>, vector<24x216xf32>
    %c0_2 = arith.constant 0 : index
    %c0_3 = arith.constant 0 : index
    %4 = vector.load %arg3[%c0_2, %c0_3] : memref<216x128xbf16, #tpu.memory_space<vmem>>, vector<216x128xbf16>
    %5 = arith.extf %4 : vector<216x128xbf16> to vector<216x128xf32>
    %cst = arith.constant dense<0.000000e+00> : vector<24x128xf32>
    %6 = tpu.matmul %3, %5, %cst {dimension_numbers = #tpu.dot_dimension_numbers<[1], [0], [0], [1], [0, 0, 1, 1], [], []>} : vector<24x216xf32>, vector<216x128xf32>, vector<24x128xf32> -> vector<24x128xf32>
    %c128_i32 = arith.constant 128 : i32
    %7 = arith.muli %arg0, %c128_i32 : i32
    %8 = tpu.assume_multiple %7, 128 : i32
    %c0_4 = arith.constant 0 : index
    %9 = arith.index_cast %8 : i32 to index
    %10 = vector.load %arg5[%c0_4, %9] : memref<24x128xf32, #tpu.memory_space<vmem>>, vector<24x128xf32>
    tpu.vector_store %arg5[%c0_4, %9], %6 {strides = array<i32>} : memref<24x128xf32, #tpu.memory_space<vmem>>, vector<24x128xf32>,
    %c0_5 = arith.constant 0 : index
    %c0_6 = arith.constant 0 : index
    %11 = vector.load %arg6[%c0_5, %c0_6] : memref<24x1xf32, #tpu.memory_space<vmem>>, vector<24x1xf32>
    %cst_7 = arith.constant dense<0.000000e+00> : vector<24xf32>
    %12 = vector.multi_reduction <add>, %6, %cst_7 [1] : vector<24x128xf32> to vector<24xf32>
    %13 = vector.shape_cast %12 : vector<24xf32> to vector<24x1xf32>
    %14 = arith.addf %11, %13 : vector<24x1xf32>
    %c0_8 = arith.constant 0 : index
    %c0_9 = arith.constant 0 : index
    %15 = vector.load %arg6[%c0_8, %c0_9] : memref<24x1xf32, #tpu.memory_space<vmem>>, vector<24x1xf32>
    tpu.vector_store %arg6[%c0_8, %c0_9], %14 {strides = array<i32>} : memref<24x1xf32, #tpu.memory_space<vmem>>, vector<24x1xf32>,
    %c0_10 = arith.constant 0 : index
    %c0_11 = arith.constant 0 : index
    %16 = vector.load %arg7[%c0_10, %c0_11] : memref<24x1xf32, #tpu.memory_space<vmem>>, vector<24x1xf32>
    %17 = arith.mulf %6, %6 : vector<24x128xf32>
    %cst_12 = arith.constant dense<0.000000e+00> : vector<24xf32>
    %18 = vector.multi_reduction <add>, %17, %cst_12 [1] : vector<24x128xf32> to vector<24xf32>
    %19 = vector.shape_cast %18 : vector<24xf32> to vector<24x1xf32>
    %20 = arith.addf %16, %19 : vector<24x1xf32>
    %c0_13 = arith.constant 0 : index
    %c0_14 = arith.constant 0 : index
    %21 = vector.load %arg7[%c0_13, %c0_14] : memref<24x1xf32, #tpu.memory_space<vmem>>, vector<24x1xf32>
    tpu.vector_store %arg7[%c0_13, %c0_14], %20 {strides = array<i32>} : memref<24x1xf32, #tpu.memory_space<vmem>>, vector<24x1xf32>,
    %c0_i32_15 = arith.constant 0 : i32
    %22 = arith.cmpi eq, %arg0, %c0_i32_15 : i32
    %23 = arith.extui %22 : i1 to i32
    %c0_i32_16 = arith.constant 0 : i32
    %24 = arith.cmpi ne, %23, %c0_i32_16 : i32
    scf.if %24 {
      %c0_17 = arith.constant 0 : index
      %c0_18 = arith.constant 0 : index
      %25 = vector.load %arg6[%c0_17, %c0_18] : memref<24x1xf32, #tpu.memory_space<vmem>>, vector<24x1xf32>
      %cst_19 = arith.constant 7.812500e-03 : f32
      %26 = vector.broadcast %cst_19 : f32 to vector<24x1xf32>
      %27 = arith.mulf %25, %26 : vector<24x1xf32>
      %c0_20 = arith.constant 0 : index
      %c0_21 = arith.constant 0 : index
      %28 = vector.load %arg7[%c0_20, %c0_21] : memref<24x1xf32, #tpu.memory_space<vmem>>, vector<24x1xf32>
      %cst_22 = arith.constant 7.812500e-03 : f32
      %29 = vector.broadcast %cst_22 : f32 to vector<24x1xf32>
      %30 = arith.mulf %28, %29 : vector<24x1xf32>
      %31 = arith.mulf %27, %27 : vector<24x1xf32>
      %32 = arith.subf %30, %31 : vector<24x1xf32>
      %cst_23 = arith.constant 0.000000e+00 : f32
      %33 = vector.broadcast %cst_23 : f32 to vector<24x1xf32>
      %34 = arith.maximumf %32, %33 : vector<24x1xf32>
      %c0_24 = arith.constant 0 : index
      %c0_25 = arith.constant 0 : index
      %35 = vector.load %arg2[%c0_24, %c0_25] : memref<24x2xf32, #tpu.memory_space<vmem>>, vector<24x1xf32>
      %cst_26 = arith.constant 9.99999974E-6 : f32
      %36 = vector.broadcast %cst_26 : f32 to vector<24x1xf32>
      %37 = arith.addf %34, %36 : vector<24x1xf32>
      %38 = math.rsqrt %37 : vector<24x1xf32>
      %39 = arith.mulf %35, %38 : vector<24x1xf32>
      %c0_27 = arith.constant 0 : index
      %c1 = arith.constant 1 : index
      %40 = vector.load %arg2[%c0_27, %c1] : memref<24x2xf32, #tpu.memory_space<vmem>>, vector<24x1xf32>
      %41 = arith.mulf %27, %39 : vector<24x1xf32>
      %42 = arith.subf %40, %41 : vector<24x1xf32>
      %c0_28 = arith.constant 0 : index
      %c0_29 = arith.constant 0 : index
      %43 = vector.load %arg5[%c0_28, %c0_29] : memref<24x128xf32, #tpu.memory_space<vmem>>, vector<24x128xf32>
      %44 = vector.broadcast %39 : vector<24x1xf32> to vector<24x128xf32>
      %45 = arith.mulf %43, %44 : vector<24x128xf32>
      %46 = vector.broadcast %42 : vector<24x1xf32> to vector<24x128xf32>
      %47 = arith.addf %45, %46 : vector<24x128xf32>
      %cst_30 = arith.constant 0.000000e+00 : f32
      %48 = vector.broadcast %cst_30 : f32 to vector<24x128xf32>
      %49 = arith.maximumf %47, %48 : vector<24x128xf32>
      %50 = arith.truncf %49 : vector<24x128xf32> to vector<24x128xbf16>
      %c0_31 = arith.constant 0 : index
      %c0_32 = arith.constant 0 : index
      %51 = vector.load %arg4[%c0_31, %c0_32] : memref<24x128xbf16, #tpu.memory_space<vmem>>, vector<24x128xbf16>
      tpu.vector_store %arg4[%c0_31, %c0_32], %50 {strides = array<i32>} : memref<24x128xbf16, #tpu.memory_space<vmem>>, vector<24x128xbf16>,
    } else {
    }
    return
  }
  func.func @transform_0(%arg0: i32) -> (i32, i32) {
    %c0_i32 = arith.constant 0 : i32
    %c0_i32_0 = arith.constant 0 : i32
    %c0_i32_1 = arith.constant 0 : i32
    return %c0_i32, %c0_i32_0 : i32, i32
  }
  func.func @transform_1(%arg0: i32) -> (i32, i32) {
    %c0_i32 = arith.constant 0 : i32
    %c0_i32_0 = arith.constant 0 : i32
    %c0_i32_1 = arith.constant 0 : i32
    return %c0_i32, %c0_i32_0 : i32, i32
  }
  func.func @transform_2(%arg0: i32) -> (i32, i32) {
    %c0_i32 = arith.constant 0 : i32
    %c0_i32_0 = arith.constant 0 : i32
    return %c0_i32, %arg0 : i32, i32
  }
  func.func @transform_3(%arg0: i32) -> (i32, i32) {
    %c0_i32 = arith.constant 0 : i32
    %c0_i32_0 = arith.constant 0 : i32
    %c0_i32_1 = arith.constant 0 : i32
    return %c0_i32, %c0_i32_0 : i32, i32
  }
}

module attributes {stable_mosaic.version = 11 : i64} {
  func.func @_conv_bn_relu_kernel(%arg0: i32, %arg1: memref<24x216xf32, #tpu.memory_space<vmem>>, %arg2: memref<24x2xf32, #tpu.memory_space<vmem>>, %arg3: memref<216x128xbf16, #tpu.memory_space<vmem>>, %arg4: memref<24x128xf32, #tpu.memory_space<vmem>>, %arg5: memref<24x128xf32, #tpu.memory_space<vmem>>, %arg6: memref<24x1xf32, #tpu.memory_space<vmem>>, %arg7: memref<24x1xf32, #tpu.memory_space<vmem>>) attributes {dimension_semantics = [#tpu.dimension_semantics<arbitrary>], iteration_bounds = array<i64: 1>, scalar_prefetch = 0 : i64, scratch_operands = 3 : i64, tpu.core_type = #tpu.core_type<tc>, window_params = [{pipeline_mode = #tpu.pipeline_mode<synchronous>, transform_indices = @transform_0, window_bounds = array<i64: 24, 216>}, {pipeline_mode = #tpu.pipeline_mode<synchronous>, transform_indices = @transform_1, window_bounds = array<i64: 24, 2>}, {transform_indices = @transform_2, window_bounds = array<i64: 216, 128>}, {pipeline_mode = #tpu.pipeline_mode<synchronous>, transform_indices = @transform_3, window_bounds = array<i64: 24, 128>}]} {
    %c0_i32 = arith.constant 0 : i32
    %0 = arith.cmpi eq, %arg0, %c0_i32 : i32
    %1 = arith.extui %0 : i1 to i32
    %c0_i32_0 = arith.constant 0 : i32
    %2 = arith.cmpi ne, %1, %c0_i32_0 : i32
    scf.if %2 {
      %cst_17 = arith.constant 0.000000e+00 : f32
      %25 = vector.broadcast %cst_17 : f32 to vector<24x1xf32>
      %c0_18 = arith.constant 0 : index
      %c0_19 = arith.constant 0 : index
      %26 = vector.load %arg6[%c0_18, %c0_19] : memref<24x1xf32, #tpu.memory_space<vmem>>, vector<24x1xf32>
      tpu.vector_store %arg6[%c0_18, %c0_19], %25 {strides = array<i32>} : memref<24x1xf32, #tpu.memory_space<vmem>>, vector<24x1xf32>,
      %cst_20 = arith.constant 0.000000e+00 : f32
      %27 = vector.broadcast %cst_20 : f32 to vector<24x1xf32>
      %c0_21 = arith.constant 0 : index
      %c0_22 = arith.constant 0 : index
      %28 = vector.load %arg7[%c0_21, %c0_22] : memref<24x1xf32, #tpu.memory_space<vmem>>, vector<24x1xf32>
      tpu.vector_store %arg7[%c0_21, %c0_22], %27 {strides = array<i32>} : memref<24x1xf32, #tpu.memory_space<vmem>>, vector<24x1xf32>,
    } else {
    }
    %c0 = arith.constant 0 : index
    %c0_1 = arith.constant 0 : index
    %3 = vector.load %arg1[%c0, %c0_1] : memref<24x216xf32, #tpu.memory_space<vmem>>, vector<24x216xf32>
    %c0_2 = arith.constant 0 : index
    %c0_3 = arith.constant 0 : index
    %4 = vector.load %arg3[%c0_2, %c0_3] : memref<216x128xbf16, #tpu.memory_space<vmem>>, vector<216x128xbf16>
    %5 = arith.extf %4 : vector<216x128xbf16> to vector<216x128xf32>
    %cst = arith.constant dense<0.000000e+00> : vector<24x128xf32>
    %6 = tpu.matmul %3, %5, %cst {dimension_numbers = #tpu.dot_dimension_numbers<[1], [0], [0], [1], [0, 0, 1, 1], [], []>} : vector<24x216xf32>, vector<216x128xf32>, vector<24x128xf32> -> vector<24x128xf32>
    %c128_i32 = arith.constant 128 : i32
    %7 = arith.muli %arg0, %c128_i32 : i32
    %8 = tpu.assume_multiple %7, 128 : i32
    %c0_4 = arith.constant 0 : index
    %9 = arith.index_cast %8 : i32 to index
    %10 = vector.load %arg5[%c0_4, %9] : memref<24x128xf32, #tpu.memory_space<vmem>>, vector<24x128xf32>
    tpu.vector_store %arg5[%c0_4, %9], %6 {strides = array<i32>} : memref<24x128xf32, #tpu.memory_space<vmem>>, vector<24x128xf32>,
    %c0_5 = arith.constant 0 : index
    %c0_6 = arith.constant 0 : index
    %11 = vector.load %arg6[%c0_5, %c0_6] : memref<24x1xf32, #tpu.memory_space<vmem>>, vector<24x1xf32>
    %cst_7 = arith.constant dense<0.000000e+00> : vector<24xf32>
    %12 = vector.multi_reduction <add>, %6, %cst_7 [1] : vector<24x128xf32> to vector<24xf32>
    %13 = vector.shape_cast %12 : vector<24xf32> to vector<24x1xf32>
    %14 = arith.addf %11, %13 : vector<24x1xf32>
    %c0_8 = arith.constant 0 : index
    %c0_9 = arith.constant 0 : index
    %15 = vector.load %arg6[%c0_8, %c0_9] : memref<24x1xf32, #tpu.memory_space<vmem>>, vector<24x1xf32>
    tpu.vector_store %arg6[%c0_8, %c0_9], %14 {strides = array<i32>} : memref<24x1xf32, #tpu.memory_space<vmem>>, vector<24x1xf32>,
    %c0_10 = arith.constant 0 : index
    %c0_11 = arith.constant 0 : index
    %16 = vector.load %arg7[%c0_10, %c0_11] : memref<24x1xf32, #tpu.memory_space<vmem>>, vector<24x1xf32>
    %17 = arith.mulf %6, %6 : vector<24x128xf32>
    %cst_12 = arith.constant dense<0.000000e+00> : vector<24xf32>
    %18 = vector.multi_reduction <add>, %17, %cst_12 [1] : vector<24x128xf32> to vector<24xf32>
    %19 = vector.shape_cast %18 : vector<24xf32> to vector<24x1xf32>
    %20 = arith.addf %16, %19 : vector<24x1xf32>
    %c0_13 = arith.constant 0 : index
    %c0_14 = arith.constant 0 : index
    %21 = vector.load %arg7[%c0_13, %c0_14] : memref<24x1xf32, #tpu.memory_space<vmem>>, vector<24x1xf32>
    tpu.vector_store %arg7[%c0_13, %c0_14], %20 {strides = array<i32>} : memref<24x1xf32, #tpu.memory_space<vmem>>, vector<24x1xf32>,
    %c0_i32_15 = arith.constant 0 : i32
    %22 = arith.cmpi eq, %arg0, %c0_i32_15 : i32
    %23 = arith.extui %22 : i1 to i32
    %c0_i32_16 = arith.constant 0 : i32
    %24 = arith.cmpi ne, %23, %c0_i32_16 : i32
    scf.if %24 {
      %c0_17 = arith.constant 0 : index
      %c0_18 = arith.constant 0 : index
      %25 = vector.load %arg6[%c0_17, %c0_18] : memref<24x1xf32, #tpu.memory_space<vmem>>, vector<24x1xf32>
      %cst_19 = arith.constant 3.125000e-02 : f32
      %26 = vector.broadcast %cst_19 : f32 to vector<24x1xf32>
      %27 = arith.mulf %25, %26 : vector<24x1xf32>
      %c0_20 = arith.constant 0 : index
      %c0_21 = arith.constant 0 : index
      %28 = vector.load %arg7[%c0_20, %c0_21] : memref<24x1xf32, #tpu.memory_space<vmem>>, vector<24x1xf32>
      %cst_22 = arith.constant 3.125000e-02 : f32
      %29 = vector.broadcast %cst_22 : f32 to vector<24x1xf32>
      %30 = arith.mulf %28, %29 : vector<24x1xf32>
      %31 = arith.mulf %27, %27 : vector<24x1xf32>
      %32 = arith.subf %30, %31 : vector<24x1xf32>
      %cst_23 = arith.constant 0.000000e+00 : f32
      %33 = vector.broadcast %cst_23 : f32 to vector<24x1xf32>
      %34 = arith.maximumf %32, %33 : vector<24x1xf32>
      %c0_24 = arith.constant 0 : index
      %c0_25 = arith.constant 0 : index
      %35 = vector.load %arg2[%c0_24, %c0_25] : memref<24x2xf32, #tpu.memory_space<vmem>>, vector<24x1xf32>
      %cst_26 = arith.constant 9.99999974E-6 : f32
      %36 = vector.broadcast %cst_26 : f32 to vector<24x1xf32>
      %37 = arith.addf %34, %36 : vector<24x1xf32>
      %38 = math.rsqrt %37 : vector<24x1xf32>
      %39 = arith.mulf %35, %38 : vector<24x1xf32>
      %c0_27 = arith.constant 0 : index
      %c1 = arith.constant 1 : index
      %40 = vector.load %arg2[%c0_27, %c1] : memref<24x2xf32, #tpu.memory_space<vmem>>, vector<24x1xf32>
      %41 = arith.mulf %27, %39 : vector<24x1xf32>
      %42 = arith.subf %40, %41 : vector<24x1xf32>
      %c0_28 = arith.constant 0 : index
      %c0_29 = arith.constant 0 : index
      %43 = vector.load %arg5[%c0_28, %c0_29] : memref<24x128xf32, #tpu.memory_space<vmem>>, vector<24x128xf32>
      %44 = vector.broadcast %39 : vector<24x1xf32> to vector<24x128xf32>
      %45 = arith.mulf %43, %44 : vector<24x128xf32>
      %46 = vector.broadcast %42 : vector<24x1xf32> to vector<24x128xf32>
      %47 = arith.addf %45, %46 : vector<24x128xf32>
      %cst_30 = arith.constant 0.000000e+00 : f32
      %48 = vector.broadcast %cst_30 : f32 to vector<24x128xf32>
      %49 = arith.maximumf %47, %48 : vector<24x128xf32>
      %c0_31 = arith.constant 0 : index
      %c0_32 = arith.constant 0 : index
      %50 = vector.load %arg4[%c0_31, %c0_32] : memref<24x128xf32, #tpu.memory_space<vmem>>, vector<24x128xf32>
      tpu.vector_store %arg4[%c0_31, %c0_32], %49 {strides = array<i32>} : memref<24x128xf32, #tpu.memory_space<vmem>>, vector<24x128xf32>,
    } else {
    }
    return
  }
  func.func @transform_0(%arg0: i32) -> (i32, i32) {
    %c0_i32 = arith.constant 0 : i32
    %c0_i32_0 = arith.constant 0 : i32
    %c0_i32_1 = arith.constant 0 : i32
    return %c0_i32, %c0_i32_0 : i32, i32
  }
  func.func @transform_1(%arg0: i32) -> (i32, i32) {
    %c0_i32 = arith.constant 0 : i32
    %c0_i32_0 = arith.constant 0 : i32
    %c0_i32_1 = arith.constant 0 : i32
    return %c0_i32, %c0_i32_0 : i32, i32
  }
  func.func @transform_2(%arg0: i32) -> (i32, i32) {
    %c0_i32 = arith.constant 0 : i32
    %c0_i32_0 = arith.constant 0 : i32
    return %c0_i32, %arg0 : i32, i32
  }
  func.func @transform_3(%arg0: i32) -> (i32, i32) {
    %c0_i32 = arith.constant 0 : i32
    %c0_i32_0 = arith.constant 0 : i32
    %c0_i32_1 = arith.constant 0 : i32
    return %c0_i32, %c0_i32_0 : i32, i32
  }
}

</mosaic_0001>

<bundles_post_ra>
// kernel: conv_input_model.4
= control target key start
LH: loop header
LB: loop body
LE: loop exit
PB: predicated region body
PF: predicated region fallthrough
CT: control target
= control target key end

     0   :  { %vm134_vm0 = vcmask 1042432   ;;  %vm124_vm1 = vcmask 220160   ;;  %vm18_vm2 = vcmask 7168   ;;  %s1260_s28 = smov 1   ;;  %s1934_s2 = inlined_call_operand.vmem [shape: bf16[27,2048], index: 2, kind: input, shape index: {}]   ;;  %s1935_s0 = inlined_call_operand.vmem [shape: f32[24,27], index: 0, kind: input, shape index: {}]   ;;  %s1936_s1 = inlined_call_operand.vmem [shape: f32[24,2], index: 1, kind: input, shape index: {}]   ;;  %s1937_s3 = inlined_call_operand.vmem [shape: bf16[24,2048], index: 3, kind: output, shape index: {}]  }
   0x1   :  { %v52_v0 = vld [vmem:[%s1934_s2 + $0xc0] sm:$0x33]  ;;  %v53_v1 = vld [vmem:[%s1934_s2 + $0xc8] sm:$0x33]  ;;  %v55_v20 = vld [vmem:[%s1934_s2 + $0xd8] sm:$0x33] }
   0x2   :  { %v44_v2 = vld [vmem:[%s1934_s2 + $0x80] sm:$0xff]  ;;  %v108_v3 = vunpack.c.l.bf16 %v52_v0  ;;  %v110_v4 = vunpack.c.l.bf16 %v53_v1  ;;  %v109_v6 = vunpack.c.h.bf16 %v52_v0  ;;  %v45_v7 = vld [vmem:[%s1934_s2 + $0x88] sm:$0xff]  ;;  %v111_v11 = vunpack.c.h.bf16 %v53_v1  ;;  %v54_v23 = vld [vmem:[%s1934_s2 + $0xd0] sm:$0x33] }
   0x3   :  { %v92_v5 = vunpack.c.l.bf16 %v44_v2  ;;  %v36_v8 = vld [vmem:[%s1934_s2 + $0x40] sm:$0xff]  ;;  %v37_v9 = vld [vmem:[%s1934_s2 + $0x48] sm:$0xff]  ;;  %v94_v10 = vunpack.c.l.bf16 %v45_v7  ;;  %v93_v12 = vunpack.c.h.bf16 %v44_v2  ;;  %v95_v17 = vunpack.c.h.bf16 %v45_v7  ;;  %v47_v28 = vld [vmem:[%s1934_s2 + $0x98] sm:$0xff] }
   0x4   :  { %v28_v13 = vld [vmem:[%s1934_s2] sm:$0xff]  ;;  %v29_v14 = vld [vmem:[%s1934_s2 + $0x8] sm:$0xff]  ;;  %1178 = vmatpush.msk.msra.mxu0 %vm134_vm0, %v108_v3  ;;  %1186 = vmatpush.msk.msra.mxu2 %vm134_vm0, %v110_v4  ;;  %v76_v15 = vunpack.c.l.bf16 %v36_v8  ;;  %v78_v16 = vunpack.c.l.bf16 %v37_v9  ;;  %v77_v18 = vunpack.c.h.bf16 %v36_v8  ;;  %v79_v19 = vunpack.c.h.bf16 %v37_v9  ;;  %v46_v29 = vld [vmem:[%s1934_s2 + $0x90] sm:$0xff] }
   0x5   :  { %1182 = vmatpush.msk.msra.mxu1 %vm134_vm0, %v109_v6  ;;  %1190 = vmatpush.msk.msra.mxu3 %vm134_vm0, %v111_v11  ;;  %v60_v21 = vunpack.c.l.bf16 %v28_v13  ;;  %v62_v22 = vunpack.c.l.bf16 %v29_v14  ;;  %v1319_v24 = vld [vmem:[%s1935_s0] sm:$0xff]  ;;  %v114_v25 = vunpack.c.l.bf16 %v55_v20  ;;  %v61_v26 = vunpack.c.h.bf16 %v28_v13  ;;  %v39_v33 = vld [vmem:[%s1934_s2 + $0x58] sm:$0xff]  ;;  %v38_v34 = vld [vmem:[%s1934_s2 + $0x50] sm:$0xff] }
   0x6   :  { %196 = vmatpush.msra.mxu0 %v92_v5  ;;  %248 = vmatpush.msra.mxu2 %v94_v10  ;;  %v63_v27 = vunpack.c.h.bf16 %v29_v14  ;;  %v112_v30 = vunpack.c.l.bf16 %v54_v23  ;;  %v115_v31 = vunpack.c.h.bf16 %v55_v20  ;;  %v113_v32 = vunpack.c.h.bf16 %v54_v23  ;;  %v31_v41 = vld [vmem:[%s1934_s2 + $0x18] sm:$0xff]  ;;  %v30_v42 = vld [vmem:[%s1934_s2 + $0x10] sm:$0xff]  ;;  %v1354_v43 = vld [vmem:[%s1935_s0 + $0x8] sm:$0xff] }
   0x7   :  { %222 = vmatpush.msra.mxu1 %v93_v12  ;;  %274 = vmatpush.msra.mxu3 %v95_v17  ;;  %v98_v35 = vunpack.c.l.bf16 %v47_v28  ;;  %v96_v36 = vunpack.c.l.bf16 %v46_v29  ;;  %v99_v37 = vunpack.c.h.bf16 %v47_v28  ;;  %v97_v38 = vunpack.c.h.bf16 %v46_v29  ;;  %v57_v47 = vld [vmem:[%s1934_s2 + $0xe8] sm:$0x33]  ;;  %v56_v48 = vld [vmem:[%s1934_s2 + $0xe0] sm:$0x33]  ;;  %v1385_v62 = vld [vmem:[%s1935_s0 + $0x10] sm:$0xff] }
   0x8   :  { %197 = vmatpush.msra.mxu0 %v76_v15  ;;  %249 = vmatpush.msra.mxu2 %v78_v16  ;;  %v82_v39 = vunpack.c.l.bf16 %v39_v33  ;;  %v80_v40 = vunpack.c.l.bf16 %v38_v34  ;;  %v83_v44 = vunpack.c.h.bf16 %v39_v33  ;;  %v81_v45 = vunpack.c.h.bf16 %v38_v34  ;;  %v49_v52 = vld [vmem:[%s1934_s2 + $0xa8] sm:$0xff]  ;;  %v48_v53 = vld [vmem:[%s1934_s2 + $0xa0] sm:$0xff]  ;;  %v59_v11 = vld [vmem:[%s1934_s2 + $0xf8] sm:$0x33] }
   0x9   :  { %223 = vmatpush.msra.mxu1 %v77_v18  ;;  %275 = vmatpush.msra.mxu3 %v79_v19  ;;  %v66_v46 = vunpack.c.l.bf16 %v31_v41  ;;  %v64_v49 = vunpack.c.l.bf16 %v30_v42  ;;  %v67_v50 = vunpack.c.h.bf16 %v31_v41  ;;  %v65_v51 = vunpack.c.h.bf16 %v30_v42  ;;  %v41_v60 = vld [vmem:[%s1934_s2 + $0x68] sm:$0xff]  ;;  %v40_v61 = vld [vmem:[%s1934_s2 + $0x60] sm:$0xff]  ;;  %v58_v12 = vld [vmem:[%s1934_s2 + $0xf0] sm:$0x33] }
   0xa   :  { %198 = vmatpush.msra.mxu0 %v60_v21  ;;  %250 = vmatpush.msra.mxu2 %v62_v22  ;;  %v118_v54 = vunpack.c.l.bf16 %v57_v47  ;;  %v116_v55 = vunpack.c.l.bf16 %v56_v48  ;;  %v119_v56 = vunpack.c.h.bf16 %v57_v47  ;;  %v117_v57 = vunpack.c.h.bf16 %v56_v48  ;;  %v33_v2 = vld [vmem:[%s1934_s2 + $0x28] sm:$0xff]  ;;  %v32_v3 = vld [vmem:[%s1934_s2 + $0x20] sm:$0xff]  ;;  %v51_v15 = vld [vmem:[%s1934_s2 + $0xb8] sm:$0xff] }
   0xb   :  { %1179 = vmatmul.msk.f32.vlgmr.msra.gmra.mxu0 %vm124_vm1, %v1319_v24  ;;  %1187 = vmatmul.msk.f32.vlgmr.msra.gmra.mxu2 %vm124_vm1, %v1319_v24  ;;  %v102_v58 = vunpack.c.l.bf16 %v49_v52  ;;  %v100_v59 = vunpack.c.l.bf16 %v48_v53  ;;  %v103_v63 = vunpack.c.h.bf16 %v49_v52  ;;  %v101_v0 = vunpack.c.h.bf16 %v48_v53  ;;  %v50_v19 = vld [vmem:[%s1934_s2 + $0xb0] sm:$0xff]  ;;  %v43_v23 = vld [vmem:[%s1934_s2 + $0x78] sm:$0xff] }
   0xc   :  { %1202 = vmatpush.msk.msrb.mxu2 %vm134_vm0, %v114_v25  ;;  %224 = vmatpush.msra.mxu1 %v61_v26  ;;  %v86_v1 = vunpack.c.l.bf16 %v41_v60  ;;  %v84_v4 = vunpack.c.l.bf16 %v40_v61  ;;  %v87_v5 = vunpack.c.h.bf16 %v41_v60  ;;  %v85_v6 = vunpack.c.h.bf16 %v40_v61  ;;  %v42_v25 = vld [vmem:[%s1934_s2 + $0x70] sm:$0xff] }
   0xd   :  { %276 = vmatpush.msra.mxu3 %v63_v27  ;;  %1183 = vmatmul.msk.f32.vlgmr.msra.gmra.mxu1 %vm124_vm1, %v1319_v24  ;;  %v70_v7 = vunpack.c.l.bf16 %v33_v2  ;;  %v68_v8 = vunpack.c.l.bf16 %v32_v3  ;;  %v71_v9 = vunpack.c.h.bf16 %v33_v2  ;;  %v69_v10 = vunpack.c.h.bf16 %v32_v3 }
   0xe   :  { %1191 = vmatmul.msk.f32.vlgmr.msra.gmra.mxu3 %vm124_vm1, %v1319_v24  ;;  %1194 = vmatpush.msk.msrb.mxu0 %vm134_vm0, %v112_v30  ;;  %v122_v13 = vunpack.c.l.bf16 %v59_v11  ;;  %v120_v14 = vunpack.c.l.bf16 %v58_v12  ;;  %v121_v16 = vunpack.c.h.bf16 %v58_v12  ;;  %v123_v17 = vunpack.c.h.bf16 %v59_v11  ;;  %v35_v30 = vld [vmem:[%s1934_s2 + $0x38] sm:$0xff] }
   0xf   :  { %1206 = vmatpush.msk.msrb.mxu3 %vm134_vm0, %v115_v31  ;;  %1198 = vmatpush.msk.msrb.mxu1 %vm134_vm0, %v113_v32  ;;  %v106_v18 = vunpack.c.l.bf16 %v51_v15  ;;  %v104_v20 = vunpack.c.l.bf16 %v50_v19  ;;  %v107_v21 = vunpack.c.h.bf16 %v51_v15  ;;  %v105_v22 = vunpack.c.h.bf16 %v50_v19  ;;  %v34_v31 = vld [vmem:[%s1934_s2 + $0x30] sm:$0xff] }
  0x10   :  { %352 = vmatpush.msrb.mxu2 %v98_v35  ;;  %300 = vmatpush.msrb.mxu0 %v96_v36  ;;  %v90_v26 = vunpack.c.l.bf16 %v43_v23  ;;  %v88_v27 = vunpack.c.l.bf16 %v42_v25  ;;  %v91_v28 = vunpack.c.h.bf16 %v43_v23  ;;  %v89_v29 = vunpack.c.h.bf16 %v42_v25 }
  0x11   :  { %378 = vmatpush.msrb.mxu3 %v99_v37  ;;  %326 = vmatpush.msrb.mxu1 %v97_v38  ;;  %v74_v32 = vunpack.c.l.bf16 %v35_v30  ;;  %v72_v33 = vunpack.c.l.bf16 %v34_v31  ;;  %v75_v34 = vunpack.c.h.bf16 %v35_v30  ;;  %v73_v35 = vunpack.c.h.bf16 %v34_v31 }
  0x12   :  { %353 = vmatpush.msrb.mxu2 %v82_v39  ;;  %301 = vmatpush.msrb.mxu0 %v80_v40 }
  0x13   :  { %1180 = vmatmul.msk.f32.gmra.mxu0 %vm124_vm1, %v1354_v43  ;;  %1188 = vmatmul.msk.f32.gmra.mxu2 %vm124_vm1, %v1354_v43 }
  0x14   :  { %379 = vmatpush.msrb.mxu3 %v83_v44  ;;  %327 = vmatpush.msrb.mxu1 %v81_v45 }
  0x15   :  { %1184 = vmatmul.msk.f32.gmra.mxu1 %vm124_vm1, %v1354_v43  ;;  %354 = vmatpush.msrb.mxu2 %v66_v46 }
  0x16   :  { %1192 = vmatmul.msk.f32.gmra.mxu3 %vm124_vm1, %v1354_v43  ;;  %302 = vmatpush.msrb.mxu0 %v64_v49 }
  0x17   :  { %380 = vmatpush.msrb.mxu3 %v67_v50  ;;  %328 = vmatpush.msrb.mxu1 %v65_v51 }
  0x18   :  { %1218 = vmatpush.msk.msra.mxu2 %vm134_vm0, %v118_v54  ;;  %1210 = vmatpush.msk.msra.mxu0 %vm134_vm0, %v116_v55 }
  0x19   :  { %1222 = vmatpush.msk.msra.mxu3 %vm134_vm0, %v119_v56  ;;  %1214 = vmatpush.msk.msra.mxu1 %vm134_vm0, %v117_v57 }
  0x1a   :  { %456 = vmatpush.msra.mxu2 %v102_v58  ;;  %404 = vmatpush.msra.mxu0 %v100_v59 }
  0x1b   :  { %1181 = vmatmul.msk.f32.gmra.mxu0 %vm124_vm1, %v1385_v62  ;;  %1189 = vmatmul.msk.f32.gmra.mxu2 %vm124_vm1, %v1385_v62 }
  0x1c   :  { %482 = vmatpush.msra.mxu3 %v103_v63  ;;  %430 = vmatpush.msra.mxu1 %v101_v0 }
  0x1d   :  { %1185 = vmatmul.msk.f32.gmra.mxu1 %vm124_vm1, %v1385_v62  ;;  %457 = vmatpush.msra.mxu2 %v86_v1 }
  0x1e   :  { %1193 = vmatmul.msk.f32.gmra.mxu3 %vm124_vm1, %v1385_v62  ;;  %405 = vmatpush.msra.mxu0 %v84_v4 }
  0x1f   :  { %483 = vmatpush.msra.mxu3 %v87_v5  ;;  %431 = vmatpush.msra.mxu1 %v85_v6 }
  0x20   :  { %458 = vmatpush.msra.mxu2 %v70_v7  ;;  %406 = vmatpush.msra.mxu0 %v68_v8 }
  0x21   :  { %484 = vmatpush.msra.mxu3 %v71_v9  ;;  %432 = vmatpush.msra.mxu1 %v69_v10 }
  0x23   :  { %1195 = vmatmul.msk.f32.vlgmr.msrb.gmra.mxu0 %vm124_vm1, %v1319_v24  ;;  %1203 = vmatmul.msk.f32.vlgmr.msrb.gmra.mxu2 %vm124_vm1, %v1319_v24 }
  0x24   :  { %1234 = vmatpush.msk.msrb.mxu2 %vm134_vm0, %v122_v13  ;;  %1226 = vmatpush.msk.msrb.mxu0 %vm134_vm0, %v120_v14 }
  0x25   :  { %1199 = vmatmul.msk.f32.vlgmr.msrb.gmra.mxu1 %vm124_vm1, %v1319_v24 }
  0x26   :  { %1207 = vmatmul.msk.f32.vlgmr.msrb.gmra.mxu3 %vm124_vm1, %v1319_v24  ;;  %1230 = vmatpush.msk.msrb.mxu1 %vm134_vm0, %v121_v16 }
  0x27   :  { %1238 = vmatpush.msk.msrb.mxu3 %vm134_vm0, %v123_v17  ;;  %560 = vmatpush.msrb.mxu2 %v106_v18 }
  0x28   :  { %508 = vmatpush.msrb.mxu0 %v104_v20  ;;  %534 = vmatpush.msrb.mxu1 %v105_v22 }
  0x29   :  { %586 = vmatpush.msrb.mxu3 %v107_v21  ;;  %561 = vmatpush.msrb.mxu2 %v90_v26 }
  0x2a   :  { %509 = vmatpush.msrb.mxu0 %v88_v27  ;;  %535 = vmatpush.msrb.mxu1 %v89_v29 }
  0x2b   :  { %1196 = vmatmul.msk.f32.gmra.mxu0 %vm124_vm1, %v1354_v43  ;;  %1204 = vmatmul.msk.f32.gmra.mxu2 %vm124_vm1, %v1354_v43 }
  0x2c   :  { %587 = vmatpush.msrb.mxu3 %v91_v28  ;;  %562 = vmatpush.msrb.mxu2 %v74_v32 }
  0x2d   :  { %1200 = vmatmul.msk.f32.gmra.mxu1 %vm124_vm1, %v1354_v43  ;;  %510 = vmatpush.msrb.mxu0 %v72_v33 }
  0x2e   :  { %1208 = vmatmul.msk.f32.gmra.mxu3 %vm124_vm1, %v1354_v43  ;;  %536 = vmatpush.msrb.mxu1 %v73_v35 }
  0x2f   :  { %588 = vmatpush.msrb.mxu3 %v75_v34 }
  0x33   :  { %1197 = vmatmul.msk.f32.gmra.mxu0 %vm124_vm1, %v1385_v62  ;;  %1205 = vmatmul.msk.f32.gmra.mxu2 %vm124_vm1, %v1385_v62 }
  0x35   :  { %1201 = vmatmul.msk.f32.gmra.mxu1 %vm124_vm1, %v1385_v62 }
  0x36   :  { %1209 = vmatmul.msk.f32.gmra.mxu3 %vm124_vm1, %v1385_v62 }
  0x3b   :  { %1211 = vmatmul.msk.f32.vlgmr.msra.gmra.mxu0 %vm124_vm1, %v1319_v24  ;;  %1219 = vmatmul.msk.f32.vlgmr.msra.gmra.mxu2 %vm124_vm1, %v1319_v24 }
  0x3d   :  { %1215 = vmatmul.msk.f32.vlgmr.msra.gmra.mxu1 %vm124_vm1, %v1319_v24 }
  0x3e   :  { %1223 = vmatmul.msk.f32.vlgmr.msra.gmra.mxu3 %vm124_vm1, %v1319_v24 }
  0x43   :  { %1212 = vmatmul.msk.f32.gmra.mxu0 %vm124_vm1, %v1354_v43  ;;  %1220 = vmatmul.msk.f32.gmra.mxu2 %vm124_vm1, %v1354_v43 }
  0x45   :  { %1216 = vmatmul.msk.f32.gmra.mxu1 %vm124_vm1, %v1354_v43 }
  0x46   :  { %1224 = vmatmul.msk.f32.gmra.mxu3 %vm124_vm1, %v1354_v43 }
  0x4b   :  { %1213 = vmatmul.msk.f32.gmra.mxu0 %vm124_vm1, %v1385_v62  ;;  %1221 = vmatmul.msk.f32.gmra.mxu2 %vm124_vm1, %v1385_v62 }
  0x4d   :  { %1217 = vmatmul.msk.f32.gmra.mxu1 %vm124_vm1, %v1385_v62 }
  0x4e   :  { %1225 = vmatmul.msk.f32.gmra.mxu3 %vm124_vm1, %v1385_v62 }
  0x53   :  { %1227 = vmatmul.msk.f32.vlgmr.msrb.gmra.mxu0 %vm124_vm1, %v1319_v24  ;;  %1235 = vmatmul.msk.f32.vlgmr.msrb.gmra.mxu2 %vm124_vm1, %v1319_v24 }
  0x55   :  { %1231 = vmatmul.msk.f32.vlgmr.msrb.gmra.mxu1 %vm124_vm1, %v1319_v24 }
  0x56   :  { %1239 = vmatmul.msk.f32.vlgmr.msrb.gmra.mxu3 %vm124_vm1, %v1319_v24 }
  0x5b   :  { %1228 = vmatmul.msk.f32.gmra.mxu0 %vm124_vm1, %v1354_v43  ;;  %1236 = vmatmul.msk.f32.gmra.mxu2 %vm124_vm1, %v1354_v43 }
  0x5d   :  { %1232 = vmatmul.msk.f32.gmra.mxu1 %vm124_vm1, %v1354_v43 }
  0x5e   :  { %1240 = vmatmul.msk.f32.gmra.mxu3 %vm124_vm1, %v1354_v43 }
  0x63   :  { %1229 = vmatmul.msk.f32.gmra.mxu0 %vm124_vm1, %v1385_v62  ;;  %1237 = vmatmul.msk.f32.gmra.mxu2 %vm124_vm1, %v1385_v62 }
  0x65   :  { %1233 = vmatmul.msk.f32.gmra.mxu1 %vm124_vm1, %v1385_v62 }
  0x66   :  { %1241 = vmatmul.msk.f32.gmra.mxu3 %vm124_vm1, %v1385_v62 }
  0x88   :  { %v1505_v24 = vpop.f32.mrf.mxu0 }
  0x89   :  { %v716_v29 = vmul.f32 %v1505_v24, %v1505_v24 }
  0x8a   :  { %v1507_v36 = vpop.f32.mrf.mxu1 }
  0x8b   :  { %v655_v55 = vadd.f32 %v1507_v36, %v1505_v24  ;;  %v717_v30 = vmul.f32 %v1507_v36, %v1507_v36 }
  0x8e   :  { %v1509_v37 = vpop.f32.mrf.mxu2 }
  0x8f   :  { %v656_v58 = vadd.f32 %v655_v55, %v1509_v37  ;;  %v718_v55 = vmul.f32 %v1509_v37, %v1509_v37 }
  0x90   :  { %v1511_v38 = vpop.f32.mrf.mxu0 }
  0x91   :  { %v1513_v39 = vpop.f32.mrf.mxu3  ;;  %v732_v60 = vmul.f32 %v1511_v38, %v1511_v38 }
  0x92   :  { %v1515_v40 = vpop.f32.mrf.mxu1  ;;  %v657_v61 = vadd.f32 %v656_v58, %v1513_v39 }
  0x93   :  { %v733_v62 = vmul.f32 %v1515_v40, %v1515_v40  ;;  %v672_v0 = vadd.f32 %v1515_v40, %v1511_v38 }
  0x95   :  { %v781_v5 = vadd.f32 %v733_v62, %v732_v60 }
  0x96   :  { %v1517_v41 = vpop.f32.mrf.mxu2 }
  0x97   :  { %v734_v1 = vmul.f32 %v1517_v41, %v1517_v41  ;;  %v673_v6 = vadd.f32 %v672_v0, %v1517_v41 }
  0x98   :  { %v1519_v42 = vpop.f32.mrf.mxu0 }
  0x99   :  { %v1521_v43 = vpop.f32.mrf.mxu3  ;;  %v782_v7 = vadd.f32 %v781_v5, %v734_v1  ;;  %v748_v10 = vmul.f32 %v1519_v42, %v1519_v42  ;;  %v764_v1 = vadd.f32 %v717_v30, %v716_v29 }
  0x9a   :  { %v1523_v44 = vpop.f32.mrf.mxu1  ;;  %v735_v8 = vmul.f32 %v1521_v43, %v1521_v43  ;;  %v674_v13 = vadd.f32 %v673_v6, %v1521_v43 }
  0x9b   :  { %v749_v11 = vmul.f32 %v1523_v44, %v1523_v44  ;;  %v689_v16 = vadd.f32 %v1523_v44, %v1519_v42 }
  0x9c   :  { %v783_v19 = vadd.f32 %v782_v7, %v735_v8 }
  0x9d   :  { %v798_v22 = vadd.f32 %v749_v11, %v748_v10  ;;  %v765_v11 = vadd.f32 %v764_v1, %v718_v55 }
  0x9e   :  { %v1525_v45 = vpop.f32.mrf.mxu2 }
  0x9f   :  { %v750_v17 = vmul.f32 %v1525_v45, %v1525_v45  ;;  %v690_v23 = vadd.f32 %v689_v16, %v1525_v45 }
  0xa0   :  { %v1527_v46 = vpop.f32.mrf.mxu0 }
  0xa1   :  { %v1529_v47 = vpop.f32.mrf.mxu3  ;;  %v658_v2 = vadd.f32 %v657_v61, %v1527_v46  ;;  %v799_v31 = vadd.f32 %v798_v22, %v750_v17  ;;  %v720_v22 = vmul.f32 %v1527_v46, %v1527_v46 }
  0xa2   :  { %v1531_v48 = vpop.f32.mrf.mxu1  ;;  %v751_v32 = vmul.f32 %v1529_v47, %v1529_v47  ;;  %v691_v58 = vadd.f32 %v690_v23, %v1529_v47 }
  0xa3   :  { %v659_v9 = vadd.f32 %v658_v2, %v1531_v48 }
  0xa4   :  { %v800_v2 = vadd.f32 %v799_v31, %v751_v32 }
  0xa6   :  { %v1533_v49 = vpop.f32.mrf.mxu2 }
  0xa7   :  { %v660_v14 = vadd.f32 %v659_v9, %v1533_v49 }
  0xa8   :  { %v1535_v50 = vpop.f32.mrf.mxu0 }
  0xa9   :  { %v1537_v51 = vpop.f32.mrf.mxu3  ;;  %v736_v15 = vmul.f32 %v1535_v50, %v1535_v50  ;;  %v675_v20 = vadd.f32 %v674_v13, %v1535_v50  ;;  %v719_v13 = vmul.f32 %v1513_v39, %v1513_v39 }
  0xaa   :  { %v1539_v52 = vpop.f32.mrf.mxu1  ;;  %v661_v27 = vadd.f32 %v660_v14, %v1537_v51 }
  0xab   :  { %v784_v26 = vadd.f32 %v783_v19, %v736_v15  ;;  %v737_v28 = vmul.f32 %v1539_v52, %v1539_v52  ;;  %v676_v33 = vadd.f32 %v675_v20, %v1539_v52  ;;  %v766_v29 = vadd.f32 %v765_v11, %v719_v13 }
  0xad   :  { %v785_v62 = vadd.f32 %v784_v26, %v737_v28  ;;  %v767_v55 = vadd.f32 %v766_v29, %v720_v22  ;;  %v723_v29 = vmul.f32 %v1537_v51, %v1537_v51 }
  0xae   :  { %v1541_v53 = vpop.f32.mrf.mxu2 }
  0xaf   :  { %v738_v34 = vmul.f32 %v1541_v53, %v1541_v53  ;;  %v677_v0 = vadd.f32 %v676_v33, %v1541_v53 }
  0xb0   :  { %v1543_v54 = vpop.f32.mrf.mxu0 }
  0xb1   :  { %v1547_v56 = vpop.f32.mrf.mxu3  ;;  %v752_v60 = vmul.f32 %v1543_v54, %v1543_v54  ;;  %v692_v5 = vadd.f32 %v691_v58, %v1543_v54  ;;  %v786_v7 = vadd.f32 %v785_v62, %v738_v34  ;;  %v721_v58 = vmul.f32 %v1531_v48, %v1531_v48 }
  0xb2   :  { %v1549_v57 = vpop.f32.mrf.mxu1  ;;  %v739_v8 = vmul.f32 %v1547_v56, %v1547_v56  ;;  %v678_v17 = vadd.f32 %v677_v0, %v1547_v56 }
  0xb3   :  { %v801_v14 = vadd.f32 %v800_v2, %v752_v60  ;;  %v753_v15 = vmul.f32 %v1549_v57, %v1549_v57  ;;  %v693_v23 = vadd.f32 %v692_v5, %v1549_v57 }
  0xb5   :  { %v802_v30 = vadd.f32 %v801_v14, %v753_v15 }
  0xb6   :  { %v1552_v59 = vpop.f32.mrf.mxu2 }
  0xb7   :  { %v754_v26 = vmul.f32 %v1552_v59, %v1552_v59  ;;  %v694_v31 = vadd.f32 %v693_v23, %v1552_v59 }
  0xb8   :  { %v1559_v63 = vpop.f32.mrf.mxu0 }
  0xb9   :  { %v1566_v3 = vpop.f32.mrf.mxu3  ;;  %v662_v35 = vadd.f32 %v661_v27, %v1559_v63  ;;  %v787_v27 = vadd.f32 %v786_v7, %v739_v8  ;;  %v803_v60 = vadd.f32 %v802_v30, %v754_v26  ;;  %v722_v8 = vmul.f32 %v1533_v49, %v1533_v49 }
  0xba   :  { %v1568_v4 = vpop.f32.mrf.mxu1  ;;  %v755_v0 = vmul.f32 %v1566_v3, %v1566_v3 }
  0xbb   :  { %1945 = vst [vmem:[#allocation5_spill] sm:$0xff] %v1568_v4  ;;  %v663_v9 = vadd.f32 %v662_v35, %v1568_v4 }
  0xbe   :  { %v1578_v12 = vpop.f32.mrf.mxu2 }
  0xbf   :  { %1946 = vst [vmem:[#allocation6_spill] sm:$0xff] %v1578_v12  ;;  %v664_v19 = vadd.f32 %v663_v9, %v1578_v12  ;;  %v695_v9 = vadd.f32 %v694_v31, %v1566_v3 }
  0xc0   :  { %v1588_v18 = vpop.f32.mrf.mxu0 }
  0xc1   :  { %v1591_v21 = vpop.f32.mrf.mxu3  ;;  %v740_v20 = vmul.f32 %v1588_v18, %v1588_v18  ;;  %v679_v28 = vadd.f32 %v678_v17, %v1588_v18  ;;  %v768_v17 = vadd.f32 %v767_v55, %v721_v58  ;;  %v724_v55 = vmul.f32 %v1559_v63, %v1559_v63 }
  0xc2   :  { %1947 = vst [vmem:[#allocation7_spill] sm:$0xff] %v1591_v21  ;;  %v1594_v25 = vpop.f32.mrf.mxu1  ;;  %v665_v34 = vadd.f32 %v664_v19, %v1591_v21 }
  0xc3   :  { %v788_v33 = vadd.f32 %v787_v27, %v740_v20  ;;  %v741_v35 = vmul.f32 %v1594_v25, %v1594_v25  ;;  %v680_v1 = vadd.f32 %v679_v28, %v1594_v25  ;;  %v804_v20 = vadd.f32 %v803_v60, %v755_v0 }
  0xc4   :  { %v1258_v27 = vmov 0.0   ;;  %v769_v28 = vadd.f32 %v768_v17, %v722_v8 }
  0xc5   :  { %v789_v13 = vadd.f32 %v788_v33, %v741_v35  ;;  %19 = vst.msk [vmem:[#allocation3] sm:$0xff] %vm18_vm2, %v1258_v27 }
  0xc6   :  { %v1614_v61 = vpop.f32.mrf.mxu2  ;;  %20 = vst.msk [vmem:[#allocation3 + $0x8] sm:$0xff] %vm18_vm2, %v1258_v27 }
  0xc7   :  { %v742_v2 = vmul.f32 %v1614_v61, %v1614_v61  ;;  %v681_v14 = vadd.f32 %v680_v1, %v1614_v61  ;;  %21 = vst.msk [vmem:[#allocation3 + $0x10] sm:$0xff] %vm18_vm2, %v1258_v27 }
  0xc8   :  { %v1618_v6 = vpop.f32.mrf.mxu0  ;;  %22 = vst.msk [vmem:[#allocation4] sm:$0xff] %vm18_vm2, %v1258_v27 }
  0xc9   :  { %v1623_v10 = vpop.f32.mrf.mxu3  ;;  %v756_v15 = vmul.f32 %v1618_v6, %v1618_v6  ;;  %v696_v19 = vadd.f32 %v695_v9, %v1618_v6  ;;  %v790_v22 = vadd.f32 %v789_v13, %v742_v2  ;;  %23 = vst.msk [vmem:[#allocation4 + $0x8] sm:$0xff] %vm18_vm2, %v1258_v27  ;;  %v770_v9 = vadd.f32 %v769_v28, %v723_v29 }
  0xca   :  { %v1629_v16 = vpop.f32.mrf.mxu1  ;;  %v743_v23 = vmul.f32 %v1623_v10, %v1623_v10  ;;  %v682_v33 = vadd.f32 %v681_v14, %v1623_v10  ;;  %24 = vst.msk [vmem:[#allocation4 + $0x10] sm:$0xff] %vm18_vm2, %v1258_v27  ;;  %v726_v27 = vmul.f32 %v1578_v12, %v1578_v12 }
  0xcb   :  { %v805_v31 = vadd.f32 %v804_v20, %v756_v15  ;;  %v697_v58 = vadd.f32 %v696_v19, %v1629_v16 }
  0xcc   :  { %v791_v0 = vadd.f32 %v790_v22, %v743_v23  ;;  %v771_v22 = vadd.f32 %v770_v9, %v724_v55  ;;  %v725_v23 = vmul.f32 %v1568_v4, %v1568_v4 }
  0xce   :  { %v1642_v32 = vpop.f32.mrf.mxu2 }
  0xcf   :  { %v758_v1 = vmul.f32 %v1642_v32, %v1642_v32  ;;  %v698_v17 = vadd.f32 %v697_v58, %v1642_v32  ;;  %v772_v58 = vadd.f32 %v771_v22, %v725_v23 }
  0xd0   :  { %v1649_v62 = vpop.f32.mrf.mxu0 }
  0xd1   :  { %1948 = vst [vmem:[#allocation8_spill] sm:$0xff] %v1649_v62  ;;  %v1656_v5 = vpop.f32.mrf.mxu3  ;;  %v666_v7 = vadd.f32 %v665_v34, %v1649_v62  ;;  %v757_v34 = vmul.f32 %v1629_v16, %v1629_v16 }
  0xd2   :  { %v1662_v11 = vpop.f32.mrf.mxu1  ;;  %v759_v28 = vmul.f32 %v1656_v5, %v1656_v5 }
  0xd3   :  { %1949 = vst [vmem:[#allocation9_spill] sm:$0xff] %v1662_v11  ;;  %v667_v26 = vadd.f32 %v666_v7, %v1662_v11  ;;  %v806_v15 = vadd.f32 %v805_v31, %v757_v34 }
  0xd6   :  { %v1674_v30 = vpop.f32.mrf.mxu2 }
  0xd7   :  { %1950 = vst [vmem:[#allocation10_spill] sm:$0xff] %v1674_v30  ;;  %v668_v35 = vadd.f32 %v667_v26, %v1674_v30  ;;  %v807_v26 = vadd.f32 %v806_v15, %v758_v1  ;;  %v773_v15 = vadd.f32 %v772_v58, %v726_v27 }
  0xd8   :  { %v1685_v60 = vpop.f32.mrf.mxu0 }
  0xd9   :  { %v683_v2 = vadd.f32 %v682_v33, %v1685_v60  ;;  %v744_v7 = vmul.f32 %v1685_v60, %v1685_v60  ;;  %v1693_v8 = vpop.f32.mrf.mxu3  ;;  %v699_v33 = vadd.f32 %v698_v17, %v1656_v5  ;;  %v808_v1 = vadd.f32 %v807_v26, %v759_v28 }
  0xda   :  { %1951 = vst [vmem:[#allocation11_spill] sm:$0xff] %v1693_v8  ;;  %v1696_v13 = vpop.f32.mrf.mxu1  ;;  %v669_v14 = vadd.f32 %v668_v35, %v1693_v8  ;;  %v727_v17 = vmul.f32 %v1591_v21, %v1591_v21  ;;  %v728_v26 = vmul.f32 %v1649_v62, %v1649_v62 }
  0xdb   :  { %v792_v19 = vadd.f32 %v791_v0, %v744_v7  ;;  %v745_v20 = vmul.f32 %v1696_v13, %v1696_v13  ;;  %v684_v29 = vadd.f32 %v683_v2, %v1696_v13 }
  0xdc   :  { %670 = vadd.xlane.f32.xlu0 %v669_v14  ;;  %v774_v27 = vadd.f32 %v773_v15, %v727_v17 }
  0xdd   :  { %v793_v55 = vadd.f32 %v792_v19, %v745_v20 }
  0xde   :  { %v1710_v31 = vpop.f32.mrf.mxu2  ;;  %v775_v58 = vadd.f32 %v774_v27, %v728_v26 }
  0xdf   :  { %v746_v34 = vmul.f32 %v1710_v31, %v1710_v31  ;;  %v685_v35 = vadd.f32 %v684_v29, %v1710_v31 }
  0xe0   :  { %v1716_v0 = vpop.f32.mrf.mxu0 }
  0xe1   :  { %v700_v7 = vadd.f32 %v699_v33, %v1716_v0  ;;  %v760_v2 = vmul.f32 %v1716_v0, %v1716_v0  ;;  %v1721_v9 = vpop.f32.mrf.mxu3  ;;  %v794_v14 = vadd.f32 %v793_v55, %v746_v34 }
  0xe2   :  { %v1725_v12 = vpop.f32.mrf.mxu1  ;;  %v686_v19 = vadd.f32 %v685_v35, %v1721_v9  ;;  %v747_v20 = vmul.f32 %v1721_v9, %v1721_v9 }
  0xe3   :  { %v809_v22 = vadd.f32 %v808_v1, %v760_v2  ;;  %v761_v23 = vmul.f32 %v1725_v12, %v1725_v12  ;;  %v701_v29 = vadd.f32 %v700_v7, %v1725_v12  ;;  %v729_v1 = vmul.f32 %v1662_v11, %v1662_v11 }
  0xe4   :  { %687 = vadd.xlane.f32.xlu0 %v686_v19  ;;  %v795_v28 = vadd.f32 %v794_v14, %v747_v20  ;;  %v730_v7 = vmul.f32 %v1674_v30, %v1674_v30  ;;  %v714_v30 = vld [vmem:[#allocation4 + $0x8] sm:$0xff] }
  0xe5   :  { %v810_v34 = vadd.f32 %v809_v22, %v761_v23  ;;  %v776_v20 = vadd.f32 %v775_v58, %v729_v1  ;;  %v731_v22 = vmul.f32 %v1693_v8, %v1693_v8  ;;  %v654_v1 = vld [vmem:[#allocation3 + $0x10] sm:$0xff] }
  0xe6   :  { %796 = vadd.xlane.f32.xlu2 %v795_v28  ;;  %v1735_v33 = vpop.f32.mrf.mxu2  ;;  %v652_v28 = vld [vmem:[#allocation3] sm:$0xff] }
  0xe7   :  { %v702_v35 = vadd.f32 %v701_v29, %v1735_v33  ;;  %v762_v55 = vmul.f32 %v1735_v33, %v1735_v33  ;;  %v777_v23 = vadd.f32 %v776_v20, %v730_v7  ;;  %v715_v7 = vld [vmem:[#allocation4 + $0x10] sm:$0xff] }
  0xe9   :  { %v1742_v2 = vpop.f32.mrf.mxu3  ;;  %v811_v19 = vadd.f32 %v810_v34, %v762_v55  ;;  %v778_v26 = vadd.f32 %v777_v23, %v731_v22  ;;  %v653_v34 = vld [vmem:[#allocation3 + $0x8] sm:$0xff] }
  0xea   :  { %v763_v14 = vmul.f32 %v1742_v2, %v1742_v2  ;;  %v703_v15 = vadd.f32 %v702_v35, %v1742_v2 }
  0xec   :  { %704 = vadd.xlane.f32.xlu1 %v703_v15  ;;  %v812_v17 = vadd.f32 %v811_v19, %v763_v14 }
  0xee   :  { %813 = vadd.xlane.f32.xlu2 %v812_v17 }
  0xf4   :  { %779 = vadd.xlane.f32.xlu1 %v778_v26  ;;  %v1259_v26 = vmov 0  }
  0xf5   :  { %1248 = vset.pattern.permute.xlu1 %v1259_v26  ;;  %1247 = vset.pattern.permute.xlu2 %v1259_v26 }
  0xf6   :  { %1246 = vset.pattern.permute.xlu0 %v1259_v26 }
 0x14f   :  { %v671_v29 = vpop.xlane.xlu0 %670 }
 0x150   :  { %v706_v27 = vadd.f32 %v671_v29, %v652_v28  ;;  %v713_v28 = vld [vmem:[#allocation4] sm:$0xff] }
 0x152   :  { %710 = vst.msk [vmem:[#allocation3] sm:$0xff] %vm18_vm2, %v706_v27 }
 0x157   :  { %v688_v55 = vpop.xlane.xlu0 %687 }
 0x158   :  { %v707_v11 = vadd.f32 %v688_v55, %v653_v34 }
 0x159   :  { %v797_v35 = vpop.xlane.xlu2 %796 }
 0x15a   :  { %711 = vst.msk [vmem:[#allocation3 + $0x8] sm:$0xff] %vm18_vm2, %v707_v11  ;;  %v816_v58 = vadd.f32 %v797_v35, %v714_v30 }
 0x15c   :  { %819 = vst.msk [vmem:[#allocation4 + $0x8] sm:$0xff] %vm18_vm2, %v816_v58 }
 0x15f   :  { %v705_v19 = vpop.xlane.xlu1 %704 }
 0x160   :  { %v708_v14 = vadd.f32 %v705_v19, %v654_v1 }
 0x161   :  { %v814_v15 = vpop.xlane.xlu2 %813  ;;  %v825_v17 = vld [vmem:[#allocation3 + $0x8] sm:$0xff] }
 0x162   :  { %712 = vst.msk [vmem:[#allocation3 + $0x10] sm:$0xff] %vm18_vm2, %v708_v14  ;;  %v817_v20 = vadd.f32 %v814_v15, %v715_v7  ;;  %v828_v22 = vmul.f32 0.00048828125, %v825_v17  ;;  %v824_v7 = vld [vmem:[#allocation3] sm:$0xff] }
 0x163   :  { %v831_v23 = vld [vmem:[#allocation4 + $0x8] sm:$0xff] }
 0x164   :  { %820 = vst.msk [vmem:[#allocation4 + $0x10] sm:$0xff] %vm18_vm2, %v817_v20  ;;  %v834_v11 = vmul.f32 0.00048828125, %v831_v23  ;;  %v837_v30 = vmul.f32 %v828_v22, %v828_v22  ;;  %v827_v20 = vmul.f32 0.00048828125, %v824_v7 }
 0x166   :  { %v840_v29 = vsub.f32 %v834_v11, %v837_v30  ;;  %v836_v30 = vmul.f32 %v827_v20, %v827_v20 }
 0x167   :  { %v780_v27 = vpop.xlane.xlu1 %779 }
 0x168   :  { %v815_v34 = vadd.f32 %v780_v27, %v713_v28  ;;  %v843_v55 = vmax.f32 %v840_v29, 0.0 }
 0x169   :  { %v826_v35 = vld [vmem:[#allocation3 + $0x10] sm:$0xff] }
 0x16a   :  { %818 = vst.msk [vmem:[#allocation4] sm:$0xff] %vm18_vm2, %v815_v34  ;;  %v849_v58 = vadd.f32 1e-05, %v843_v55  ;;  %v829_v1 = vmul.f32 0.00048828125, %v826_v35 }
 0x16b   :  { %v832_v19 = vld [vmem:[#allocation4 + $0x10] sm:$0xff] }
 0x16c   :  { %1252 = vrsqrt.f32 %v849_v58  ;;  %v835_v14 = vmul.f32 0.00048828125, %v832_v19  ;;  %v838_v15 = vmul.f32 %v829_v1, %v829_v1  ;;  %v846_v19 = vld [vmem:[%s1936_s1 + $0x8] sm:$0xff]  ;;  %vm867_vm4 = vweird.f32 %v849_v58 }
 0x16e   :  { %v841_v17 = vsub.f32 %v835_v14, %v838_v15 }
 0x170   :  { %v844_v23 = vmax.f32 %v841_v17, 0.0 }
 0x171   :  { %v830_v8 = vld [vmem:[#allocation4] sm:$0xff] }
 0x172   :  { %v1253_v26 = vpop.eup %1252  ;;  %v850_v62 = vadd.f32 1e-05, %v844_v23  ;;  %v833_v11 = vmul.f32 0.00048828125, %v830_v8 }
 0x173   :  { %v862_v28 = vmul.f32 %v1253_v26, %v849_v58  ;;  %vm868_vm3 = vweird.f32 %v1253_v26 }
 0x174   :  { %1254 = vrsqrt.f32 %v850_v62  ;;  %v839_v29 = vsub.f32 %v833_v11, %v836_v30  ;;  %vm869_vm5 = vmor %vm867_vm4, %vm868_vm3  ;;  %vm877_vm7 = vweird.f32 %v850_v62 }
 0x175   :  { %v863_v27 = vmul.f32 %v1253_v26, %v862_v28 }
 0x176   :  { %v842_v34 = vmax.f32 %v839_v29, 0.0 }
 0x177   :  { %v864_v55 = vmul.f32 0.5, %v863_v27  ;;  %v847_v27 = vld [vmem:[%s1936_s1 + $0x10] sm:$0xff] }
 0x178   :  { %v848_v35 = vadd.f32 1e-05, %v842_v34 }
 0x179   :  { %v865_v21 = vsub.f32 1.5, %v864_v55 }
 0x17a   :  { %v1255_v4 = vpop.eup %1254  ;;  %1256 = vrsqrt.f32 %v848_v35  ;;  %vm857_vm10 = vweird.f32 %v848_v35 }
 0x17b   :  { %v866_v7 = vmul.f32 %v1253_v26, %v865_v21  ;;  %v872_v14 = vmul.f32 %v1255_v4, %v850_v62  ;;  %vm878_vm6 = vweird.f32 %v1255_v4 }
 0x17c   :  { %vm879_vm8 = vmor %vm877_vm7, %vm878_vm6 }
 0x17d   :  { %v870_v8 = vsel %vm869_vm5, %v1253_v26, %v866_v7  ;;  %v873_v15 = vmul.f32 %v1255_v4, %v872_v14 }
 0x17e   :  { %v882_v17 = vmul.f32 %v870_v8, %v846_v19 }
 0x17f   :  { %v874_v23 = vmul.f32 0.5, %v873_v15 }
 0x180   :  { %v1257_v11 = vpop.eup %1256  ;;  %v885_v30 = vmul.f32 %v882_v17, %v828_v22  ;;  %v845_v22 = vld [vmem:[%s1936_s1] sm:$0xff] }
 0x181   :  { %v875_v28 = vsub.f32 1.5, %v874_v23  ;;  %v852_v29 = vmul.f32 %v1257_v11, %v848_v35  ;;  %vm858_vm9 = vweird.f32 %v1257_v11 }
 0x182   :  { %892 = vrot.lane.b32.xlu1 %v885_v30, %s1260_s28  ;;  %vm859_vm11 = vmor %vm857_vm10, %vm858_vm9 }
 0x183   :  { %v876_v34 = vmul.f32 %v1255_v4, %v875_v28  ;;  %v853_v21 = vmul.f32 %v1257_v11, %v852_v29 }
 0x185   :  { %v880_v58 = vsel %vm879_vm8, %v1255_v4, %v876_v34  ;;  %v854_v26 = vmul.f32 0.5, %v853_v21  ;;  %v1261_v4 = vmov 1  }
 0x186   :  { %v883_v55 = vmul.f32 %v880_v58, %v847_v27 }
 0x187   :  { %v855_v7 = vsub.f32 1.5, %v854_v26 }
 0x188   :  { %v886_v14 = vmul.f32 %v883_v55, %v829_v1 }
 0x189   :  { %v856_v8 = vmul.f32 %v1257_v11, %v855_v7 }
 0x18a   :  { %962 = vperm.xlu1 %1248, %v883_v55   ;;  %894 = vrot.lane.b32.xlu2 %v886_v14, %s1260_s28 }
 0x18b   :  { %v860_v15 = vsel %vm859_vm11, %v1257_v11, %v856_v8 }
 0x18c   :  { %v881_v23 = vmul.f32 %v860_v15, %v845_v22  ;;  %v1958_v15 = vld [vmem:[#allocation5_spill] sm:$0xff] }
 0x18e   :  { %v884_v62 = vmul.f32 %v881_v23, %v827_v20 }
 0x190   :  { %890 = vrot.lane.b32.xlu0 %v884_v62, %s1260_s28  ;;  %v1960_v62 = vld [vmem:[#allocation7_spill] sm:$0xff] }
 0x192   :  { %957 = vperm.xlu2 %1247, %v882_v17   ;;  %1250 = vset.pattern.permute.xlu1 %v1261_v4 }
 0x198   :  { %952 = vperm.xlu0 %1246, %v881_v23   ;;  %v1959_v23 = vld [vmem:[#allocation6_spill] sm:$0xff] }
 0x19a   :  { %1249 = vset.pattern.permute.xlu2 %v1261_v4 }
 0x1a0   :  { %1251 = vset.pattern.permute.xlu0 %v1261_v4 }
 0x1e4   :  { %v895_v1 = vpop.permute.xlu2 %894 }
 0x1e5   :  { %v901_v30 = vsub.f32 %v847_v27, %v895_v1 }
 0x1e7   :  { %1025 = vperm.xlu0 %1251, %v901_v30  }
 0x1ec   :  { %v958_v21 = vpop.permute.xlu2 %957 }
 0x1ed   :  { %v1767_v11 = vmul.f32 %v958_v21, %v1511_v38  ;;  %v1770_v20 = vmul.f32 %v958_v21, %v1515_v40  ;;  %v1773_v17 = vmul.f32 %v958_v21, %v1517_v41  ;;  %v1776_v58 = vmul.f32 %v958_v21, %v1521_v43 }
 0x1ee   :  { %v1782_v26 = vmul.f32 %v958_v21, %v1539_v52  ;;  %v1785_v55 = vmul.f32 %v958_v21, %v1541_v53  ;;  %v1788_v38 = vmul.f32 %v958_v21, %v1547_v56  ;;  %v1791_v40 = vmul.f32 %v958_v21, %v1588_v18 }
 0x1ef   :  { %v1794_v41 = vmul.f32 %v958_v21, %v1594_v25  ;;  %v1797_v43 = vmul.f32 %v958_v21, %v1614_v61  ;;  %v1803_v7 = vmul.f32 %v958_v21, %v1685_v60  ;;  %v1806_v53 = vmul.f32 %v958_v21, %v1696_v13 }
 0x1f0   :  { %v1809_v56 = vmul.f32 %v958_v21, %v1710_v31  ;;  %v1812_v18 = vmul.f32 %v958_v21, %v1721_v9 }
 0x1f1   :  { %1952 = vst [vmem:[#allocation12_spill] sm:$0xff] %v1797_v43 }
 0x1f2   :  { %1954 = vst [vmem:[#allocation14_spill] sm:$0xff] %v1803_v7 }
 0x1f3   :  { %1955 = vst [vmem:[#allocation15_spill] sm:$0xff] %v1806_v53 }
 0x1f4   :  { %v893_v28 = vpop.permute.xlu1 %892  ;;  %1956 = vst [vmem:[#allocation16_spill] sm:$0xff] %v1809_v56 }
 0x1f5   :  { %v900_v29 = vsub.f32 %v846_v19, %v893_v28  ;;  %v1779_v19 = vmul.f32 %v958_v21, %v1535_v50  ;;  %v1800_v50 = vmul.f32 %v958_v21, %v1623_v10  ;;  %1957 = vst [vmem:[#allocation17_spill] sm:$0xff] %v1812_v18 }
 0x1f7   :  { %1020 = vperm.xlu1 %1250, %v900_v29   ;;  %1953 = vst [vmem:[#allocation13_spill] sm:$0xff] %v1800_v50 }
 0x1fc   :  { %v963_v27 = vpop.permute.xlu1 %962 }
 0x1fd   :  { %v997_v25 = vmul.f32 %v963_v27, %v1519_v42  ;;  %v998_v61 = vmul.f32 %v963_v27, %v1523_v44  ;;  %v999_v10 = vmul.f32 %v963_v27, %v1525_v45  ;;  %v1000_v14 = vmul.f32 %v963_v27, %v1529_v47 }
 0x1fe   :  { %v1001_v60 = vmul.f32 %v963_v27, %v1543_v54  ;;  %v1003_v13 = vmul.f32 %v963_v27, %v1552_v59  ;;  %v1004_v31 = vmul.f32 %v963_v27, %v1566_v3  ;;  %v1005_v8 = vmul.f32 %v963_v27, %v1618_v6 }
 0x1ff   :  { %v1006_v9 = vmul.f32 %v963_v27, %v1629_v16  ;;  %v1007_v42 = vmul.f32 %v963_v27, %v1642_v32  ;;  %v1008_v44 = vmul.f32 %v963_v27, %v1656_v5  ;;  %v1009_v45 = vmul.f32 %v963_v27, %v1716_v0 }
 0x200   :  { %v1010_v47 = vmul.f32 %v963_v27, %v1725_v12  ;;  %v1011_v54 = vmul.f32 %v963_v27, %v1735_v33 }
 0x202   :  { %v891_v35 = vpop.permute.xlu0 %890 }
 0x203   :  { %v899_v34 = vsub.f32 %v845_v22, %v891_v35  ;;  %v1002_v22 = vmul.f32 %v963_v27, %v1549_v57  ;;  %v1012_v57 = vmul.f32 %v963_v27, %v1742_v2 }
 0x205   :  { %1015 = vperm.xlu2 %1249, %v899_v34  }
 0x20a   :  { %v953_v52 = vpop.permute.xlu0 %952 }
 0x20b   :  { %v965_v59 = vmul.f32 %v953_v52, %v1505_v24  ;;  %v966_v3 = vmul.f32 %v953_v52, %v1507_v36  ;;  %v967_v6 = vmul.f32 %v953_v52, %v1509_v37  ;;  %v968_v16 = vmul.f32 %v953_v52, %v1513_v39  ;;  %v1961_v37 = vld [vmem:[#allocation8_spill] sm:$0xff]  ;;  %v1962_v39 = vld [vmem:[#allocation9_spill] sm:$0xff] }
 0x20c   :  { %v969_v32 = vmul.f32 %v953_v52, %v1527_v46  ;;  %v970_v5 = vmul.f32 %v953_v52, %v1531_v48  ;;  %v971_v0 = vmul.f32 %v953_v52, %v1533_v49  ;;  %v972_v12 = vmul.f32 %v953_v52, %v1537_v51  ;;  %v1963_v46 = vld [vmem:[#allocation10_spill] sm:$0xff]  ;;  %v1964_v48 = vld [vmem:[#allocation11_spill] sm:$0xff] }
 0x20d   :  { %v973_v33 = vmul.f32 %v953_v52, %v1559_v63  ;;  %v974_v2 = vmul.f32 %v953_v52, %v1958_v15  ;;  %v975_v24 = vmul.f32 %v953_v52, %v1959_v23  ;;  %v976_v36 = vmul.f32 %v953_v52, %v1960_v62 }
 0x20e   :  { %v977_v1 = vmul.f32 %v953_v52, %v1961_v37  ;;  %v978_v30 = vmul.f32 %v953_v52, %v1962_v39  ;;  %v979_v28 = vmul.f32 %v953_v52, %v1963_v46  ;;  %v980_v29 = vmul.f32 %v953_v52, %v1964_v48 }
 0x259   :  { %v1026_v4 = vpop.permute.xlu0 %1025 }
 0x25a   :  { %v1060_v49 = vadd.f32 %v1026_v4, %v997_v25  ;;  %v1061_v35 = vadd.f32 %v1026_v4, %v998_v61  ;;  %v1062_v51 = vadd.f32 %v1026_v4, %v999_v10  ;;  %v1063_v34 = vadd.f32 %v1026_v4, %v1000_v14 }
 0x25b   :  { %v1064_v63 = vadd.f32 %v1026_v4, %v1001_v60  ;;  %v1065_v21 = vadd.f32 %v1026_v4, %v1002_v22  ;;  %v1066_v27 = vadd.f32 %v1026_v4, %v1003_v13  ;;  %v1067_v15 = vadd.f32 %v1026_v4, %v1004_v31 }
 0x25c   :  { %v1068_v23 = vadd.f32 %v1026_v4, %v1005_v8  ;;  %v1069_v18 = vadd.f32 %v1026_v4, %v1006_v9  ;;  %v1070_v62 = vadd.f32 %v1026_v4, %v1007_v42  ;;  %v1071_v56 = vadd.f32 %v1026_v4, %v1008_v44 }
 0x25d   :  { %v1072_v53 = vadd.f32 %v1026_v4, %v1009_v45  ;;  %v1073_v37 = vadd.f32 %v1026_v4, %v1010_v47  ;;  %v1074_v7 = vadd.f32 %v1026_v4, %v1011_v54  ;;  %v1075_v39 = vadd.f32 %v1026_v4, %v1012_v57 }
 0x25e   :  { %v1108_v50 = vmax.f32 %v1060_v49, 0.0  ;;  %v1109_v46 = vmax.f32 %v1061_v35, 0.0  ;;  %v1110_v43 = vmax.f32 %v1062_v51, 0.0  ;;  %v1111_v52 = vmax.f32 %v1063_v34, 0.0 }
 0x25f   :  { %v1112_v25 = vmax.f32 %v1064_v63, 0.0  ;;  %v1113_v61 = vmax.f32 %v1065_v21, 0.0  ;;  %v1114_v10 = vmax.f32 %v1066_v27, 0.0  ;;  %v1115_v14 = vmax.f32 %v1067_v15, 0.0  ;;  %v1016_v45 = vpop.permute.xlu2 %1015 }
 0x260   :  { %v1116_v60 = vmax.f32 %v1068_v23, 0.0  ;;  %v1117_v22 = vmax.f32 %v1069_v18, 0.0  ;;  %v1118_v13 = vmax.f32 %v1070_v62, 0.0  ;;  %v1119_v31 = vmax.f32 %v1071_v56, 0.0 }
 0x261   :  { %v1120_v8 = vmax.f32 %v1072_v53, 0.0  ;;  %v1121_v9 = vmax.f32 %v1073_v37, 0.0  ;;  %v1122_v42 = vmax.f32 %v1074_v7, 0.0  ;;  %v1123_v44 = vmax.f32 %v1075_v39, 0.0 }
 0x262   :  { %v1140_v47 = vpack.c.bf16 %v1109_v46, %v1108_v50  ;;  %v1141_v54 = vpack.c.bf16 %v1111_v52, %v1110_v43  ;;  %v1142_v57 = vpack.c.bf16 %v1113_v61, %v1112_v25  ;;  %v1143_v4 = vpack.c.bf16 %v1115_v14, %v1114_v10 }
 0x263   :  { %v1144_v48 = vpack.c.bf16 %v1117_v22, %v1116_v60  ;;  %v1145_v49 = vpack.c.bf16 %v1119_v31, %v1118_v13  ;;  %v1146_v35 = vpack.c.bf16 %v1121_v9, %v1120_v8  ;;  %v1147_v51 = vpack.c.bf16 %v1123_v44, %v1122_v42 }
 0x264   :  { %1164 = vst [vmem:[%s1937_s3 + $0x80] sm:$0xff] %v1140_v47  ;;  %v1028_v18 = vadd.f32 %v1016_v45, %v965_v59  ;;  %v1029_v34 = vadd.f32 %v1016_v45, %v966_v3  ;;  %v1030_v56 = vadd.f32 %v1016_v45, %v967_v6  ;;  %v1031_v53 = vadd.f32 %v1016_v45, %v968_v16 }
 0x265   :  { %1165 = vst [vmem:[%s1937_s3 + $0x88] sm:$0xff] %v1141_v54  ;;  %v1032_v50 = vadd.f32 %v1016_v45, %v969_v32  ;;  %v1033_v43 = vadd.f32 %v1016_v45, %v970_v5  ;;  %v1034_v7 = vadd.f32 %v1016_v45, %v971_v0  ;;  %v1035_v63 = vadd.f32 %v1016_v45, %v972_v12 }
 0x266   :  { %1166 = vst [vmem:[%s1937_s3 + $0x90] sm:$0xff] %v1142_v57  ;;  %v1036_v21 = vadd.f32 %v1016_v45, %v973_v33  ;;  %v1037_v27 = vadd.f32 %v1016_v45, %v974_v2  ;;  %v1038_v15 = vadd.f32 %v1016_v45, %v975_v24  ;;  %v1039_v23 = vadd.f32 %v1016_v45, %v976_v36 }
 0x267   :  { %1167 = vst [vmem:[%s1937_s3 + $0x98] sm:$0xff] %v1143_v4  ;;  %v1040_v59 = vadd.f32 %v1016_v45, %v977_v1  ;;  %v1041_v3 = vadd.f32 %v1016_v45, %v978_v30  ;;  %v1042_v6 = vadd.f32 %v1016_v45, %v979_v28  ;;  %v1043_v16 = vadd.f32 %v1016_v45, %v980_v29  ;;  %v1966_v4 = vld [vmem:[#allocation13_spill] sm:$0xff] }
 0x268   :  { %1168 = vst [vmem:[%s1937_s3 + $0xa0] sm:$0xff] %v1144_v48  ;;  %v1076_v32 = vmax.f32 %v1028_v18, 0.0  ;;  %v1077_v5 = vmax.f32 %v1029_v34, 0.0  ;;  %v1078_v0 = vmax.f32 %v1030_v56, 0.0  ;;  %v1079_v12 = vmax.f32 %v1031_v53, 0.0 }
 0x269   :  { %1169 = vst [vmem:[%s1937_s3 + $0xa8] sm:$0xff] %v1145_v49  ;;  %v1080_v33 = vmax.f32 %v1032_v50, 0.0  ;;  %v1081_v2 = vmax.f32 %v1033_v43, 0.0  ;;  %v1082_v24 = vmax.f32 %v1034_v7, 0.0  ;;  %v1083_v36 = vmax.f32 %v1035_v63, 0.0  ;;  %v1021_v52 = vpop.permute.xlu1 %1020  ;;  %v1969_v49 = vld [vmem:[#allocation16_spill] sm:$0xff] }
 0x26a   :  { %1170 = vst [vmem:[%s1937_s3 + $0xb0] sm:$0xff] %v1146_v35  ;;  %v1084_v1 = vmax.f32 %v1036_v21, 0.0  ;;  %v1085_v30 = vmax.f32 %v1037_v27, 0.0  ;;  %v1086_v28 = vmax.f32 %v1038_v15, 0.0  ;;  %v1087_v29 = vmax.f32 %v1039_v23, 0.0 }
 0x26b   :  { %1171 = vst [vmem:[%s1937_s3 + $0xb8] sm:$0xff] %v1147_v51  ;;  %v1088_v62 = vmax.f32 %v1040_v59, 0.0  ;;  %v1089_v37 = vmax.f32 %v1041_v3, 0.0  ;;  %v1090_v39 = vmax.f32 %v1042_v6, 0.0  ;;  %v1091_v46 = vmax.f32 %v1043_v16, 0.0  ;;  %v1970_v51 = vld [vmem:[#allocation17_spill] sm:$0xff] }
 0x26c   :  { %v1124_v25 = vpack.c.bf16 %v1077_v5, %v1076_v32  ;;  %v1125_v61 = vpack.c.bf16 %v1079_v12, %v1078_v0  ;;  %v1126_v10 = vpack.c.bf16 %v1081_v2, %v1080_v33  ;;  %v1127_v14 = vpack.c.bf16 %v1083_v36, %v1082_v24 }
 0x26d   :  { %v1128_v60 = vpack.c.bf16 %v1085_v30, %v1084_v1  ;;  %v1129_v22 = vpack.c.bf16 %v1087_v29, %v1086_v28  ;;  %v1130_v13 = vpack.c.bf16 %v1089_v37, %v1088_v62  ;;  %v1131_v31 = vpack.c.bf16 %v1091_v46, %v1090_v39 }
 0x26e   :  { %1148 = vst [vmem:[%s1937_s3] sm:$0xff] %v1124_v25  ;;  %v1044_v8 = vadd.f32 %v1021_v52, %v1767_v11  ;;  %v1045_v9 = vadd.f32 %v1021_v52, %v1770_v20  ;;  %v1046_v42 = vadd.f32 %v1021_v52, %v1773_v17  ;;  %v1047_v44 = vadd.f32 %v1021_v52, %v1776_v58  ;;  %v1965_v17 = vld [vmem:[#allocation12_spill] sm:$0xff] }
 0x26f   :  { %1149 = vst [vmem:[%s1937_s3 + $0x8] sm:$0xff] %v1125_v61  ;;  %v1048_v45 = vadd.f32 %v1021_v52, %v1779_v19  ;;  %v1049_v47 = vadd.f32 %v1021_v52, %v1782_v26  ;;  %v1050_v54 = vadd.f32 %v1021_v52, %v1785_v55  ;;  %v1051_v57 = vadd.f32 %v1021_v52, %v1788_v38  ;;  %v1967_v19 = vld [vmem:[#allocation14_spill] sm:$0xff]  ;;  %v1968_v55 = vld [vmem:[#allocation15_spill] sm:$0xff] }
 0x270   :  { %1150 = vst [vmem:[%s1937_s3 + $0x10] sm:$0xff] %v1126_v10  ;;  %v1052_v11 = vadd.f32 %v1021_v52, %v1791_v40  ;;  %v1053_v20 = vadd.f32 %v1021_v52, %v1794_v41  ;;  %v1054_v58 = vadd.f32 %v1021_v52, %v1965_v17  ;;  %v1055_v48 = vadd.f32 %v1021_v52, %v1966_v4 }
 0x271   :  { %1151 = vst [vmem:[%s1937_s3 + $0x18] sm:$0xff] %v1127_v14  ;;  %v1056_v26 = vadd.f32 %v1021_v52, %v1967_v19  ;;  %v1057_v38 = vadd.f32 %v1021_v52, %v1968_v55  ;;  %v1058_v35 = vadd.f32 %v1021_v52, %v1969_v49  ;;  %v1059_v18 = vadd.f32 %v1021_v52, %v1970_v51 }
 0x272   :  { %1152 = vst [vmem:[%s1937_s3 + $0x20] sm:$0xff] %v1128_v60  ;;  %v1092_v40 = vmax.f32 %v1044_v8, 0.0  ;;  %v1093_v41 = vmax.f32 %v1045_v9, 0.0  ;;  %v1094_v34 = vmax.f32 %v1046_v42, 0.0  ;;  %v1095_v56 = vmax.f32 %v1047_v44, 0.0 }
 0x273   :  { %1153 = vst [vmem:[%s1937_s3 + $0x28] sm:$0xff] %v1129_v22  ;;  %v1096_v53 = vmax.f32 %v1048_v45, 0.0  ;;  %v1097_v50 = vmax.f32 %v1049_v47, 0.0  ;;  %v1098_v43 = vmax.f32 %v1050_v54, 0.0  ;;  %v1099_v7 = vmax.f32 %v1051_v57, 0.0 }
 0x274   :  { %1154 = vst [vmem:[%s1937_s3 + $0x30] sm:$0xff] %v1130_v13  ;;  %v1100_v63 = vmax.f32 %v1052_v11, 0.0  ;;  %v1101_v21 = vmax.f32 %v1053_v20, 0.0  ;;  %v1102_v27 = vmax.f32 %v1054_v58, 0.0  ;;  %v1103_v15 = vmax.f32 %v1055_v48, 0.0 }
 0x275   :  { %1155 = vst [vmem:[%s1937_s3 + $0x38] sm:$0xff] %v1131_v31  ;;  %v1104_v23 = vmax.f32 %v1056_v26, 0.0  ;;  %v1105_v59 = vmax.f32 %v1057_v38, 0.0  ;;  %v1132_v3 = vpack.c.bf16 %v1093_v41, %v1092_v40  ;;  %v1133_v6 = vpack.c.bf16 %v1095_v56, %v1094_v34 }
 0x276   :  { %v1134_v16 = vpack.c.bf16 %v1097_v50, %v1096_v53  ;;  %v1106_v32 = vmax.f32 %v1058_v35, 0.0  ;;  %v1107_v5 = vmax.f32 %v1059_v18, 0.0  ;;  %v1135_v0 = vpack.c.bf16 %v1099_v7, %v1098_v43 }
 0x277   :  { %v1136_v12 = vpack.c.bf16 %v1101_v21, %v1100_v63  ;;  %1156 = vst [vmem:[%s1937_s3 + $0x40] sm:$0xff] %v1132_v3  ;;  %v1137_v33 = vpack.c.bf16 %v1103_v15, %v1102_v27  ;;  %v1138_v2 = vpack.c.bf16 %v1105_v59, %v1104_v23 }
 0x278   :  { %1157 = vst [vmem:[%s1937_s3 + $0x48] sm:$0xff] %v1133_v6  ;;  %v1139_v24 = vpack.c.bf16 %v1107_v5, %v1106_v32 }
 0x279   :  { %1158 = vst [vmem:[%s1937_s3 + $0x50] sm:$0xff] %v1134_v16 }
 0x27a   :  { %1159 = vst [vmem:[%s1937_s3 + $0x58] sm:$0xff] %v1135_v0 }
 0x27b   :  { %1160 = vst [vmem:[%s1937_s3 + $0x60] sm:$0xff] %v1136_v12 }
 0x27c   :  { %1161 = vst [vmem:[%s1937_s3 + $0x68] sm:$0xff] %v1137_v33 }
 0x27d   :  { %1162 = vst [vmem:[%s1937_s3 + $0x70] sm:$0xff] %v1138_v2 }
 0x27e   :  { %1163 = vst [vmem:[%s1937_s3 + $0x78] sm:$0xff] %v1139_v24 }

// kernel: conv_input_model.5
= control target key start
LH: loop header
LB: loop body
LE: loop exit
PB: predicated region body
PF: predicated region fallthrough
CT: control target
= control target key end

     0   :  { %vm193_vm0 = vcmask 719872   ;;  %vm18_vm1 = vcmask 7168   ;;  %s696_s24 = smov 1   ;;  %s1139_s2 = inlined_call_operand.vmem [shape: bf16[216,512], index: 2, kind: input, shape index: {}]   ;;  %s1140_s0 = inlined_call_operand.vmem [shape: f32[24,216], index: 0, kind: input, shape index: {}]   ;;  %s1141_s1 = inlined_call_operand.vmem [shape: f32[24,2], index: 1, kind: input, shape index: {}]   ;;  %s1142_s3 = inlined_call_operand.vmem [shape: bf16[24,512], index: 3, kind: output, shape index: {}]  }
   0x1   :  { %v61_v0 = vld [vmem:[%s1139_s2 + $0xf0] sm:$0xff]  ;;  %v83_v1 = vld [vmem:[%s1139_s2 + $0x1a0] sm:$0xff]  ;;  %v787_v62 = vld [vmem:[%s1139_s2 + $0xf8] sm:$0xff] }
   0x2   :  { %v59_v2 = vld [vmem:[%s1139_s2 + $0xe0] sm:$0xff]  ;;  %v145_v3 = vunpack.c.l.bf16 %v61_v0  ;;  %v189_v4 = vunpack.c.l.bf16 %v83_v1  ;;  %v146_v5 = vunpack.c.h.bf16 %v61_v0  ;;  %v190_v6 = vunpack.c.h.bf16 %v83_v1  ;;  %v81_v7 = vld [vmem:[%s1139_s2 + $0x190] sm:$0xff] }
   0x3   :  { %v57_v8 = vld [vmem:[%s1139_s2 + $0xd0] sm:$0xff]  ;;  %v79_v9 = vld [vmem:[%s1139_s2 + $0x180] sm:$0xff]  ;;  %v141_v10 = vunpack.c.l.bf16 %v59_v2  ;;  %v185_v11 = vunpack.c.l.bf16 %v81_v7  ;;  %v142_v12 = vunpack.c.h.bf16 %v59_v2  ;;  %v186_v13 = vunpack.c.h.bf16 %v81_v7 }
   0x4   :  { %v55_v14 = vld [vmem:[%s1139_s2 + $0xc0] sm:$0xff]  ;;  %v77_v15 = vld [vmem:[%s1139_s2 + $0x170] sm:$0xff]  ;;  %203 = vmatpush.msra.mxu0 %v145_v3  ;;  %234 = vmatpush.msra.mxu1 %v189_v4  ;;  %v137_v16 = vunpack.c.l.bf16 %v57_v8  ;;  %v181_v17 = vunpack.c.l.bf16 %v79_v9  ;;  %v138_v18 = vunpack.c.h.bf16 %v57_v8  ;;  %v182_v19 = vunpack.c.h.bf16 %v79_v9  ;;  %v795_v4 = vld [vmem:[%s1139_s2 + $0xe8] sm:$0xff] }
   0x5   :  { %255 = vmatpush.msra.mxu2 %v146_v5  ;;  %286 = vmatpush.msra.mxu3 %v190_v6  ;;  %v53_v20 = vld [vmem:[%s1139_s2 + $0xb0] sm:$0xff]  ;;  %v75_v21 = vld [vmem:[%s1139_s2 + $0x160] sm:$0xff]  ;;  %v133_v22 = vunpack.c.l.bf16 %v55_v14  ;;  %v177_v23 = vunpack.c.l.bf16 %v77_v15  ;;  %v134_v24 = vunpack.c.h.bf16 %v55_v14  ;;  %v178_v25 = vunpack.c.h.bf16 %v77_v15  ;;  %v804_v8 = vld [vmem:[%s1139_s2 + $0x1a8] sm:$0xff] }
   0x6   :  { %204 = vmatpush.msra.mxu0 %v141_v10  ;;  %235 = vmatpush.msra.mxu1 %v185_v11  ;;  %v51_v26 = vld [vmem:[%s1139_s2 + $0xa0] sm:$0xff]  ;;  %v73_v27 = vld [vmem:[%s1139_s2 + $0x150] sm:$0xff]  ;;  %v129_v28 = vunpack.c.l.bf16 %v53_v20  ;;  %v173_v29 = vunpack.c.l.bf16 %v75_v21  ;;  %v130_v30 = vunpack.c.h.bf16 %v53_v20  ;;  %v174_v31 = vunpack.c.h.bf16 %v75_v21  ;;  %v809_v10 = vld [vmem:[%s1139_s2 + $0xd8] sm:$0xff] }
   0x7   :  { %256 = vmatpush.msra.mxu2 %v142_v12  ;;  %287 = vmatpush.msra.mxu3 %v186_v13  ;;  %v49_v32 = vld [vmem:[%s1139_s2 + $0x90] sm:$0xff]  ;;  %v71_v33 = vld [vmem:[%s1139_s2 + $0x140] sm:$0xff]  ;;  %v125_v34 = vunpack.c.l.bf16 %v51_v26  ;;  %v169_v35 = vunpack.c.l.bf16 %v73_v27  ;;  %v126_v36 = vunpack.c.h.bf16 %v51_v26  ;;  %v170_v37 = vunpack.c.h.bf16 %v73_v27  ;;  %v817_v12 = vld [vmem:[%s1140_s0 + $0x8] sm:$0xff] }
   0x8   :  { %205 = vmatpush.msra.mxu0 %v137_v16  ;;  %236 = vmatpush.msra.mxu1 %v181_v17  ;;  %v47_v38 = vld [vmem:[%s1139_s2 + $0x80] sm:$0xff]  ;;  %v69_v39 = vld [vmem:[%s1139_s2 + $0x130] sm:$0xff]  ;;  %v121_v40 = vunpack.c.l.bf16 %v49_v32  ;;  %v165_v41 = vunpack.c.l.bf16 %v71_v33  ;;  %v122_v42 = vunpack.c.h.bf16 %v49_v32  ;;  %v166_v43 = vunpack.c.h.bf16 %v71_v33  ;;  %v823_v15 = vld [vmem:[%s1139_s2 + $0x198] sm:$0xff] }
   0x9   :  { %257 = vmatpush.msra.mxu2 %v138_v18  ;;  %288 = vmatpush.msra.mxu3 %v182_v19  ;;  %v45_v44 = vld [vmem:[%s1139_s2 + $0x70] sm:$0xff]  ;;  %v67_v45 = vld [vmem:[%s1139_s2 + $0x120] sm:$0xff]  ;;  %v117_v46 = vunpack.c.l.bf16 %v47_v38  ;;  %v161_v47 = vunpack.c.l.bf16 %v69_v39  ;;  %v118_v48 = vunpack.c.h.bf16 %v47_v38  ;;  %v162_v49 = vunpack.c.h.bf16 %v69_v39  ;;  %v829_v18 = vld [vmem:[%s1139_s2 + $0xc8] sm:$0xff] }
   0xa   :  { %206 = vmatpush.msra.mxu0 %v133_v22  ;;  %237 = vmatpush.msra.mxu1 %v177_v23  ;;  %v43_v50 = vld [vmem:[%s1139_s2 + $0x60] sm:$0xff]  ;;  %v65_v51 = vld [vmem:[%s1139_s2 + $0x110] sm:$0xff]  ;;  %v113_v52 = vunpack.c.l.bf16 %v45_v44  ;;  %v157_v53 = vunpack.c.l.bf16 %v67_v45  ;;  %v114_v54 = vunpack.c.h.bf16 %v45_v44  ;;  %v158_v55 = vunpack.c.h.bf16 %v67_v45  ;;  %v857_v32 = vld [vmem:[%s1139_s2 + $0xa8] sm:$0xff] }
   0xb   :  { %258 = vmatpush.msra.mxu2 %v134_v24  ;;  %289 = vmatpush.msra.mxu3 %v178_v25  ;;  %v41_v56 = vld [vmem:[%s1139_s2 + $0x50] sm:$0xff]  ;;  %v63_v57 = vld [vmem:[%s1139_s2 + $0x100] sm:$0xff]  ;;  %v109_v58 = vunpack.c.l.bf16 %v43_v50  ;;  %v153_v59 = vunpack.c.l.bf16 %v65_v51  ;;  %v110_v60 = vunpack.c.h.bf16 %v43_v50  ;;  %v154_v61 = vunpack.c.h.bf16 %v65_v51  ;;  %v841_v24 = vld [vmem:[%s1139_s2 + $0xb8] sm:$0xff] }
   0xc   :  { %207 = vmatpush.msra.mxu0 %v129_v28  ;;  %238 = vmatpush.msra.mxu1 %v173_v29  ;;  %v39_v63 = vld [vmem:[%s1139_s2 + $0x40] sm:$0xff]  ;;  %v105_v0 = vunpack.c.l.bf16 %v41_v56  ;;  %v149_v1 = vunpack.c.l.bf16 %v63_v57  ;;  %v106_v2 = vunpack.c.h.bf16 %v41_v56  ;;  %v150_v3 = vunpack.c.h.bf16 %v63_v57  ;;  %v37_v5 = vld [vmem:[%s1139_s2 + $0x30] sm:$0xff]  ;;  %v846_v25 = vld [vmem:[%s1139_s2 + $0x188] sm:$0xff] }
   0xd   :  { %259 = vmatpush.msra.mxu2 %v130_v30  ;;  %290 = vmatpush.msra.mxu3 %v174_v31  ;;  %v147_v6 = vunpack.c.l.bf16 %v787_v62  ;;  %v101_v7 = vunpack.c.l.bf16 %v39_v63  ;;  %v102_v9 = vunpack.c.h.bf16 %v39_v63  ;;  %v35_v11 = vld [vmem:[%s1139_s2 + $0x20] sm:$0xff]  ;;  %v143_v13 = vunpack.c.l.bf16 %v795_v4  ;;  %v33_v19 = vld [vmem:[%s1139_s2 + $0x10] sm:$0xff]  ;;  %v862_v33 = vld [vmem:[%s1139_s2 + $0x178] sm:$0xff] }
   0xe   :  { %208 = vmatpush.msra.mxu0 %v125_v34  ;;  %239 = vmatpush.msra.mxu1 %v169_v35  ;;  %v97_v14 = vunpack.c.l.bf16 %v37_v5  ;;  %v98_v16 = vunpack.c.h.bf16 %v37_v5  ;;  %v191_v17 = vunpack.c.l.bf16 %v804_v8  ;;  %v139_v20 = vunpack.c.l.bf16 %v809_v10  ;;  %v31_v28 = vld [vmem:[%s1139_s2] sm:$0xff]  ;;  %v879_v38 = vld [vmem:[%s1140_s0 + $0x18] sm:$0xff]  ;;  %v893_v44 = vld [vmem:[%s1139_s2 + $0x88] sm:$0xff] }
   0xf   :  { %260 = vmatpush.msra.mxu2 %v126_v36  ;;  %291 = vmatpush.msra.mxu3 %v170_v37  ;;  %v93_v21 = vunpack.c.l.bf16 %v35_v11  ;;  %v94_v22 = vunpack.c.h.bf16 %v35_v11  ;;  %v187_v23 = vunpack.c.l.bf16 %v823_v15  ;;  %v135_v26 = vunpack.c.l.bf16 %v829_v18  ;;  %v867_v36 = vld [vmem:[%s1139_s2 + $0x98] sm:$0xff]  ;;  %v872_v37 = vld [vmem:[%s1139_s2 + $0x168] sm:$0xff]  ;;  %v884_v39 = vld [vmem:[%s1140_s0] sm:$0xff] }
  0x10   :  { %209 = vmatpush.msra.mxu0 %v121_v40  ;;  %240 = vmatpush.msra.mxu1 %v165_v41  ;;  %v89_v27 = vunpack.c.l.bf16 %v33_v19  ;;  %v90_v29 = vunpack.c.h.bf16 %v33_v19  ;;  %v131_v30 = vunpack.c.l.bf16 %v841_v24  ;;  %v183_v31 = vunpack.c.l.bf16 %v846_v25  ;;  %v898_v45 = vld [vmem:[%s1139_s2 + $0x158] sm:$0xff]  ;;  %v924_v56 = vld [vmem:[%s1139_s2 + $0x68] sm:$0xff] }
  0x11   :  { %261 = vmatpush.msra.mxu2 %v122_v42  ;;  %292 = vmatpush.msra.mxu3 %v166_v43  ;;  %v85_v34 = vunpack.c.l.bf16 %v31_v28  ;;  %v86_v35 = vunpack.c.h.bf16 %v31_v28  ;;  %v127_v40 = vunpack.c.l.bf16 %v857_v32  ;;  %v179_v41 = vunpack.c.l.bf16 %v862_v33  ;;  %v910_v50 = vld [vmem:[%s1139_s2 + $0x78] sm:$0xff]  ;;  %v36_v19 = vld [vmem:[%s1139_s2 + $0x28] sm:$0xff] }
  0x12   :  { %210 = vmatpush.msra.mxu0 %v117_v46  ;;  %241 = vmatpush.msra.mxu1 %v161_v47  ;;  %v148_v42 = vunpack.c.h.bf16 %v787_v62  ;;  %v192_v43 = vunpack.c.h.bf16 %v804_v8  ;;  %v123_v46 = vunpack.c.l.bf16 %v867_v36  ;;  %v175_v47 = vunpack.c.l.bf16 %v872_v37  ;;  %v944_v62 = vld [vmem:[%s1140_s0 + $0x28] sm:$0xff] }
  0x13   :  { %262 = vmatpush.msra.mxu2 %v118_v48  ;;  %293 = vmatpush.msra.mxu3 %v162_v49  ;;  %v144_v48 = vunpack.c.h.bf16 %v795_v4  ;;  %v188_v49 = vunpack.c.h.bf16 %v823_v15  ;;  %v119_v51 = vunpack.c.l.bf16 %v893_v44  ;;  %v111_v63 = vunpack.c.l.bf16 %v924_v56  ;;  %v963_v4 = vld [vmem:[%s1139_s2 + $0x48] sm:$0xff] }
  0x14   :  { %211 = vmatpush.msra.mxu0 %v113_v52  ;;  %242 = vmatpush.msra.mxu1 %v157_v53  ;;  %v171_v52 = vunpack.c.l.bf16 %v898_v45  ;;  %v917_v53 = vld [vmem:[%s1139_s2 + $0x148] sm:$0xff]  ;;  %v180_v5 = vunpack.c.h.bf16 %v862_v33  ;;  %v103_v11 = vunpack.c.l.bf16 %v963_v4  ;;  %v124_v15 = vunpack.c.h.bf16 %v867_v36 }
  0x15   :  { %263 = vmatpush.msra.mxu2 %v114_v54  ;;  %294 = vmatpush.msra.mxu3 %v158_v55  ;;  %v140_v54 = vunpack.c.h.bf16 %v809_v10  ;;  %v115_v55 = vunpack.c.l.bf16 %v910_v50  ;;  %v167_v57 = vunpack.c.l.bf16 %v917_v53  ;;  %v176_v10 = vunpack.c.h.bf16 %v872_v37  ;;  %v32_v28 = vld [vmem:[%s1139_s2 + $0x8] sm:$0xff] }
  0x16   :  { %212 = vmatpush.msra.mxu0 %v109_v58  ;;  %243 = vmatpush.msra.mxu1 %v153_v59  ;;  %v136_v58 = vunpack.c.h.bf16 %v829_v18  ;;  %v931_v59 = vld [vmem:[%s1139_s2 + $0x138] sm:$0xff] }
  0x17   :  { %264 = vmatpush.msra.mxu2 %v110_v60  ;;  %295 = vmatpush.msra.mxu3 %v154_v61  ;;  %v184_v60 = vunpack.c.h.bf16 %v846_v25  ;;  %v937_v61 = vld [vmem:[%s1139_s2 + $0x58] sm:$0xff]  ;;  %v29_v25 = vld [vmem:[%s1140_s0 + $0x20] sm:$0xff] }
  0x18   :  { %213 = vmatpush.msra.mxu0 %v105_v0  ;;  %244 = vmatpush.msra.mxu1 %v149_v1  ;;  %v950_v0 = vld [vmem:[%s1139_s2 + $0x128] sm:$0xff]  ;;  %v956_v1 = vld [vmem:[%s1140_s0 + $0x10] sm:$0xff]  ;;  %v108_v33 = vunpack.c.h.bf16 %v937_v61 }
  0x19   :  { %265 = vmatpush.msra.mxu2 %v106_v2  ;;  %296 = vmatpush.msra.mxu3 %v150_v3  ;;  %v163_v2 = vunpack.c.l.bf16 %v931_v59  ;;  %v132_v3 = vunpack.c.h.bf16 %v841_v24  ;;  %v159_v8 = vunpack.c.l.bf16 %v950_v0  ;;  %v95_v24 = vunpack.c.l.bf16 %v36_v19 }
  0x1a   :  { %307 = vmatpush.msrb.mxu1 %v147_v6  ;;  %214 = vmatpush.msra.mxu0 %v101_v7  ;;  %v107_v6 = vunpack.c.l.bf16 %v937_v61  ;;  %v970_v7 = vld [vmem:[%s1139_s2 + $0x118] sm:$0xff] }
  0x1b   :  { %266 = vmatpush.msra.mxu2 %v102_v9  ;;  %669 = vmatmul.msk.f32.vlgmr.msra.gmra.mxu3 %vm193_vm0, %v817_v12  ;;  %v128_v9 = vunpack.c.h.bf16 %v857_v32  ;;  %v87_v32 = vunpack.c.l.bf16 %v32_v28 }
  0x1c   :  { %308 = vmatpush.msrb.mxu1 %v143_v13  ;;  %215 = vmatpush.msra.mxu0 %v97_v14  ;;  %v64_v13 = vld [vmem:[%s1139_s2 + $0x108] sm:$0xff]  ;;  %v155_v14 = vunpack.c.l.bf16 %v970_v7 }
  0x1d   :  { %267 = vmatpush.msra.mxu2 %v98_v16  ;;  %338 = vmatpush.msrb.mxu3 %v191_v17  ;;  %v38_v16 = vld [vmem:[%s1139_s2 + $0x38] sm:$0xff]  ;;  %v172_v17 = vunpack.c.h.bf16 %v898_v45  ;;  %v151_v18 = vunpack.c.l.bf16 %v64_v13  ;;  %v152_v36 = vunpack.c.h.bf16 %v64_v13 }
  0x1e   :  { %309 = vmatpush.msrb.mxu1 %v139_v20  ;;  %216 = vmatpush.msra.mxu0 %v93_v21  ;;  %v99_v20 = vunpack.c.l.bf16 %v38_v16  ;;  %v120_v21 = vunpack.c.h.bf16 %v893_v44  ;;  %v100_v37 = vunpack.c.h.bf16 %v38_v16 }
  0x1f   :  { %268 = vmatpush.msra.mxu2 %v94_v22  ;;  %339 = vmatpush.msrb.mxu3 %v187_v23  ;;  %v168_v22 = vunpack.c.h.bf16 %v917_v53  ;;  %v34_v23 = vld [vmem:[%s1139_s2 + $0x18] sm:$0xff] }
  0x20   :  { %310 = vmatpush.msrb.mxu1 %v135_v26  ;;  %217 = vmatpush.msra.mxu0 %v89_v27  ;;  %v116_v26 = vunpack.c.h.bf16 %v910_v50  ;;  %v164_v27 = vunpack.c.h.bf16 %v931_v59  ;;  %v694_v59 = vmov 0.0  }
  0x21   :  { %666 = vmatmul.msk.f32.vlgmr.msra.gmra.mxu1 %vm193_vm0, %v817_v12  ;;  %269 = vmatpush.msra.mxu2 %v90_v29  ;;  %v91_v29 = vunpack.c.l.bf16 %v34_v23  ;;  %19 = vst.msk [vmem:[#allocation3] sm:$0xff] %vm18_vm1, %v694_v59 }
  0x22   :  { %311 = vmatpush.msrb.mxu1 %v131_v30  ;;  %340 = vmatpush.msrb.mxu3 %v183_v31  ;;  %v112_v30 = vunpack.c.h.bf16 %v924_v56  ;;  %v160_v31 = vunpack.c.h.bf16 %v950_v0  ;;  %20 = vst.msk [vmem:[#allocation3 + $0x8] sm:$0xff] %vm18_vm1, %v694_v59 }
  0x23   :  { %218 = vmatpush.msra.mxu0 %v85_v34  ;;  %270 = vmatpush.msra.mxu2 %v86_v35  ;;  %v156_v34 = vunpack.c.h.bf16 %v970_v7  ;;  %v104_v35 = vunpack.c.h.bf16 %v963_v4  ;;  %21 = vst.msk [vmem:[#allocation3 + $0x10] sm:$0xff] %vm18_vm1, %v694_v59 }
  0x24   :  { %670 = vmatmul.msk.f32.gmra.mxu3 %vm193_vm0, %v879_v38  ;;  %271 = vmatmul.f32.vlgmr.msra.gmra.mxu2 %v884_v39  ;;  %22 = vst.msk [vmem:[#allocation4] sm:$0xff] %vm18_vm1, %v694_v59 }
  0x25   :  { %312 = vmatpush.msrb.mxu1 %v127_v40  ;;  %341 = vmatpush.msrb.mxu3 %v179_v41  ;;  %v96_v40 = vunpack.c.h.bf16 %v36_v19  ;;  %v92_v41 = vunpack.c.h.bf16 %v34_v23  ;;  %23 = vst.msk [vmem:[#allocation4 + $0x8] sm:$0xff] %vm18_vm1, %v694_v59 }
  0x26   :  { %359 = vmatpush.msrb.mxu0 %v148_v42  ;;  %390 = vmatpush.msrb.mxu2 %v192_v43  ;;  %v88_v42 = vunpack.c.h.bf16 %v32_v28  ;;  %24 = vst.msk [vmem:[#allocation4 + $0x10] sm:$0xff] %vm18_vm1, %v694_v59 }
  0x27   :  { %313 = vmatpush.msrb.mxu1 %v123_v46  ;;  %342 = vmatpush.msrb.mxu3 %v175_v47 }
  0x28   :  { %360 = vmatpush.msrb.mxu0 %v144_v48  ;;  %391 = vmatpush.msrb.mxu2 %v188_v49 }
  0x29   :  { %314 = vmatpush.msrb.mxu1 %v119_v51  ;;  %343 = vmatpush.msrb.mxu3 %v171_v52 }
  0x2a   :  { %361 = vmatpush.msrb.mxu0 %v140_v54  ;;  %667 = vmatmul.msk.f32.gmra.mxu1 %vm193_vm0, %v879_v38 }
  0x2b   :  { %219 = vmatmul.f32.vlgmr.msra.gmra.mxu0 %v884_v39  ;;  %315 = vmatpush.msrb.mxu1 %v115_v55 }
  0x2c   :  { %344 = vmatpush.msrb.mxu3 %v167_v57  ;;  %362 = vmatpush.msrb.mxu0 %v136_v58 }
  0x2d   :  { %392 = vmatpush.msrb.mxu2 %v184_v60  ;;  %671 = vmatmul.msk.f32.gmra.mxu3 %vm193_vm0, %v944_v62 }
  0x2e   :  { %274 = vmatmul.f32.gmra.mxu2 %v956_v1  ;;  %316 = vmatpush.msrb.mxu1 %v111_v63 }
  0x2f   :  { %345 = vmatpush.msrb.mxu3 %v163_v2  ;;  %363 = vmatpush.msrb.mxu0 %v132_v3 }
  0x30   :  { %393 = vmatpush.msrb.mxu2 %v180_v5  ;;  %317 = vmatpush.msrb.mxu1 %v107_v6 }
  0x31   :  { %346 = vmatpush.msrb.mxu3 %v159_v8  ;;  %364 = vmatpush.msrb.mxu0 %v128_v9 }
  0x32   :  { %394 = vmatpush.msrb.mxu2 %v176_v10  ;;  %318 = vmatpush.msrb.mxu1 %v103_v11 }
  0x33   :  { %347 = vmatpush.msrb.mxu3 %v155_v14  ;;  %365 = vmatpush.msrb.mxu0 %v124_v15 }
  0x34   :  { %395 = vmatpush.msrb.mxu2 %v172_v17  ;;  %222 = vmatmul.f32.gmra.mxu0 %v956_v1 }
  0x35   :  { %668 = vmatmul.msk.f32.gmra.mxu1 %vm193_vm0, %v944_v62  ;;  %348 = vmatpush.msrb.mxu3 %v151_v18 }
  0x36   :  { %319 = vmatpush.msrb.mxu1 %v99_v20  ;;  %366 = vmatpush.msrb.mxu0 %v120_v21 }
  0x37   :  { %672 = vmatmul.msk.f32.vlgmr.msrb.gmra.mxu3 %vm193_vm0, %v817_v12  ;;  %396 = vmatpush.msrb.mxu2 %v168_v22 }
  0x38   :  { %277 = vmatmul.f32.gmra.mxu2 %v29_v25  ;;  %320 = vmatpush.msrb.mxu1 %v95_v24 }
  0x39   :  { %367 = vmatpush.msrb.mxu0 %v116_v26  ;;  %397 = vmatpush.msrb.mxu2 %v164_v27 }
  0x3a   :  { %321 = vmatpush.msrb.mxu1 %v91_v29 }
  0x3b   :  { %368 = vmatpush.msrb.mxu0 %v112_v30  ;;  %398 = vmatpush.msrb.mxu2 %v160_v31 }
  0x3c   :  { %322 = vmatpush.msrb.mxu1 %v87_v32  ;;  %225 = vmatmul.f32.gmra.mxu0 %v29_v25 }
  0x3d   :  { %369 = vmatpush.msrb.mxu0 %v108_v33  ;;  %323 = vmatmul.f32.vlgmr.msrb.gmra.mxu1 %v884_v39 }
  0x3e   :  { %399 = vmatpush.msrb.mxu2 %v156_v34 }
  0x3f   :  { %370 = vmatpush.msrb.mxu0 %v104_v35  ;;  %673 = vmatmul.msk.f32.gmra.mxu3 %vm193_vm0, %v879_v38 }
  0x40   :  { %400 = vmatpush.msrb.mxu2 %v152_v36 }
  0x41   :  { %371 = vmatpush.msrb.mxu0 %v100_v37  ;;  %675 = vmatmul.msk.f32.vlgmr.msrb.gmra.mxu2 %vm193_vm0, %v817_v12 }
  0x43   :  { %372 = vmatpush.msrb.mxu0 %v96_v40 }
  0x45   :  { %373 = vmatpush.msrb.mxu0 %v92_v41  ;;  %326 = vmatmul.f32.gmra.mxu1 %v956_v1 }
  0x47   :  { %374 = vmatpush.msrb.mxu0 %v88_v42  ;;  %674 = vmatmul.msk.f32.gmra.mxu3 %vm193_vm0, %v944_v62 }
  0x48   :  { %375 = vmatmul.f32.vlgmr.msrb.gmra.mxu0 %v884_v39 }
  0x49   :  { %676 = vmatmul.msk.f32.gmra.mxu2 %vm193_vm0, %v879_v38 }
  0x4d   :  { %329 = vmatmul.f32.gmra.mxu1 %v29_v25 }
  0x50   :  { %378 = vmatmul.f32.gmra.mxu0 %v956_v1 }
  0x51   :  { %677 = vmatmul.msk.f32.gmra.mxu2 %vm193_vm0, %v944_v62 }
  0x58   :  { %381 = vmatmul.f32.gmra.mxu0 %v29_v25 }
  0x9e   :  { %v246_v12 = vpop.f32.mrf.mxu1  ;;  %v298_v43 = vpop.f32.mrf.mxu3 }
  0xa7   :  { %v301_v44 = vpop.f32.mrf.mxu3  ;;  %v249_v45 = vpop.f32.mrf.mxu1 }
  0xa8   :  { %v272_v46 = vpop.f32.mrf.mxu2  ;;  %v220_v47 = vpop.f32.mrf.mxu0 }
  0xa9   :  { %v1028_v54 = vadd.f32 %v246_v12, %v220_v47  ;;  %v1030_v55 = vadd.f32 %v298_v43, %v272_v46 }
  0xab   :  { %v431_v61 = vadd.f32 %v1030_v55, %v1028_v54  ;;  %v456_v33 = vmul.f32 %v1028_v54, %v1028_v54  ;;  %v457_v34 = vmul.f32 %v1030_v55, %v1030_v55 }
  0xad   :  { %v468_v12 = vadd.f32 %v457_v34, %v456_v33 }
  0xb0   :  { %v304_v48 = vpop.f32.mrf.mxu3 }
  0xb1   :  { %v275_v49 = vpop.f32.mrf.mxu2  ;;  %v223_v39 = vpop.f32.mrf.mxu0 }
  0xb2   :  { %v252_v50 = vpop.f32.mrf.mxu1  ;;  %v1038_v62 = vadd.f32 %v249_v45, %v223_v39  ;;  %v1040_v63 = vadd.f32 %v301_v44, %v275_v49  ;;  %v428_v45 = vld [vmem:[#allocation3] sm:$0xff] }
  0xb4   :  { %v460_v5 = vmul.f32 %v1038_v62, %v1038_v62  ;;  %v461_v6 = vmul.f32 %v1040_v63, %v1040_v63  ;;  %v436_v7 = vadd.f32 %v1040_v63, %v1038_v62 }
  0xb6   :  { %v473_v14 = vadd.f32 %v461_v6, %v460_v5 }
  0xb9   :  { %v226_v53 = vpop.f32.mrf.mxu0 }
  0xba   :  { %v324_v51 = vpop.f32.mrf.mxu1  ;;  %v350_v52 = vpop.f32.mrf.mxu3  ;;  %v1060_v15 = vadd.f32 %v252_v50, %v226_v53  ;;  %v454_v50 = vld [vmem:[#allocation4 + $0x8] sm:$0xff] }
  0xbb   :  { %v278_v38 = vpop.f32.mrf.mxu2  ;;  %v1032_v56 = vadd.f32 %v350_v52, %v324_v51 }
  0xbc   :  { %v1062_v16 = vadd.f32 %v304_v48, %v278_v38  ;;  %v464_v23 = vmul.f32 %v1060_v15, %v1060_v15  ;;  %v429_v48 = vld [vmem:[#allocation3 + $0x8] sm:$0xff]  ;;  %v430_v38 = vld [vmem:[#allocation3 + $0x10] sm:$0xff] }
  0xbd   :  { %v432_v2 = vadd.f32 %v431_v61, %v1032_v56  ;;  %v458_v40 = vmul.f32 %v1032_v56, %v1032_v56 }
  0xbe   :  { %v465_v24 = vmul.f32 %v1062_v16, %v1062_v16  ;;  %v441_v28 = vadd.f32 %v1062_v16, %v1060_v15 }
  0xbf   :  { %v469_v43 = vadd.f32 %v468_v12, %v458_v40  ;;  %v514_v12 = vld [vmem:[%s1141_s1 + $0x8] sm:$0xff] }
  0xc0   :  { %v478_v32 = vadd.f32 %v465_v24, %v464_v23 }
  0xc2   :  { %v327_v57 = vpop.f32.mrf.mxu1  ;;  %v353_v58 = vpop.f32.mrf.mxu3 }
  0xc3   :  { %v1048_v3 = vadd.f32 %v353_v58, %v327_v57  ;;  %v455_v57 = vld [vmem:[#allocation4 + $0x10] sm:$0xff] }
  0xc4   :  { %v402_v60 = vpop.f32.mrf.mxu2 }
  0xc5   :  { %v376_v0 = vpop.f32.mrf.mxu0  ;;  %v462_v10 = vmul.f32 %v1048_v3, %v1048_v3  ;;  %v437_v18 = vadd.f32 %v436_v7, %v1048_v3  ;;  %v453_v7 = vld [vmem:[#allocation4] sm:$0xff] }
  0xc6   :  { %v1043_v1 = vadd.f32 %v402_v60, %v376_v0 }
  0xc7   :  { %v474_v22 = vadd.f32 %v473_v14, %v462_v10 }
  0xc8   :  { %v433_v4 = vadd.f32 %v432_v2, %v1043_v1  ;;  %v459_v42 = vmul.f32 %v1043_v1, %v1043_v1 }
  0xca   :  { %434 = vadd.xlane.f32.xlu0 %v433_v4  ;;  %v330_v8 = vpop.f32.mrf.mxu1  ;;  %v356_v11 = vpop.f32.mrf.mxu3  ;;  %v470_v44 = vadd.f32 %v469_v43, %v459_v42  ;;  %v695_v4 = vmov 0  }
  0xcb   :  { %v1067_v19 = vadd.f32 %v356_v11, %v330_v8  ;;  %684 = vset.pattern.permute.xlu1 %v695_v4  ;;  %683 = vset.pattern.permute.xlu2 %v695_v4 }
  0xcc   :  { %v405_v9 = vpop.f32.mrf.mxu2  ;;  %682 = vset.pattern.permute.xlu0 %v695_v4 }
  0xcd   :  { %v379_v13 = vpop.f32.mrf.mxu0  ;;  %v466_v26 = vmul.f32 %v1067_v19, %v1067_v19  ;;  %v442_v31 = vadd.f32 %v441_v28, %v1067_v19 }
  0xce   :  { %v1064_v17 = vadd.f32 %v405_v9, %v379_v13 }
  0xcf   :  { %v479_v37 = vadd.f32 %v478_v32, %v466_v26 }
  0xd0   :  { %v438_v20 = vadd.f32 %v437_v18, %v1064_v17  ;;  %v463_v21 = vmul.f32 %v1064_v17, %v1064_v17 }
  0xd2   :  { %439 = vadd.xlane.f32.xlu0 %v438_v20  ;;  %v475_v25 = vadd.f32 %v474_v22, %v463_v21 }
  0xd4   :  { %476 = vadd.xlane.f32.xlu2 %v475_v25  ;;  %v408_v27 = vpop.f32.mrf.mxu2 }
  0xd5   :  { %v382_v29 = vpop.f32.mrf.mxu0 }
  0xd6   :  { %v1080_v30 = vadd.f32 %v408_v27, %v382_v29 }
  0xd8   :  { %v443_v35 = vadd.f32 %v442_v31, %v1080_v30  ;;  %v467_v36 = vmul.f32 %v1080_v30, %v1080_v30 }
  0xda   :  { %444 = vadd.xlane.f32.xlu1 %v443_v35  ;;  %v480_v41 = vadd.f32 %v479_v37, %v467_v36 }
  0xdc   :  { %481 = vadd.xlane.f32.xlu2 %v480_v41 }
  0xe2   :  { %471 = vadd.xlane.f32.xlu1 %v470_v44 }
 0x13d   :  { %v435_v46 = vpop.xlane.xlu0 %434 }
 0x13e   :  { %v446_v47 = vadd.f32 %v435_v46, %v428_v45 }
 0x140   :  { %450 = vst.msk [vmem:[#allocation3] sm:$0xff] %vm18_vm1, %v446_v47 }
 0x145   :  { %v440_v49 = vpop.xlane.xlu0 %439 }
 0x146   :  { %v447_v39 = vadd.f32 %v440_v49, %v429_v48 }
 0x147   :  { %v477_v51 = vpop.xlane.xlu2 %476  ;;  %v492_v21 = vld [vmem:[#allocation3] sm:$0xff] }
 0x148   :  { %451 = vst.msk [vmem:[#allocation3 + $0x8] sm:$0xff] %vm18_vm1, %v447_v39  ;;  %v484_v52 = vadd.f32 %v477_v51, %v454_v50  ;;  %v495_v25 = vmul.f32 0.001953125, %v492_v21 }
 0x14a   :  { %487 = vst.msk [vmem:[#allocation4 + $0x8] sm:$0xff] %vm18_vm1, %v484_v52  ;;  %v504_v32 = vmul.f32 %v495_v25, %v495_v25  ;;  %v515_v52 = vld [vmem:[%s1141_s1 + $0x10] sm:$0xff] }
 0x14d   :  { %v445_v53 = vpop.xlane.xlu1 %444 }
 0x14e   :  { %v448_v58 = vadd.f32 %v445_v53, %v430_v38 }
 0x14f   :  { %v482_v59 = vpop.xlane.xlu2 %481  ;;  %v493_v60 = vld [vmem:[#allocation3 + $0x8] sm:$0xff] }
 0x150   :  { %452 = vst.msk [vmem:[#allocation3 + $0x10] sm:$0xff] %vm18_vm1, %v448_v58  ;;  %v485_v61 = vadd.f32 %v482_v59, %v455_v57  ;;  %v496_v0 = vmul.f32 0.001953125, %v493_v60 }
 0x151   :  { %v499_v2 = vld [vmem:[#allocation4 + $0x8] sm:$0xff] }
 0x152   :  { %488 = vst.msk [vmem:[#allocation4 + $0x10] sm:$0xff] %vm18_vm1, %v485_v61  ;;  %v502_v5 = vmul.f32 0.001953125, %v499_v2  ;;  %v505_v6 = vmul.f32 %v496_v0, %v496_v0 }
 0x154   :  { %v508_v8 = vsub.f32 %v502_v5, %v505_v6 }
 0x155   :  { %v472_v9 = vpop.xlane.xlu1 %471 }
 0x156   :  { %v483_v10 = vadd.f32 %v472_v9, %v453_v7  ;;  %v511_v11 = vmax.f32 %v508_v8, 0.0  ;;  %v697_v7 = vmov 1  }
 0x157   :  { %v494_v13 = vld [vmem:[#allocation3 + $0x10] sm:$0xff] }
 0x158   :  { %486 = vst.msk [vmem:[#allocation4] sm:$0xff] %vm18_vm1, %v483_v10  ;;  %v517_v14 = vadd.f32 1e-05, %v511_v11  ;;  %v497_v18 = vmul.f32 0.001953125, %v494_v13 }
 0x159   :  { %v500_v20 = vld [vmem:[#allocation4 + $0x10] sm:$0xff] }
 0x15a   :  { %688 = vrsqrt.f32 %v517_v14  ;;  %v503_v22 = vmul.f32 0.001953125, %v500_v20  ;;  %v506_v23 = vmul.f32 %v497_v18, %v497_v18  ;;  %vm535_vm3 = vweird.f32 %v517_v14 }
 0x15c   :  { %v509_v24 = vsub.f32 %v503_v22, %v506_v23 }
 0x15e   :  { %v512_v26 = vmax.f32 %v509_v24, 0.0 }
 0x15f   :  { %v498_v27 = vld [vmem:[#allocation4] sm:$0xff] }
 0x160   :  { %v689_v28 = vpop.eup %688  ;;  %v518_v29 = vadd.f32 1e-05, %v512_v26  ;;  %v501_v31 = vmul.f32 0.001953125, %v498_v27 }
 0x161   :  { %v530_v33 = vmul.f32 %v689_v28, %v517_v14  ;;  %vm536_vm2 = vweird.f32 %v689_v28 }
 0x162   :  { %690 = vrsqrt.f32 %v518_v29  ;;  %v507_v34 = vsub.f32 %v501_v31, %v504_v32  ;;  %vm537_vm4 = vmor %vm535_vm3, %vm536_vm2  ;;  %vm545_vm6 = vweird.f32 %v518_v29 }
 0x163   :  { %v531_v35 = vmul.f32 %v689_v28, %v530_v33 }
 0x164   :  { %v510_v36 = vmax.f32 %v507_v34, 0.0 }
 0x165   :  { %v532_v37 = vmul.f32 0.5, %v531_v35 }
 0x166   :  { %v516_v40 = vadd.f32 1e-05, %v510_v36 }
 0x167   :  { %v533_v41 = vsub.f32 1.5, %v532_v37 }
 0x168   :  { %v691_v42 = vpop.eup %690  ;;  %692 = vrsqrt.f32 %v516_v40  ;;  %vm525_vm9 = vweird.f32 %v516_v40 }
 0x169   :  { %v534_v43 = vmul.f32 %v689_v28, %v533_v41  ;;  %v540_v44 = vmul.f32 %v691_v42, %v518_v29  ;;  %vm546_vm5 = vweird.f32 %v691_v42 }
 0x16a   :  { %vm547_vm7 = vmor %vm545_vm6, %vm546_vm5 }
 0x16b   :  { %v538_v45 = vsel %vm537_vm4, %v689_v28, %v534_v43  ;;  %v541_v46 = vmul.f32 %v691_v42, %v540_v44 }
 0x16c   :  { %v550_v47 = vmul.f32 %v538_v45, %v514_v12 }
 0x16d   :  { %v542_v48 = vmul.f32 0.5, %v541_v46 }
 0x16e   :  { %v693_v49 = vpop.eup %692  ;;  %v553_v50 = vmul.f32 %v550_v47, %v496_v0  ;;  %v513_v0 = vld [vmem:[%s1141_s1] sm:$0xff] }
 0x16f   :  { %v543_v39 = vsub.f32 1.5, %v542_v48  ;;  %v520_v51 = vmul.f32 %v693_v49, %v516_v40  ;;  %vm526_vm8 = vweird.f32 %v693_v49 }
 0x170   :  { %560 = vrot.lane.b32.xlu1 %v553_v50, %s696_s24  ;;  %vm527_vm10 = vmor %vm525_vm9, %vm526_vm8 }
 0x171   :  { %v544_v38 = vmul.f32 %v691_v42, %v543_v39  ;;  %v521_v53 = vmul.f32 %v693_v49, %v520_v51 }
 0x173   :  { %v548_v57 = vsel %vm547_vm7, %v691_v42, %v544_v38  ;;  %v522_v58 = vmul.f32 0.5, %v521_v53 }
 0x174   :  { %v551_v59 = vmul.f32 %v548_v57, %v515_v52 }
 0x175   :  { %v523_v60 = vsub.f32 1.5, %v522_v58 }
 0x176   :  { %v554_v61 = vmul.f32 %v551_v59, %v497_v18 }
 0x177   :  { %v524_v2 = vmul.f32 %v693_v49, %v523_v60 }
 0x178   :  { %594 = vperm.xlu1 %684, %v551_v59   ;;  %562 = vrot.lane.b32.xlu2 %v554_v61, %s696_s24 }
 0x179   :  { %v528_v4 = vsel %vm527_vm10, %v693_v49, %v524_v2 }
 0x17a   :  { %v549_v5 = vmul.f32 %v528_v4, %v513_v0 }
 0x17c   :  { %v552_v6 = vmul.f32 %v549_v5, %v495_v25 }
 0x17e   :  { %558 = vrot.lane.b32.xlu0 %v552_v6, %s696_s24 }
 0x180   :  { %589 = vperm.xlu2 %683, %v550_v47   ;;  %686 = vset.pattern.permute.xlu1 %v697_v7 }
 0x186   :  { %584 = vperm.xlu0 %682, %v549_v5  }
 0x188   :  { %685 = vset.pattern.permute.xlu2 %v697_v7 }
 0x18e   :  { %687 = vset.pattern.permute.xlu0 %v697_v7 }
 0x1d2   :  { %v563_v8 = vpop.permute.xlu2 %562 }
 0x1d3   :  { %v569_v9 = vsub.f32 %v515_v52, %v563_v8 }
 0x1d5   :  { %621 = vperm.xlu0 %687, %v569_v9  }
 0x1da   :  { %v590_v21 = vpop.permute.xlu2 %589 }
 0x1db   :  { %v602_v47 = vmul.f32 %v590_v21, %v1040_v63  ;;  %v603_v48 = vmul.f32 %v590_v21, %v1048_v3  ;;  %v604_v49 = vmul.f32 %v590_v21, %v1064_v17 }
 0x1e2   :  { %v561_v10 = vpop.permute.xlu1 %560 }
 0x1e3   :  { %v568_v11 = vsub.f32 %v514_v12, %v561_v10 }
 0x1e5   :  { %616 = vperm.xlu1 %686, %v568_v11  }
 0x1ea   :  { %v595_v20 = vpop.permute.xlu1 %594 }
 0x1eb   :  { %v605_v22 = vmul.f32 %v595_v20, %v1060_v15  ;;  %v606_v23 = vmul.f32 %v595_v20, %v1062_v16  ;;  %v607_v24 = vmul.f32 %v595_v20, %v1067_v19  ;;  %v608_v25 = vmul.f32 %v595_v20, %v1080_v30 }
 0x1f0   :  { %v559_v13 = vpop.permute.xlu0 %558 }
 0x1f1   :  { %v567_v14 = vsub.f32 %v513_v0, %v559_v13 }
 0x1f3   :  { %611 = vperm.xlu2 %685, %v567_v14  }
 0x1f8   :  { %v585_v18 = vpop.permute.xlu0 %584 }
 0x1f9   :  { %v597_v36 = vmul.f32 %v585_v18, %v1028_v54  ;;  %v598_v37 = vmul.f32 %v585_v18, %v1030_v55  ;;  %v599_v16 = vmul.f32 %v585_v18, %v1032_v56  ;;  %v600_v19 = vmul.f32 %v585_v18, %v1043_v1 }
 0x1fa   :  { %v601_v1 = vmul.f32 %v590_v21, %v1038_v62 }
 0x247   :  { %v622_v26 = vpop.permute.xlu0 %621 }
 0x248   :  { %v632_v27 = vadd.f32 %v622_v26, %v605_v22  ;;  %v633_v28 = vadd.f32 %v622_v26, %v606_v23  ;;  %v634_v29 = vadd.f32 %v622_v26, %v607_v24  ;;  %v635_v31 = vadd.f32 %v622_v26, %v608_v25 }
 0x24a   :  { %v644_v32 = vmax.f32 %v632_v27, 0.0  ;;  %v645_v33 = vmax.f32 %v633_v28, 0.0  ;;  %v646_v34 = vmax.f32 %v634_v29, 0.0  ;;  %v647_v35 = vmax.f32 %v635_v31, 0.0 }
 0x24c   :  { %v652_v15 = vpack.c.bf16 %v645_v33, %v644_v32  ;;  %v653_v40 = vpack.c.bf16 %v647_v35, %v646_v34 }
 0x24d   :  { %v612_v30 = vpop.permute.xlu2 %611 }
 0x24e   :  { %658 = vst [vmem:[%s1142_s3 + $0x20] sm:$0xff] %v652_v15  ;;  %v624_v41 = vadd.f32 %v612_v30, %v597_v36  ;;  %v625_v42 = vadd.f32 %v612_v30, %v598_v37  ;;  %v626_v12 = vadd.f32 %v612_v30, %v599_v16  ;;  %v627_v43 = vadd.f32 %v612_v30, %v600_v19 }
 0x24f   :  { %659 = vst [vmem:[%s1142_s3 + $0x28] sm:$0xff] %v653_v40 }
 0x250   :  { %v636_v54 = vmax.f32 %v624_v41, 0.0  ;;  %v637_v55 = vmax.f32 %v625_v42, 0.0  ;;  %v638_v44 = vmax.f32 %v626_v12, 0.0  ;;  %v639_v45 = vmax.f32 %v627_v43, 0.0 }
 0x252   :  { %v648_v56 = vpack.c.bf16 %v637_v55, %v636_v54  ;;  %v649_v46 = vpack.c.bf16 %v639_v45, %v638_v44 }
 0x254   :  { %654 = vst [vmem:[%s1142_s3] sm:$0xff] %v648_v56 }
 0x255   :  { %655 = vst [vmem:[%s1142_s3 + $0x8] sm:$0xff] %v649_v46 }
 0x257   :  { %v617_v50 = vpop.permute.xlu1 %616 }
 0x258   :  { %v628_v39 = vadd.f32 %v617_v50, %v601_v1  ;;  %v629_v51 = vadd.f32 %v617_v50, %v602_v47  ;;  %v630_v52 = vadd.f32 %v617_v50, %v603_v48  ;;  %v631_v38 = vadd.f32 %v617_v50, %v604_v49 }
 0x25a   :  { %v640_v53 = vmax.f32 %v628_v39, 0.0  ;;  %v641_v57 = vmax.f32 %v629_v51, 0.0  ;;  %v642_v58 = vmax.f32 %v630_v52, 0.0  ;;  %v643_v59 = vmax.f32 %v631_v38, 0.0 }
 0x25c   :  { %v650_v60 = vpack.c.bf16 %v641_v57, %v640_v53  ;;  %v651_v61 = vpack.c.bf16 %v643_v59, %v642_v58 }
 0x25e   :  { %656 = vst [vmem:[%s1142_s3 + $0x10] sm:$0xff] %v650_v60 }
 0x25f   :  { %657 = vst [vmem:[%s1142_s3 + $0x18] sm:$0xff] %v651_v61 }

// kernel: conv_input_model.6
= control target key start
LH: loop header
LB: loop body
LE: loop exit
PB: predicated region body
PF: predicated region fallthrough
CT: control target
= control target key end

     0   :  { %vm85_vm0 = vcmask 719872   ;;  %vm18_vm1 = vcmask 7168   ;;  %v442_v47 = vmov 0.0   ;;  %s444_s29 = smov 1   ;;  %s584_s2 = inlined_call_operand.vmem [shape: bf16[216,128], index: 2, kind: input, shape index: {}]   ;;  %s585_s0 = inlined_call_operand.vmem [shape: f32[24,216], index: 0, kind: input, shape index: {}]   ;;  %s586_s1 = inlined_call_operand.vmem [shape: f32[24,2], index: 1, kind: input, shape index: {}]   ;;  %s587_s3 = inlined_call_operand.vmem [shape: bf16[24,128], index: 3, kind: output, shape index: {}]  }
   0x1   :  { %v388_v0 = vld [vmem:[%s584_s2 + $0x38] sm:$0xff]   ;;  %v57_v1 = vld [vmem:[%s584_s2 + $0x68] sm:$0xf]  ;;  %v393_v2 = vld [vmem:[%s584_s2 + $0x60] sm:$0xff]   ;;  %19 = vst.msk [vmem:[#allocation3] sm:$0xff] %vm18_vm1, %v442_v47 }
   0x2   :  { %v356_v3 = vunpack.c.h.bf16 %v388_v0  ;;  %v84_v4 = vunpack.c.l.bf16 %v57_v1  ;;  %v355_v5 = vunpack.c.l.bf16 %v388_v0  ;;  %v387_v6 = vld [vmem:[%s584_s2 + $0x30] sm:$0xff]   ;;  %v376_v7 = vunpack.c.h.bf16 %v393_v2  ;;  %v392_v9 = vld [vmem:[%s584_s2 + $0x58] sm:$0xff]   ;;  %v386_v11 = vld [vmem:[%s584_s2 + $0x28] sm:$0xff]   ;;  %20 = vst.msk [vmem:[#allocation3 + $0x8] sm:$0xff] %vm18_vm1, %v442_v47 }
   0x3   :  { %v352_v8 = vunpack.c.h.bf16 %v387_v6  ;;  %v375_v10 = vunpack.c.l.bf16 %v393_v2  ;;  %v351_v12 = vunpack.c.l.bf16 %v387_v6  ;;  %v372_v13 = vunpack.c.h.bf16 %v392_v9  ;;  %v391_v15 = vld [vmem:[%s584_s2 + $0x50] sm:$0xff]   ;;  %v385_v17 = vld [vmem:[%s584_s2 + $0x20] sm:$0xff]   ;;  %v390_v21 = vld [vmem:[%s584_s2 + $0x48] sm:$0xff]   ;;  %21 = vst.msk [vmem:[#allocation3 + $0x10] sm:$0xff] %vm18_vm1, %v442_v47 }
   0x4   :  { %95 = vmatpush.msra.mxu0 %v356_v3  ;;  %394 = vmatpush.msra.mxu2 %v356_v3  ;;  %v348_v14 = vunpack.c.h.bf16 %v386_v11  ;;  %v371_v16 = vunpack.c.l.bf16 %v392_v9  ;;  %v347_v18 = vunpack.c.l.bf16 %v386_v11  ;;  %v368_v19 = vunpack.c.h.bf16 %v391_v15  ;;  %v384_v23 = vld [vmem:[%s584_s2 + $0x18] sm:$0xff]   ;;  %v389_v27 = vld [vmem:[%s584_s2 + $0x40] sm:$0xff]   ;;  %v383_v29 = vld [vmem:[%s584_s2 + $0x10] sm:$0xff]   ;;  %22 = vst.msk [vmem:[#allocation4] sm:$0xff] %vm18_vm1, %v442_v47 }
   0x5   :  { %395 = vmatpush.msra.mxu3 %v356_v3  ;;  %126 = vmatpush.msra.mxu1 %v84_v4  ;;  %v344_v20 = vunpack.c.h.bf16 %v385_v17  ;;  %v367_v22 = vunpack.c.l.bf16 %v391_v15  ;;  %v343_v24 = vunpack.c.l.bf16 %v385_v17  ;;  %v364_v25 = vunpack.c.h.bf16 %v390_v21  ;;  %v382_v34 = vld [vmem:[%s584_s2 + $0x8] sm:$0xff]   ;;  %v326_v38 = vld [vmem:[%s584_s2] sm:$0xff]   ;;  %v28_v42 = vld [vmem:[%s585_s0 + $0x18] sm:$0xff]  ;;  %23 = vst.msk [vmem:[#allocation4 + $0x8] sm:$0xff] %vm18_vm1, %v442_v47 }
   0x6   :  { %96 = vmatpush.msra.mxu0 %v355_v5  ;;  %396 = vmatpush.msra.mxu2 %v355_v5  ;;  %v340_v26 = vunpack.c.h.bf16 %v384_v23  ;;  %v363_v28 = vunpack.c.l.bf16 %v390_v21  ;;  %v339_v30 = vunpack.c.l.bf16 %v384_v23  ;;  %v360_v31 = vunpack.c.h.bf16 %v389_v27  ;;  %v26_v36 = vld [vmem:[%s585_s0 + $0x8] sm:$0xff]  ;;  %v25_v43 = vld [vmem:[%s585_s0] sm:$0xff]  ;;  %v27_v44 = vld [vmem:[%s585_s0 + $0x10] sm:$0xff]  ;;  %24 = vst.msk [vmem:[#allocation4 + $0x10] sm:$0xff] %vm18_vm1, %v442_v47 }
   0x7   :  { %397 = vmatpush.msra.mxu3 %v355_v5  ;;  %127 = vmatpush.msra.mxu1 %v376_v7  ;;  %v336_v32 = vunpack.c.h.bf16 %v383_v29  ;;  %v359_v33 = vunpack.c.l.bf16 %v389_v27  ;;  %v335_v35 = vunpack.c.l.bf16 %v383_v29  ;;  %v332_v37 = vunpack.c.h.bf16 %v382_v34  ;;  %v29_v45 = vld [vmem:[%s585_s0 + $0x20] sm:$0xff]  ;;  %v30_v46 = vld [vmem:[%s585_s0 + $0x28] sm:$0xff] }
   0x8   :  { %97 = vmatpush.msra.mxu0 %v352_v8  ;;  %398 = vmatpush.msra.mxu2 %v352_v8  ;;  %v331_v39 = vunpack.c.l.bf16 %v382_v34  ;;  %v328_v40 = vunpack.c.h.bf16 %v326_v38  ;;  %v327_v41 = vunpack.c.l.bf16 %v326_v38  ;;  %v154_v60 = vld [vmem:[#allocation3] sm:$0xff] }
   0x9   :  { %399 = vmatpush.msra.mxu3 %v352_v8  ;;  %128 = vmatpush.msra.mxu1 %v375_v10  ;;  %v155_v1 = vld [vmem:[#allocation3 + $0x8] sm:$0xff] }
   0xa   :  { %98 = vmatpush.msra.mxu0 %v351_v12  ;;  %400 = vmatpush.msra.mxu2 %v351_v12  ;;  %v156_v63 = vld [vmem:[#allocation3 + $0x10] sm:$0xff] }
   0xb   :  { %401 = vmatpush.msra.mxu3 %v351_v12  ;;  %129 = vmatpush.msra.mxu1 %v372_v13  ;;  %v170_v8 = vld [vmem:[#allocation4] sm:$0xff] }
   0xc   :  { %99 = vmatpush.msra.mxu0 %v348_v14  ;;  %402 = vmatpush.msra.mxu2 %v348_v14  ;;  %v171_v0 = vld [vmem:[#allocation4 + $0x8] sm:$0xff] }
   0xd   :  { %403 = vmatpush.msra.mxu3 %v348_v14  ;;  %130 = vmatpush.msra.mxu1 %v371_v16  ;;  %v172_v9 = vld [vmem:[#allocation4 + $0x10] sm:$0xff] }
   0xe   :  { %100 = vmatpush.msra.mxu0 %v347_v18  ;;  %404 = vmatpush.msra.mxu2 %v347_v18 }
   0xf   :  { %405 = vmatpush.msra.mxu3 %v347_v18  ;;  %131 = vmatpush.msra.mxu1 %v368_v19 }
  0x10   :  { %101 = vmatpush.msra.mxu0 %v344_v20  ;;  %406 = vmatpush.msra.mxu2 %v344_v20 }
  0x11   :  { %407 = vmatpush.msra.mxu3 %v344_v20  ;;  %132 = vmatpush.msra.mxu1 %v367_v22 }
  0x12   :  { %102 = vmatpush.msra.mxu0 %v343_v24  ;;  %408 = vmatpush.msra.mxu2 %v343_v24 }
  0x13   :  { %409 = vmatpush.msra.mxu3 %v343_v24  ;;  %133 = vmatpush.msra.mxu1 %v364_v25 }
  0x14   :  { %103 = vmatpush.msra.mxu0 %v340_v26  ;;  %410 = vmatpush.msra.mxu2 %v340_v26 }
  0x15   :  { %411 = vmatpush.msra.mxu3 %v340_v26  ;;  %134 = vmatpush.msra.mxu1 %v363_v28 }
  0x16   :  { %104 = vmatpush.msra.mxu0 %v339_v30  ;;  %412 = vmatpush.msra.mxu2 %v339_v30 }
  0x17   :  { %413 = vmatpush.msra.mxu3 %v339_v30  ;;  %135 = vmatpush.msra.mxu1 %v360_v31  ;;  %v443_v30 = vmov 0  }
  0x18   :  { %105 = vmatpush.msra.mxu0 %v336_v32  ;;  %414 = vmatpush.msra.mxu2 %v336_v32 }
  0x19   :  { %415 = vmatpush.msra.mxu3 %v336_v32  ;;  %136 = vmatpush.msra.mxu1 %v359_v33 }
  0x1a   :  { %322 = vmatmul.msk.f32.vlgmr.msra.gmra.mxu1 %vm85_vm0, %v26_v36  ;;  %106 = vmatpush.msra.mxu0 %v335_v35 }
  0x1b   :  { %416 = vmatpush.msra.mxu2 %v335_v35  ;;  %417 = vmatpush.msra.mxu3 %v335_v35 }
  0x1c   :  { %107 = vmatpush.msra.mxu0 %v332_v37  ;;  %432 = vset.pattern.permute.xlu1 %v443_v30 }
  0x1d   :  { %418 = vmatpush.msra.mxu2 %v332_v37  ;;  %419 = vmatpush.msra.mxu3 %v332_v37 }
  0x1e   :  { %108 = vmatpush.msra.mxu0 %v331_v39  ;;  %430 = vset.pattern.permute.xlu0 %v443_v30 }
  0x1f   :  { %420 = vmatpush.msra.mxu2 %v331_v39  ;;  %421 = vmatpush.msra.mxu3 %v331_v39 }
  0x20   :  { %109 = vmatpush.msra.mxu0 %v328_v40  ;;  %431 = vset.pattern.permute.xlu2 %v443_v30 }
  0x21   :  { %422 = vmatpush.msra.mxu2 %v328_v40  ;;  %423 = vmatpush.msra.mxu3 %v328_v40 }
  0x22   :  { %323 = vmatmul.msk.f32.gmra.mxu1 %vm85_vm0, %v28_v42  ;;  %110 = vmatpush.msra.mxu0 %v327_v41 }
  0x23   :  { %424 = vmatpush.msra.mxu2 %v327_v41  ;;  %425 = vmatpush.msra.mxu3 %v327_v41 }
  0x24   :  { %111 = vmatmul.f32.vlgmr.msra.gmra.mxu0 %v25_v43  ;;  %114 = vmatmul.f32.vlgmr.msra.gmra.mxu2 %v27_v44 }
  0x25   :  { %117 = vmatmul.f32.vlgmr.msra.gmra.mxu3 %v29_v45 }
  0x2a   :  { %324 = vmatmul.msk.f32.gmra.mxu1 %vm85_vm0, %v30_v46 }
  0x97   :  { %v138_v48 = vpop.f32.mrf.mxu1 }
  0x9f   :  { %v141_v49 = vpop.f32.mrf.mxu1 }
  0xa1   :  { %v112_v50 = vpop.f32.mrf.mxu0 }
  0xa2   :  { %v535_v51 = vadd.f32 %v138_v48, %v112_v50  ;;  %v213_v50 = vld [vmem:[%s586_s1 + $0x8] sm:$0xff] }
  0xa4   :  { %157 = vadd.xlane.f32.xlu0 %v535_v51  ;;  %v173_v59 = vmul.f32 %v535_v51, %v535_v51 }
  0xa7   :  { %v115_v52 = vpop.f32.mrf.mxu2  ;;  %v144_v53 = vpop.f32.mrf.mxu1 }
  0xa8   :  { %v538_v54 = vadd.f32 %v141_v49, %v115_v52  ;;  %v118_v55 = vpop.f32.mrf.mxu3 }
  0xa9   :  { %v540_v56 = vadd.f32 %v144_v53, %v118_v55 }
  0xaa   :  { %v174_v57 = vmul.f32 %v538_v54, %v538_v54 }
  0xab   :  { %161 = vadd.xlane.f32.xlu1 %v540_v56  ;;  %v175_v58 = vmul.f32 %v540_v56, %v540_v56 }
  0xac   :  { %178 = vadd.xlane.f32.xlu2 %v174_v57  ;;  %159 = vadd.xlane.f32.xlu0 %v538_v54 }
  0xb3   :  { %176 = vadd.xlane.f32.xlu1 %v173_v59 }
  0xb4   :  { %180 = vadd.xlane.f32.xlu2 %v175_v58 }
 0x117   :  { %v158_v61 = vpop.xlane.xlu0 %157 }
 0x118   :  { %v163_v62 = vadd.f32 %v158_v61, %v154_v60  ;;  %v212_v61 = vld [vmem:[%s586_s1] sm:$0xff] }
 0x11a   :  { %167 = vst.msk [vmem:[#allocation3] sm:$0xff] %vm18_vm1, %v163_v62 }
 0x11e   :  { %v162_v2 = vpop.xlane.xlu1 %161 }
 0x11f   :  { %v165_v3 = vadd.f32 %v162_v2, %v156_v63  ;;  %v179_v4 = vpop.xlane.xlu2 %178  ;;  %v160_v5 = vpop.xlane.xlu0 %159 }
 0x120   :  { %v183_v6 = vadd.f32 %v179_v4, %v171_v0  ;;  %v164_v7 = vadd.f32 %v160_v5, %v155_v1  ;;  %v214_v0 = vld [vmem:[%s586_s1 + $0x10] sm:$0xff] }
 0x121   :  { %169 = vst.msk [vmem:[#allocation3 + $0x10] sm:$0xff] %vm18_vm1, %v165_v3  ;;  %v191_v17 = vld [vmem:[#allocation3] sm:$0xff] }
 0x122   :  { %186 = vst.msk [vmem:[#allocation4 + $0x8] sm:$0xff] %vm18_vm1, %v183_v6  ;;  %v558_v22 = vmul.f32 0.0078125, %v191_v17 }
 0x123   :  { %168 = vst.msk [vmem:[#allocation3 + $0x8] sm:$0xff] %vm18_vm1, %v164_v7 }
 0x124   :  { %v203_v28 = vmul.f32 %v558_v22, %v558_v22 }
 0x126   :  { %v177_v10 = vpop.xlane.xlu1 %176 }
 0x127   :  { %v182_v11 = vadd.f32 %v177_v10, %v170_v8  ;;  %v181_v12 = vpop.xlane.xlu2 %180  ;;  %v445_v8 = vmov 1  }
 0x128   :  { %v184_v13 = vadd.f32 %v181_v12, %v172_v9  ;;  %v193_v15 = vld [vmem:[#allocation3 + $0x10] sm:$0xff] }
 0x129   :  { %185 = vst.msk [vmem:[#allocation4] sm:$0xff] %vm18_vm1, %v182_v11  ;;  %v198_v14 = vld [vmem:[#allocation4 + $0x8] sm:$0xff]  ;;  %v556_v20 = vmul.f32 0.0078125, %v193_v15 }
 0x12a   :  { %187 = vst.msk [vmem:[#allocation4 + $0x10] sm:$0xff] %vm18_vm1, %v184_v13  ;;  %v192_v16 = vld [vmem:[#allocation3 + $0x8] sm:$0xff]  ;;  %v201_v19 = vmul.f32 0.0078125, %v198_v14 }
 0x12b   :  { %v195_v18 = vmul.f32 0.0078125, %v192_v16  ;;  %v205_v25 = vmul.f32 %v556_v20, %v556_v20 }
 0x12d   :  { %v204_v21 = vmul.f32 %v195_v18, %v195_v18 }
 0x12f   :  { %v207_v23 = vsub.f32 %v201_v19, %v204_v21 }
 0x130   :  { %v197_v24 = vld [vmem:[#allocation4] sm:$0xff] }
 0x131   :  { %v210_v26 = vmax.f32 %v207_v23, 0.0  ;;  %v200_v27 = vmul.f32 0.0078125, %v197_v24  ;;  %v199_v29 = vld [vmem:[#allocation4 + $0x10] sm:$0xff] }
 0x132   :  { %v202_v31 = vmul.f32 0.0078125, %v199_v29 }
 0x133   :  { %v216_v32 = vadd.f32 1e-05, %v210_v26  ;;  %v206_v33 = vsub.f32 %v200_v27, %v203_v28 }
 0x134   :  { %v208_v34 = vsub.f32 %v202_v31, %v205_v25 }
 0x135   :  { %436 = vrsqrt.f32 %v216_v32  ;;  %v209_v35 = vmax.f32 %v206_v33, 0.0  ;;  %vm234_vm3 = vweird.f32 %v216_v32 }
 0x136   :  { %v211_v36 = vmax.f32 %v208_v34, 0.0 }
 0x137   :  { %v215_v37 = vadd.f32 1e-05, %v209_v35 }
 0x138   :  { %v217_v38 = vadd.f32 1e-05, %v211_v36 }
 0x139   :  { %438 = vrsqrt.f32 %v215_v37  ;;  %vm224_vm8 = vweird.f32 %v215_v37 }
 0x13a   :  { %440 = vrsqrt.f32 %v217_v38  ;;  %vm244_vm6 = vweird.f32 %v217_v38 }
 0x13b   :  { %v437_v39 = vpop.eup %436 }
 0x13c   :  { %v229_v40 = vmul.f32 %v437_v39, %v216_v32  ;;  %vm235_vm2 = vweird.f32 %v437_v39 }
 0x13d   :  { %vm236_vm4 = vmor %vm234_vm3, %vm235_vm2 }
 0x13e   :  { %v230_v41 = vmul.f32 %v437_v39, %v229_v40 }
 0x13f   :  { %v439_v42 = vpop.eup %438 }
 0x140   :  { %v441_v43 = vpop.eup %440  ;;  %v231_v44 = vmul.f32 0.5, %v230_v41  ;;  %v219_v45 = vmul.f32 %v439_v42, %v215_v37  ;;  %vm225_vm5 = vweird.f32 %v439_v42 }
 0x141   :  { %v239_v46 = vmul.f32 %v441_v43, %v217_v38  ;;  %vm245_vm7 = vweird.f32 %v441_v43  ;;  %vm226_vm9 = vmor %vm224_vm8, %vm225_vm5 }
 0x142   :  { %v232_v47 = vsub.f32 1.5, %v231_v44  ;;  %v220_v48 = vmul.f32 %v439_v42, %v219_v45  ;;  %vm246_vm10 = vmor %vm244_vm6, %vm245_vm7 }
 0x143   :  { %v240_v49 = vmul.f32 %v441_v43, %v239_v46 }
 0x144   :  { %v233_v52 = vmul.f32 %v437_v39, %v232_v47  ;;  %v221_v53 = vmul.f32 0.5, %v220_v48 }
 0x145   :  { %v241_v55 = vmul.f32 0.5, %v240_v49 }
 0x146   :  { %v237_v57 = vsel %vm236_vm4, %v437_v39, %v233_v52  ;;  %v222_v58 = vsub.f32 1.5, %v221_v53 }
 0x147   :  { %v249_v59 = vmul.f32 %v237_v57, %v213_v50  ;;  %v242_v60 = vsub.f32 1.5, %v241_v55 }
 0x148   :  { %v223_v62 = vmul.f32 %v439_v42, %v222_v58 }
 0x149   :  { %v252_v63 = vmul.f32 %v249_v59, %v195_v18  ;;  %v243_v1 = vmul.f32 %v441_v43, %v242_v60 }
 0x14a   :  { %v227_v2 = vsel %vm226_vm9, %v439_v42, %v223_v62 }
 0x14b   :  { %259 = vrot.lane.b32.xlu1 %v252_v63, %s444_s29  ;;  %v248_v3 = vmul.f32 %v227_v2, %v212_v61  ;;  %v247_v4 = vsel %vm246_vm10, %v441_v43, %v243_v1 }
 0x14c   :  { %v250_v5 = vmul.f32 %v247_v4, %v214_v0 }
 0x14d   :  { %v251_v6 = vmul.f32 %v248_v3, %v558_v22 }
 0x14e   :  { %v253_v7 = vmul.f32 %v250_v5, %v556_v20 }
 0x14f   :  { %257 = vrot.lane.b32.xlu0 %v251_v6, %s444_s29 }
 0x150   :  { %261 = vrot.lane.b32.xlu2 %v253_v7, %s444_s29 }
 0x153   :  { %284 = vperm.xlu1 %432, %v250_v5  }
 0x157   :  { %274 = vperm.xlu0 %430, %v248_v3  }
 0x158   :  { %279 = vperm.xlu2 %431, %v249_v59  }
 0x15b   :  { %434 = vset.pattern.permute.xlu1 %v445_v8 }
 0x15f   :  { %435 = vset.pattern.permute.xlu0 %v445_v8 }
 0x160   :  { %433 = vset.pattern.permute.xlu2 %v445_v8 }
 0x1aa   :  { %v262_v9 = vpop.permute.xlu2 %261 }
 0x1ab   :  { %v268_v10 = vsub.f32 %v214_v0, %v262_v9 }
 0x1ad   :  { %302 = vperm.xlu0 %435, %v268_v10  }
 0x1b2   :  { %v280_v22 = vpop.permute.xlu2 %279 }
 0x1b3   :  { %v288_v25 = vmul.f32 %v280_v22, %v538_v54 }
 0x1bd   :  { %v260_v11 = vpop.permute.xlu1 %259 }
 0x1be   :  { %v267_v12 = vsub.f32 %v213_v50, %v260_v11 }
 0x1c0   :  { %297 = vperm.xlu1 %434, %v267_v12  }
 0x1c1   :  { %v258_v13 = vpop.permute.xlu0 %257 }
 0x1c2   :  { %v266_v14 = vsub.f32 %v212_v61, %v258_v13 }
 0x1c4   :  { %292 = vperm.xlu2 %433, %v266_v14  }
 0x1c5   :  { %v285_v16 = vpop.permute.xlu1 %284 }
 0x1c6   :  { %v289_v17 = vmul.f32 %v285_v16, %v540_v56 }
 0x1c9   :  { %v275_v15 = vpop.permute.xlu0 %274 }
 0x1ca   :  { %v287_v24 = vmul.f32 %v275_v15, %v535_v51 }
 0x21e   :  { %v293_v23 = vpop.permute.xlu2 %292 }
 0x21f   :  { %v303_v18 = vpop.permute.xlu0 %302  ;;  %v305_v26 = vadd.f32 %v293_v23, %v287_v24 }
 0x220   :  { %v307_v19 = vadd.f32 %v303_v18, %v289_v17 }
 0x221   :  { %v308_v29 = vmax.f32 %v305_v26, 0.0 }
 0x222   :  { %v310_v20 = vmax.f32 %v307_v19, 0.0 }
 0x224   :  { %v313_v21 = vpack.c.bf16 %v310_v20, %v310_v20 }
 0x226   :  { %316 = vst [vmem:[%s587_s3 + $0x8] sm:$0xf] %v313_v21 }
 0x232   :  { %v298_v27 = vpop.permute.xlu1 %297 }
 0x233   :  { %v306_v28 = vadd.f32 %v298_v27, %v288_v25 }
 0x235   :  { %v309_v30 = vmax.f32 %v306_v28, 0.0 }
 0x237   :  { %v380_v56 = vpack.c.bf16 %v309_v30, %v308_v29 }
 0x239   :  { %381 = vst [vmem:[%s587_s3] sm:$0xff] %v380_v56  }

// kernel: conv_input_model.7
= control target key start
LH: loop header
LB: loop body
LE: loop exit
PB: predicated region body
PF: predicated region fallthrough
CT: control target
= control target key end

     0   :  { %vm85_vm0 = vcmask 719872   ;;  %vm18_vm1 = vcmask 7168   ;;  %v434_v47 = vmov 0.0   ;;  %s436_s29 = smov 1   ;;  %s579_s2 = inlined_call_operand.vmem [shape: bf16[216,128], index: 2, kind: input, shape index: {}]   ;;  %s580_s0 = inlined_call_operand.vmem [shape: f32[24,216], index: 0, kind: input, shape index: {}]   ;;  %s581_s1 = inlined_call_operand.vmem [shape: f32[24,2], index: 1, kind: input, shape index: {}]   ;;  %s582_s3 = inlined_call_operand.vmem [shape: f32[24,128], index: 3, kind: output, shape index: {}]  }
   0x1   :  { %v380_v0 = vld [vmem:[%s579_s2 + $0x38] sm:$0xff]   ;;  %v57_v1 = vld [vmem:[%s579_s2 + $0x68] sm:$0xf]  ;;  %v385_v2 = vld [vmem:[%s579_s2 + $0x60] sm:$0xff]   ;;  %19 = vst.msk [vmem:[#allocation3] sm:$0xff] %vm18_vm1, %v434_v47 }
   0x2   :  { %v353_v3 = vunpack.c.h.bf16 %v380_v0  ;;  %v84_v4 = vunpack.c.l.bf16 %v57_v1  ;;  %v352_v5 = vunpack.c.l.bf16 %v380_v0  ;;  %v379_v6 = vld [vmem:[%s579_s2 + $0x30] sm:$0xff]   ;;  %v373_v7 = vunpack.c.h.bf16 %v385_v2  ;;  %v384_v9 = vld [vmem:[%s579_s2 + $0x58] sm:$0xff]   ;;  %v378_v11 = vld [vmem:[%s579_s2 + $0x28] sm:$0xff]   ;;  %20 = vst.msk [vmem:[#allocation3 + $0x8] sm:$0xff] %vm18_vm1, %v434_v47 }
   0x3   :  { %v349_v8 = vunpack.c.h.bf16 %v379_v6  ;;  %v372_v10 = vunpack.c.l.bf16 %v385_v2  ;;  %v348_v12 = vunpack.c.l.bf16 %v379_v6  ;;  %v369_v13 = vunpack.c.h.bf16 %v384_v9  ;;  %v383_v15 = vld [vmem:[%s579_s2 + $0x50] sm:$0xff]   ;;  %v377_v17 = vld [vmem:[%s579_s2 + $0x20] sm:$0xff]   ;;  %v382_v21 = vld [vmem:[%s579_s2 + $0x48] sm:$0xff]   ;;  %21 = vst.msk [vmem:[#allocation3 + $0x10] sm:$0xff] %vm18_vm1, %v434_v47 }
   0x4   :  { %95 = vmatpush.msra.mxu0 %v353_v3  ;;  %386 = vmatpush.msra.mxu2 %v353_v3  ;;  %v345_v14 = vunpack.c.h.bf16 %v378_v11  ;;  %v368_v16 = vunpack.c.l.bf16 %v384_v9  ;;  %v344_v18 = vunpack.c.l.bf16 %v378_v11  ;;  %v365_v19 = vunpack.c.h.bf16 %v383_v15  ;;  %v376_v23 = vld [vmem:[%s579_s2 + $0x18] sm:$0xff]   ;;  %v381_v27 = vld [vmem:[%s579_s2 + $0x40] sm:$0xff]   ;;  %v375_v29 = vld [vmem:[%s579_s2 + $0x10] sm:$0xff]   ;;  %22 = vst.msk [vmem:[#allocation4] sm:$0xff] %vm18_vm1, %v434_v47 }
   0x5   :  { %387 = vmatpush.msra.mxu3 %v353_v3  ;;  %126 = vmatpush.msra.mxu1 %v84_v4  ;;  %v341_v20 = vunpack.c.h.bf16 %v377_v17  ;;  %v364_v22 = vunpack.c.l.bf16 %v383_v15  ;;  %v340_v24 = vunpack.c.l.bf16 %v377_v17  ;;  %v361_v25 = vunpack.c.h.bf16 %v382_v21  ;;  %v374_v34 = vld [vmem:[%s579_s2 + $0x8] sm:$0xff]   ;;  %v323_v38 = vld [vmem:[%s579_s2] sm:$0xff]   ;;  %v28_v42 = vld [vmem:[%s580_s0 + $0x18] sm:$0xff]  ;;  %23 = vst.msk [vmem:[#allocation4 + $0x8] sm:$0xff] %vm18_vm1, %v434_v47 }
   0x6   :  { %96 = vmatpush.msra.mxu0 %v352_v5  ;;  %388 = vmatpush.msra.mxu2 %v352_v5  ;;  %v337_v26 = vunpack.c.h.bf16 %v376_v23  ;;  %v360_v28 = vunpack.c.l.bf16 %v382_v21  ;;  %v336_v30 = vunpack.c.l.bf16 %v376_v23  ;;  %v357_v31 = vunpack.c.h.bf16 %v381_v27  ;;  %v26_v36 = vld [vmem:[%s580_s0 + $0x8] sm:$0xff]  ;;  %v25_v43 = vld [vmem:[%s580_s0] sm:$0xff]  ;;  %v27_v44 = vld [vmem:[%s580_s0 + $0x10] sm:$0xff]  ;;  %24 = vst.msk [vmem:[#allocation4 + $0x10] sm:$0xff] %vm18_vm1, %v434_v47 }
   0x7   :  { %389 = vmatpush.msra.mxu3 %v352_v5  ;;  %127 = vmatpush.msra.mxu1 %v373_v7  ;;  %v333_v32 = vunpack.c.h.bf16 %v375_v29  ;;  %v356_v33 = vunpack.c.l.bf16 %v381_v27  ;;  %v332_v35 = vunpack.c.l.bf16 %v375_v29  ;;  %v329_v37 = vunpack.c.h.bf16 %v374_v34  ;;  %v29_v45 = vld [vmem:[%s580_s0 + $0x20] sm:$0xff]  ;;  %v30_v46 = vld [vmem:[%s580_s0 + $0x28] sm:$0xff] }
   0x8   :  { %97 = vmatpush.msra.mxu0 %v349_v8  ;;  %390 = vmatpush.msra.mxu2 %v349_v8  ;;  %v328_v39 = vunpack.c.l.bf16 %v374_v34  ;;  %v325_v40 = vunpack.c.h.bf16 %v323_v38  ;;  %v324_v41 = vunpack.c.l.bf16 %v323_v38  ;;  %v154_v60 = vld [vmem:[#allocation3] sm:$0xff] }
   0x9   :  { %391 = vmatpush.msra.mxu3 %v349_v8  ;;  %128 = vmatpush.msra.mxu1 %v372_v10  ;;  %v155_v1 = vld [vmem:[#allocation3 + $0x8] sm:$0xff] }
   0xa   :  { %98 = vmatpush.msra.mxu0 %v348_v12  ;;  %392 = vmatpush.msra.mxu2 %v348_v12  ;;  %v156_v63 = vld [vmem:[#allocation3 + $0x10] sm:$0xff] }
   0xb   :  { %393 = vmatpush.msra.mxu3 %v348_v12  ;;  %129 = vmatpush.msra.mxu1 %v369_v13  ;;  %v170_v8 = vld [vmem:[#allocation4] sm:$0xff] }
   0xc   :  { %99 = vmatpush.msra.mxu0 %v345_v14  ;;  %394 = vmatpush.msra.mxu2 %v345_v14  ;;  %v171_v0 = vld [vmem:[#allocation4 + $0x8] sm:$0xff] }
   0xd   :  { %395 = vmatpush.msra.mxu3 %v345_v14  ;;  %130 = vmatpush.msra.mxu1 %v368_v16  ;;  %v172_v9 = vld [vmem:[#allocation4 + $0x10] sm:$0xff] }
   0xe   :  { %100 = vmatpush.msra.mxu0 %v344_v18  ;;  %396 = vmatpush.msra.mxu2 %v344_v18 }
   0xf   :  { %397 = vmatpush.msra.mxu3 %v344_v18  ;;  %131 = vmatpush.msra.mxu1 %v365_v19 }
  0x10   :  { %101 = vmatpush.msra.mxu0 %v341_v20  ;;  %398 = vmatpush.msra.mxu2 %v341_v20 }
  0x11   :  { %399 = vmatpush.msra.mxu3 %v341_v20  ;;  %132 = vmatpush.msra.mxu1 %v364_v22 }
  0x12   :  { %102 = vmatpush.msra.mxu0 %v340_v24  ;;  %400 = vmatpush.msra.mxu2 %v340_v24 }
  0x13   :  { %401 = vmatpush.msra.mxu3 %v340_v24  ;;  %133 = vmatpush.msra.mxu1 %v361_v25 }
  0x14   :  { %103 = vmatpush.msra.mxu0 %v337_v26  ;;  %402 = vmatpush.msra.mxu2 %v337_v26 }
  0x15   :  { %403 = vmatpush.msra.mxu3 %v337_v26  ;;  %134 = vmatpush.msra.mxu1 %v360_v28 }
  0x16   :  { %104 = vmatpush.msra.mxu0 %v336_v30  ;;  %404 = vmatpush.msra.mxu2 %v336_v30 }
  0x17   :  { %405 = vmatpush.msra.mxu3 %v336_v30  ;;  %135 = vmatpush.msra.mxu1 %v357_v31  ;;  %v435_v30 = vmov 0  }
  0x18   :  { %105 = vmatpush.msra.mxu0 %v333_v32  ;;  %406 = vmatpush.msra.mxu2 %v333_v32 }
  0x19   :  { %407 = vmatpush.msra.mxu3 %v333_v32  ;;  %136 = vmatpush.msra.mxu1 %v356_v33 }
  0x1a   :  { %319 = vmatmul.msk.f32.vlgmr.msra.gmra.mxu1 %vm85_vm0, %v26_v36  ;;  %106 = vmatpush.msra.mxu0 %v332_v35 }
  0x1b   :  { %408 = vmatpush.msra.mxu2 %v332_v35  ;;  %409 = vmatpush.msra.mxu3 %v332_v35 }
  0x1c   :  { %107 = vmatpush.msra.mxu0 %v329_v37  ;;  %424 = vset.pattern.permute.xlu1 %v435_v30 }
  0x1d   :  { %410 = vmatpush.msra.mxu2 %v329_v37  ;;  %411 = vmatpush.msra.mxu3 %v329_v37 }
  0x1e   :  { %108 = vmatpush.msra.mxu0 %v328_v39  ;;  %422 = vset.pattern.permute.xlu0 %v435_v30 }
  0x1f   :  { %412 = vmatpush.msra.mxu2 %v328_v39  ;;  %413 = vmatpush.msra.mxu3 %v328_v39 }
  0x20   :  { %109 = vmatpush.msra.mxu0 %v325_v40  ;;  %423 = vset.pattern.permute.xlu2 %v435_v30 }
  0x21   :  { %414 = vmatpush.msra.mxu2 %v325_v40  ;;  %415 = vmatpush.msra.mxu3 %v325_v40 }
  0x22   :  { %320 = vmatmul.msk.f32.gmra.mxu1 %vm85_vm0, %v28_v42  ;;  %110 = vmatpush.msra.mxu0 %v324_v41 }
  0x23   :  { %416 = vmatpush.msra.mxu2 %v324_v41  ;;  %417 = vmatpush.msra.mxu3 %v324_v41 }
  0x24   :  { %111 = vmatmul.f32.vlgmr.msra.gmra.mxu0 %v25_v43  ;;  %114 = vmatmul.f32.vlgmr.msra.gmra.mxu2 %v27_v44 }
  0x25   :  { %117 = vmatmul.f32.vlgmr.msra.gmra.mxu3 %v29_v45 }
  0x2a   :  { %321 = vmatmul.msk.f32.gmra.mxu1 %vm85_vm0, %v30_v46 }
  0x97   :  { %v138_v48 = vpop.f32.mrf.mxu1 }
  0x9f   :  { %v141_v49 = vpop.f32.mrf.mxu1 }
  0xa1   :  { %v112_v50 = vpop.f32.mrf.mxu0 }
  0xa2   :  { %v527_v51 = vadd.f32 %v138_v48, %v112_v50  ;;  %v213_v50 = vld [vmem:[%s581_s1 + $0x8] sm:$0xff] }
  0xa4   :  { %157 = vadd.xlane.f32.xlu0 %v527_v51  ;;  %v173_v59 = vmul.f32 %v527_v51, %v527_v51 }
  0xa7   :  { %v115_v52 = vpop.f32.mrf.mxu2  ;;  %v144_v53 = vpop.f32.mrf.mxu1 }
  0xa8   :  { %v530_v54 = vadd.f32 %v141_v49, %v115_v52  ;;  %v118_v55 = vpop.f32.mrf.mxu3 }
  0xa9   :  { %v532_v56 = vadd.f32 %v144_v53, %v118_v55 }
  0xaa   :  { %v174_v57 = vmul.f32 %v530_v54, %v530_v54 }
  0xab   :  { %161 = vadd.xlane.f32.xlu1 %v532_v56  ;;  %v175_v58 = vmul.f32 %v532_v56, %v532_v56 }
  0xac   :  { %178 = vadd.xlane.f32.xlu2 %v174_v57  ;;  %159 = vadd.xlane.f32.xlu0 %v530_v54 }
  0xb3   :  { %176 = vadd.xlane.f32.xlu1 %v173_v59 }
  0xb4   :  { %180 = vadd.xlane.f32.xlu2 %v175_v58 }
 0x117   :  { %v158_v61 = vpop.xlane.xlu0 %157 }
 0x118   :  { %v163_v62 = vadd.f32 %v158_v61, %v154_v60  ;;  %v212_v61 = vld [vmem:[%s581_s1] sm:$0xff] }
 0x11a   :  { %167 = vst.msk [vmem:[#allocation3] sm:$0xff] %vm18_vm1, %v163_v62 }
 0x11e   :  { %v162_v2 = vpop.xlane.xlu1 %161 }
 0x11f   :  { %v165_v3 = vadd.f32 %v162_v2, %v156_v63  ;;  %v179_v4 = vpop.xlane.xlu2 %178  ;;  %v160_v5 = vpop.xlane.xlu0 %159 }
 0x120   :  { %v183_v6 = vadd.f32 %v179_v4, %v171_v0  ;;  %v164_v7 = vadd.f32 %v160_v5, %v155_v1  ;;  %v214_v0 = vld [vmem:[%s581_s1 + $0x10] sm:$0xff] }
 0x121   :  { %169 = vst.msk [vmem:[#allocation3 + $0x10] sm:$0xff] %vm18_vm1, %v165_v3  ;;  %v191_v17 = vld [vmem:[#allocation3] sm:$0xff] }
 0x122   :  { %186 = vst.msk [vmem:[#allocation4 + $0x8] sm:$0xff] %vm18_vm1, %v183_v6  ;;  %v550_v22 = vmul.f32 0.03125, %v191_v17 }
 0x123   :  { %168 = vst.msk [vmem:[#allocation3 + $0x8] sm:$0xff] %vm18_vm1, %v164_v7 }
 0x124   :  { %v203_v28 = vmul.f32 %v550_v22, %v550_v22 }
 0x126   :  { %v177_v10 = vpop.xlane.xlu1 %176 }
 0x127   :  { %v182_v11 = vadd.f32 %v177_v10, %v170_v8  ;;  %v181_v12 = vpop.xlane.xlu2 %180  ;;  %v437_v8 = vmov 1  }
 0x128   :  { %v184_v13 = vadd.f32 %v181_v12, %v172_v9  ;;  %v193_v15 = vld [vmem:[#allocation3 + $0x10] sm:$0xff] }
 0x129   :  { %185 = vst.msk [vmem:[#allocation4] sm:$0xff] %vm18_vm1, %v182_v11  ;;  %v198_v14 = vld [vmem:[#allocation4 + $0x8] sm:$0xff]  ;;  %v548_v20 = vmul.f32 0.03125, %v193_v15 }
 0x12a   :  { %187 = vst.msk [vmem:[#allocation4 + $0x10] sm:$0xff] %vm18_vm1, %v184_v13  ;;  %v192_v16 = vld [vmem:[#allocation3 + $0x8] sm:$0xff]  ;;  %v201_v19 = vmul.f32 0.03125, %v198_v14 }
 0x12b   :  { %v195_v18 = vmul.f32 0.03125, %v192_v16  ;;  %v205_v25 = vmul.f32 %v548_v20, %v548_v20 }
 0x12d   :  { %v204_v21 = vmul.f32 %v195_v18, %v195_v18 }
 0x12f   :  { %v207_v23 = vsub.f32 %v201_v19, %v204_v21 }
 0x130   :  { %v197_v24 = vld [vmem:[#allocation4] sm:$0xff] }
 0x131   :  { %v210_v26 = vmax.f32 %v207_v23, 0.0  ;;  %v200_v27 = vmul.f32 0.03125, %v197_v24  ;;  %v199_v29 = vld [vmem:[#allocation4 + $0x10] sm:$0xff] }
 0x132   :  { %v202_v31 = vmul.f32 0.03125, %v199_v29 }
 0x133   :  { %v216_v32 = vadd.f32 1e-05, %v210_v26  ;;  %v206_v33 = vsub.f32 %v200_v27, %v203_v28 }
 0x134   :  { %v208_v34 = vsub.f32 %v202_v31, %v205_v25 }
 0x135   :  { %428 = vrsqrt.f32 %v216_v32  ;;  %v209_v35 = vmax.f32 %v206_v33, 0.0  ;;  %vm234_vm3 = vweird.f32 %v216_v32 }
 0x136   :  { %v211_v36 = vmax.f32 %v208_v34, 0.0 }
 0x137   :  { %v215_v37 = vadd.f32 1e-05, %v209_v35 }
 0x138   :  { %v217_v38 = vadd.f32 1e-05, %v211_v36 }
 0x139   :  { %430 = vrsqrt.f32 %v215_v37  ;;  %vm224_vm8 = vweird.f32 %v215_v37 }
 0x13a   :  { %432 = vrsqrt.f32 %v217_v38  ;;  %vm244_vm6 = vweird.f32 %v217_v38 }
 0x13b   :  { %v429_v39 = vpop.eup %428 }
 0x13c   :  { %v229_v40 = vmul.f32 %v429_v39, %v216_v32  ;;  %vm235_vm2 = vweird.f32 %v429_v39 }
 0x13d   :  { %vm236_vm4 = vmor %vm234_vm3, %vm235_vm2 }
 0x13e   :  { %v230_v41 = vmul.f32 %v429_v39, %v229_v40 }
 0x13f   :  { %v431_v42 = vpop.eup %430 }
 0x140   :  { %v433_v43 = vpop.eup %432  ;;  %v231_v44 = vmul.f32 0.5, %v230_v41  ;;  %v219_v45 = vmul.f32 %v431_v42, %v215_v37  ;;  %vm225_vm5 = vweird.f32 %v431_v42 }
 0x141   :  { %v239_v46 = vmul.f32 %v433_v43, %v217_v38  ;;  %vm245_vm7 = vweird.f32 %v433_v43  ;;  %vm226_vm9 = vmor %vm224_vm8, %vm225_vm5 }
 0x142   :  { %v232_v47 = vsub.f32 1.5, %v231_v44  ;;  %v220_v48 = vmul.f32 %v431_v42, %v219_v45  ;;  %vm246_vm10 = vmor %vm244_vm6, %vm245_vm7 }
 0x143   :  { %v240_v49 = vmul.f32 %v433_v43, %v239_v46 }
 0x144   :  { %v233_v52 = vmul.f32 %v429_v39, %v232_v47  ;;  %v221_v53 = vmul.f32 0.5, %v220_v48 }
 0x145   :  { %v241_v55 = vmul.f32 0.5, %v240_v49 }
 0x146   :  { %v237_v57 = vsel %vm236_vm4, %v429_v39, %v233_v52  ;;  %v222_v58 = vsub.f32 1.5, %v221_v53 }
 0x147   :  { %v249_v59 = vmul.f32 %v237_v57, %v213_v50  ;;  %v242_v60 = vsub.f32 1.5, %v241_v55 }
 0x148   :  { %v223_v62 = vmul.f32 %v431_v42, %v222_v58 }
 0x149   :  { %v252_v63 = vmul.f32 %v249_v59, %v195_v18  ;;  %v243_v1 = vmul.f32 %v433_v43, %v242_v60 }
 0x14a   :  { %v227_v2 = vsel %vm226_vm9, %v431_v42, %v223_v62 }
 0x14b   :  { %259 = vrot.lane.b32.xlu1 %v252_v63, %s436_s29  ;;  %v248_v3 = vmul.f32 %v227_v2, %v212_v61  ;;  %v247_v4 = vsel %vm246_vm10, %v433_v43, %v243_v1 }
 0x14c   :  { %v250_v5 = vmul.f32 %v247_v4, %v214_v0 }
 0x14d   :  { %v251_v6 = vmul.f32 %v248_v3, %v550_v22 }
 0x14e   :  { %v253_v7 = vmul.f32 %v250_v5, %v548_v20 }
 0x14f   :  { %257 = vrot.lane.b32.xlu0 %v251_v6, %s436_s29 }
 0x150   :  { %261 = vrot.lane.b32.xlu2 %v253_v7, %s436_s29 }
 0x153   :  { %284 = vperm.xlu1 %424, %v250_v5  }
 0x157   :  { %274 = vperm.xlu0 %422, %v248_v3  }
 0x158   :  { %279 = vperm.xlu2 %423, %v249_v59  }
 0x15b   :  { %426 = vset.pattern.permute.xlu1 %v437_v8 }
 0x15f   :  { %427 = vset.pattern.permute.xlu0 %v437_v8 }
 0x160   :  { %425 = vset.pattern.permute.xlu2 %v437_v8 }
 0x1aa   :  { %v262_v9 = vpop.permute.xlu2 %261 }
 0x1ab   :  { %v268_v10 = vsub.f32 %v214_v0, %v262_v9 }
 0x1ad   :  { %302 = vperm.xlu0 %427, %v268_v10  }
 0x1b2   :  { %v280_v15 = vpop.permute.xlu2 %279 }
 0x1b3   :  { %v288_v26 = vmul.f32 %v280_v15, %v530_v54 }
 0x1bd   :  { %v260_v11 = vpop.permute.xlu1 %259 }
 0x1be   :  { %v267_v12 = vsub.f32 %v213_v50, %v260_v11 }
 0x1c0   :  { %297 = vperm.xlu1 %426, %v267_v12  }
 0x1c1   :  { %v258_v13 = vpop.permute.xlu0 %257 }
 0x1c2   :  { %v266_v14 = vsub.f32 %v212_v61, %v258_v13 }
 0x1c4   :  { %292 = vperm.xlu2 %425, %v266_v14  }
 0x1c5   :  { %v285_v17 = vpop.permute.xlu1 %284 }
 0x1c6   :  { %v289_v19 = vmul.f32 %v285_v17, %v532_v56 }
 0x1c9   :  { %v275_v16 = vpop.permute.xlu0 %274 }
 0x1ca   :  { %v287_v18 = vmul.f32 %v275_v16, %v527_v51 }
 0x21e   :  { %v293_v20 = vpop.permute.xlu2 %292 }
 0x21f   :  { %v305_v21 = vadd.f32 %v293_v20, %v287_v18  ;;  %v303_v22 = vpop.permute.xlu0 %302 }
 0x220   :  { %v307_v23 = vadd.f32 %v303_v22, %v289_v19 }
 0x221   :  { %v308_v24 = vmax.f32 %v305_v21, 0.0 }
 0x222   :  { %v310_v25 = vmax.f32 %v307_v23, 0.0 }
 0x223   :  { %311 = vst [vmem:[%s582_s3] sm:$0xff] %v308_v24 }
 0x224   :  { %313 = vst [vmem:[%s582_s3 + $0x10] sm:$0xff] %v310_v25 }
 0x232   :  { %v298_v27 = vpop.permute.xlu1 %297 }
 0x233   :  { %v306_v51 = vadd.f32 %v298_v27, %v288_v26 }
 0x235   :  { %v309_v28 = vmax.f32 %v306_v51, 0.0 }
 0x237   :  { %312 = vst [vmem:[%s582_s3 + $0x8] sm:$0xff] %v309_v28 }

</bundles_post_ra>
